<compile_context>
chip_gen: v7x
topology: tpu7x:2x2x1
jax: 0.10.0
libtpu: 0.0.40
codegen_flags: <defaults>
</compile_context>

<pallas_src>
import functools

import jax
import jax.numpy as jnp
from jax.experimental import pallas as pl
from jax.experimental.pallas import tpu as pltpu


# ----------------------------------------------------------------------------
# BN folding (inference mode)
# ----------------------------------------------------------------------------
def _fold_bn(gamma, beta, mean, var, eps=1e-5):
    scale = gamma / jnp.sqrt(var + eps)
    return scale, beta - mean * scale


# ----------------------------------------------------------------------------
# Fused ASPP kernel
# ----------------------------------------------------------------------------
def _aspp_fused_kernel(x_ref, woff_ref, wctr_ref, b_ref, pool_ref,
                       o_ref, acc_ref, *, rates, R, TH, W, cout, c_conv):
    """Grid = (N, H//TH, Cin//TK);  k (channel chunk) is innermost/arbitrary.

    x_ref   : (1, Hp, Wp, TK)        padded NHWC image, current Cin chunk (bf16)
    woff_ref: (8*n_rates, Cout, TK)  BN-folded off-center 3x3 taps (bf16)
    wctr_ref: (C_conv, TK)           fused center taps (all branches + 1x1, bf16)
    b_ref   : (C_conv, 1)            BN biases (f32)
    pool_ref: (1, Cout, 1)           image-level branch value for this image (f32)
    o_ref   : (1, C_all, TH*W)       NCHW output tile
    acc_ref : (C_conv, TH*W)         f32 accumulator (persists across k)
    """
    h = pl.program_id(1)
    k = pl.program_id(2)
    nk = pl.num_programs(2)
    row0 = pl.multiple_of(h * TH, TH)
    M = TH * W

    def tap(dy, dx):
        # (TH, W, TK) window of the resident padded image -> (M, TK)
        a = x_ref[0, pl.ds(row0 + dy, TH), dx:dx + W, :]
        return a.reshape(M, a.shape[-1])

    def gemm_t(w, a):
        # (C, TK) x (M, TK) -> (C, M): contract both minor dims (q.kT pattern),
        # result lands directly in channel-major (NCHW) layout.
        return jax.lax.dot_general(w, a, (((1,), (1,)), ((), ())),
                                   preferred_element_type=jnp.float32)

    # Fused center taps: every dilated branch's (1,1) tap + the 1x1 branch
    # share the same LHS window -> one wide matmul per K chunk.
    ctr = gemm_t(wctr_ref[...], tap(R, R))                       # (C_conv, M)

    @pl.when(k == 0)
    def _():
        acc_ref[...] = ctr

    @pl.when(k != 0)
    def _():
        acc_ref[...] += ctr

    # Off-center taps of each dilated 3x3 branch, accumulated straight into
    # that branch's (sublane-aligned) row range of the accumulator.
    t = 0
    for i, r in enumerate(rates):
        br = None
        for ky in range(3):
            for kx in range(3):
                if ky == 1 and kx == 1:
                    continue
                p = gemm_t(woff_ref[t], tap(R + (ky - 1) * r, R + (kx - 1) * r))
                br = p if br is None else br + p
                t += 1
        acc_ref[i * cout:(i + 1) * cout, :] += br

    @pl.when(k == nk - 1)
    def _():
        y = jnp.maximum(acc_ref[...] + b_ref[...], 0.0)          # bias + ReLU
        o_ref[0, :c_conv, :] = y.astype(o_ref.dtype)
        # Image-level branch: bilinear upsample of a 1x1 map with
        # align_corners=True == constant broadcast over the tile.
        o_ref[0, c_conv:, :] = jnp.broadcast_to(
            pool_ref[0], (cout, M)).astype(o_ref.dtype)


# ----------------------------------------------------------------------------
# Tiling / VMEM policy helpers
# ----------------------------------------------------------------------------
def _pick_th(H, W, N):
    cands = [t for t in range(1, H + 1)
             if H % t == 0 and (t * W) % 128 == 0]
    if not cands:
        return H                     # see TODO(synk) about odd W
    def key(t):
        has_par = (N * (H // t)) >= 4       # keep both v7x TCs fed
        return (0 if has_par else 1, abs(t * W - 512), t)
    return min(cands, key=key)


def _pick_tk(cin):
    if cin <= 512:
        return cin                   # full-channel block (no K tiling needed)
    for tk in (512, 384, 256, 128):  # lane-aligned K chunks
        if cin % tk == 0:
            return tk
    return cin


def _vmem_limit_bytes():
    # ~85% of physical VMEM (64 MiB on v7x, 128 MiB on v5e/v6e), capped.
    cap = 64 * 1024 * 1024
    try:
        cap = int(pltpu.get_tpu_info().vmem_capacity_bytes)
    except Exception:
        pass
    return max(32 * 1024 * 1024, min(int(cap * 0.85), 112 * 1024 * 1024))


# ----------------------------------------------------------------------------
# Weight preparation (BN folding + layout)
# ----------------------------------------------------------------------------
def _prepare_weights(params, compute_dtype):
    rates = params["rates"]
    n_rates = len(rates)
    Cout, Cin = params["branches"][0].shape[0], params["branches"][0].shape[1]

    w_off, w_ctr, biases = [], [], []
    for i in range(n_rates):
        g, b, m, v = params["bn"][i]
        s, bb = _fold_bn(g, b, m, v)
        wf = params["branches"][i] * s[:, None, None, None]      # (Cout,Cin,3,3)
        for ky in range(3):
            for kx in range(3):
                if ky == 1 and kx == 1:
                    w_ctr.append(wf[:, :, ky, kx])               # (Cout, Cin)
                else:
                    w_off.append(wf[:, :, ky, kx])
        biases.append(bb)
    g, b, m, v = params["bn"][n_rates]
    s, bb = _fold_bn(g, b, m, v)
    w_ctr.append(params["w1x1"].reshape(Cout, Cin) * s[:, None])
    biases.append(bb)

    w_off = jnp.stack(w_off, axis=0).astype(compute_dtype)       # (8*nr,Cout,Cin)
    w_ctr = jnp.concatenate(w_ctr, axis=0).astype(compute_dtype) # (C_conv, Cin)
    bias = jnp.concatenate(biases, axis=0)[:, None].astype(jnp.float32)
    return w_off, w_ctr, bias                                    # bias (C_conv,1)


# ----------------------------------------------------------------------------
# Forward pass
# ----------------------------------------------------------------------------
def aspp_forward(x, params, *, compute_dtype=jnp.bfloat16, out_dtype=jnp.float32):
    """x: (N, Cin, H, W) f32 -> (N, (len(rates)+2)*Cout, H, W) out_dtype."""
    N, Cin, H, W = x.shape
    rates = tuple(params["rates"])
    n_rates = len(rates)
    R = max(rates)
    Cout = params["branches"][0].shape[0]
    C_conv = (n_rates + 1) * Cout
    C_all = C_conv + Cout

    w_off, w_ctr, bias = _prepare_weights(params, compute_dtype)

    # image-level branch: global-avg-pool -> 1x1 conv -> BN -> ReLU (f32, tiny)
    g, b, m, v = params["bn"][n_rates + 1]
    s, bb = _fold_bn(g, b, m, v)
    w_avg = params["w_avg"].reshape(Cout, Cin) * s[:, None]      # (Cout, Cin)
    pooled = jnp.mean(x, axis=(2, 3))                            # (N, Cin)
    pooled = jnp.maximum(pooled @ w_avg.T + bb[None, :], 0.0)    # (N, Cout)
    pooled = pooled[:, :, None].astype(jnp.float32)              # (N, Cout, 1)

    # NHWC + single spatial zero-pad (no im2col materialization)
    xp = jnp.transpose(x.astype(compute_dtype), (0, 2, 3, 1))
    xp = jnp.pad(xp, ((0, 0), (R, R), (R, R), (0, 0)))
    Hp, Wp = H + 2 * R, W + 2 * R

    TH = _pick_th(H, W, N)
    TK = _pick_tk(Cin)
    n_h, n_k = H // TH, Cin // TK
    M_tile = TH * W

    kernel = functools.partial(_aspp_fused_kernel, rates=rates, R=R,
                               TH=TH, W=W, cout=Cout, c_conv=C_conv)

    out = pl.pallas_call(
        kernel,
        out_shape=jax.ShapeDtypeStruct((N, C_all, H * W), out_dtype),
        grid_spec=pltpu.PrefetchScalarGridSpec(
            num_scalar_prefetch=0,
            grid=(N, n_h, n_k),
            in_specs=[
                # padded image, one Cin chunk (resident across h when n_k == 1)
                pl.BlockSpec((1, Hp, Wp, TK), lambda n, h, k: (n, 0, 0, k)),
                # off-center tap weights, K-tiled
                pl.BlockSpec((8 * n_rates, Cout, TK), lambda n, h, k: (0, 0, k)),
                # fused center-tap weights, K-tiled
                pl.BlockSpec((C_conv, TK), lambda n, h, k: (0, k)),
                # BN biases (grid-invariant)
                pl.BlockSpec((C_conv, 1), lambda n, h, k: (0, 0)),
                # image-level branch value (per image)
                pl.BlockSpec((1, Cout, 1), lambda n, h, k: (n, 0, 0)),
            ],
            out_specs=pl.BlockSpec((1, C_all, M_tile), lambda n, h, k: (n, 0, h)),
            scratch_shapes=[pltpu.VMEM((C_conv, M_tile), jnp.float32)],
        ),
        compiler_params=pltpu.CompilerParams(
            dimension_semantics=("parallel", "parallel", "arbitrary"),
            vmem_limit_bytes=_vmem_limit_bytes(),
        ),
    )(xp, w_off, w_ctr, bias, pooled)

    # free reshape only (already NCHW): (N, C_all, H*W) -> (N, C_all, H, W)
    return out.reshape(N, C_all, H, W)


# ----------------------------------------------------------------------------
# Parameters (deterministic per-branch BatchNorm like the PyTorch module)
# ----------------------------------------------------------------------------
def make_params(key, in_channels, out_channels, atrous_rates):
    Cout = out_channels
    n_branches = len(atrous_rates) + 2
    ks = jax.random.split(key, n_branches)
    bn = []
    for i in range(n_branches):
        idx = jnp.arange(Cout, dtype=jnp.float32)
        gamma = 0.9 + 0.01 * (i + 1) + 0.02 * idx / Cout
        beta = 0.01 * (i + 1) + 0.02 * idx / Cout
        mean = 0.03 * (i - 2) + 0.01 * idx / Cout
        var = 1.0 + 0.1 * i + 0.05 * idx / Cout
        bn.append((gamma, beta, mean, var))
    params = {"rates": tuple(atrous_rates), "bn": bn, "branches": []}
    for i, _ in enumerate(atrous_rates):
        params["branches"].append(
            0.1 * jax.random.normal(ks[i], (Cout, in_channels, 3, 3), jnp.float32))
    params["w1x1"] = 0.1 * jax.random.normal(
        ks[len(atrous_rates)], (Cout, in_channels, 1, 1), jnp.float32)
    params["w_avg"] = 0.1 * jax.random.normal(
        ks[len(atrous_rates) + 1], (Cout, in_channels, 1, 1), jnp.float32)
    return params


# ----------------------------------------------------------------------------
# Pure-JAX reference (lax conv, f32) for correctness checking
# ----------------------------------------------------------------------------
def aspp_reference(x, params):
    N, Cin, H, W = x.shape
    rates = params["rates"]
    Cout = params["branches"][0].shape[0]
    dn = ("NCHW", "OIHW", "NCHW")
    hp = jax.lax.Precision.HIGHEST

    def bn_relu(y, i):
        g, b, m, v = params["bn"][i]
        s, bb = _fold_bn(g, b, m, v)
        return jnp.maximum(y * s[None, :, None, None] + bb[None, :, None, None], 0.0)

    outs = []
    for i, (rate, w3) in enumerate(zip(rates, params["branches"])):
        y = jax.lax.conv_general_dilated(
            x, w3, (1, 1), [(rate, rate), (rate, rate)],
            rhs_dilation=(rate, rate), dimension_numbers=dn, precision=hp)
        outs.append(bn_relu(y, i))
    y = jax.lax.conv_general_dilated(
        x, params["w1x1"], (1, 1), [(0, 0), (0, 0)], dimension_numbers=dn,
        precision=hp)
    outs.append(bn_relu(y, len(rates)))
    pooled = jnp.mean(x, axis=(2, 3), keepdims=True)
    y = jax.lax.conv_general_dilated(
        pooled, params["w_avg"], (1, 1), [(0, 0), (0, 0)], dimension_numbers=dn,
        precision=hp)
    y = bn_relu(y, len(rates) + 1)
    outs.append(jnp.broadcast_to(y, (N, Cout, H, W)))
    return jnp.concatenate(outs, axis=1)


if __name__ == "__main__":
    key = jax.random.PRNGKey(0)
    k_x, k_p = jax.random.split(key)

    N, Cin, H, W = 2, 4, 16, 16
    Cout = 8
    atrous_rates = (1, 2, 3)

    x = jax.random.normal(k_x, (N, Cin, H, W), jnp.float32)
    params = make_params(k_p, Cin, Cout, atrous_rates)

    out = jax.block_until_ready(aspp_forward(x, params))
    assert out.shape == (N, (len(atrous_rates) + 2) * Cout, H, W), out.shape

    ref = jax.block_until_ready(aspp_reference(x, params))
    # bf16 MXU inputs with f32 accumulation -> bf16-aware tolerance vs f32 ref
    max_err = float(jnp.max(jnp.abs(out - ref)))
    assert jnp.allclose(out, ref, rtol=3e-2, atol=3e-2), max_err

    print("KERNEL_OK")
</pallas_src>

<mosaic_0001>
module attributes {stable_mosaic.version = 11 : i64} {
  func.func @_aspp_fused_kernel(%arg0: i32, %arg1: i32, %arg2: i32, %arg3: memref<1x22x22x4xbf16, #tpu.memory_space<vmem>>, %arg4: memref<24x8x4xbf16, #tpu.memory_space<vmem>>, %arg5: memref<32x4xbf16, #tpu.memory_space<vmem>>, %arg6: memref<32x1xf32, #tpu.memory_space<vmem>>, %arg7: memref<1x8x1xf32, #tpu.memory_space<vmem>>, %arg8: memref<1x40x128xf32, #tpu.memory_space<vmem>>, %arg9: memref<32x128xf32, #tpu.memory_space<vmem>>) attributes {dimension_semantics = [#tpu.dimension_semantics<parallel>, #tpu.dimension_semantics<parallel>, #tpu.dimension_semantics<arbitrary>], iteration_bounds = array<i64: 2, 2, 1>, scalar_prefetch = 0 : i64, scratch_operands = 1 : i64, tpu.core_type = #tpu.core_type<tc>, window_params = [{transform_indices = @transform_0, window_bounds = array<i64: 1, 22, 22, 4>}, {transform_indices = @transform_1, window_bounds = array<i64: 24, 8, 4>}, {transform_indices = @transform_2, window_bounds = array<i64: 32, 4>}, {pipeline_mode = #tpu.pipeline_mode<synchronous>, transform_indices = @transform_3, window_bounds = array<i64: 32, 1>}, {transform_indices = @transform_4, window_bounds = array<i64: 1, 8, 1>}, {transform_indices = @transform_5, window_bounds = array<i64: 1, 40, 128>}]} {
    %c8_i32 = arith.constant 8 : i32
    %0 = arith.muli %arg1, %c8_i32 : i32
    %1 = tpu.assume_multiple %0, 8 : i32
    %c0 = arith.constant 0 : index
    %c0_0 = arith.constant 0 : index
    %2 = vector.load %arg5[%c0, %c0_0] : memref<32x4xbf16, #tpu.memory_space<vmem>>, vector<32x4xbf16>
    %c3_i32 = arith.constant 3 : i32
    %3 = arith.addi %1, %c3_i32 : i32
    %c0_1 = arith.constant 0 : index
    %4 = arith.index_cast %3 : i32 to index
    %c3 = arith.constant 3 : index
    %c0_2 = arith.constant 0 : index
    %5 = vector.load %arg3[%c0_1, %4, %c3, %c0_2] : memref<1x22x22x4xbf16, #tpu.memory_space<vmem>>, vector<1x8x16x4xbf16>
    %6 = vector.shape_cast %5 : vector<1x8x16x4xbf16> to vector<8x16x4xbf16>
    %7 = vector.shape_cast %6 : vector<8x16x4xbf16> to vector<128x4xbf16>
    %cst = arith.constant dense<0.000000e+00> : vector<32x128xf32>
    %8 = tpu.matmul %2, %7, %cst {dimension_numbers = #tpu.dot_dimension_numbers<[1], [1], [0], [0], [0, 0, 1, 0], [], []>} : vector<32x4xbf16>, vector<128x4xbf16>, vector<32x128xf32> -> vector<32x128xf32>
    %c0_i32 = arith.constant 0 : i32
    %9 = arith.cmpi eq, %arg2, %c0_i32 : i32
    %10 = arith.extui %9 : i1 to i32
    %c0_i32_3 = arith.constant 0 : i32
    %11 = arith.cmpi ne, %10, %c0_i32_3 : i32
    scf.if %11 {
      %c0_185 = arith.constant 0 : index
      %c0_186 = arith.constant 0 : index
      %240 = vector.load %arg9[%c0_185, %c0_186] : memref<32x128xf32, #tpu.memory_space<vmem>>, vector<32x128xf32>
      tpu.vector_store %arg9[%c0_185, %c0_186], %8 {strides = array<i32>} : memref<32x128xf32, #tpu.memory_space<vmem>>, vector<32x128xf32>,
    } else {
    }
    %c0_i32_4 = arith.constant 0 : i32
    %12 = arith.cmpi ne, %arg2, %c0_i32_4 : i32
    %13 = arith.extui %12 : i1 to i32
    %c0_i32_5 = arith.constant 0 : i32
    %14 = arith.cmpi ne, %13, %c0_i32_5 : i32
    scf.if %14 {
      %c0_185 = arith.constant 0 : index
      %c0_186 = arith.constant 0 : index
      %240 = vector.load %arg9[%c0_185, %c0_186] : memref<32x128xf32, #tpu.memory_space<vmem>>, vector<32x128xf32>
      %241 = arith.addf %240, %8 : vector<32x128xf32>
      %c0_187 = arith.constant 0 : index
      %c0_188 = arith.constant 0 : index
      %242 = vector.load %arg9[%c0_187, %c0_188] : memref<32x128xf32, #tpu.memory_space<vmem>>, vector<32x128xf32>
      tpu.vector_store %arg9[%c0_187, %c0_188], %241 {strides = array<i32>} : memref<32x128xf32, #tpu.memory_space<vmem>>, vector<32x128xf32>,
    } else {
    }
    %c0_6 = arith.constant 0 : index
    %c0_7 = arith.constant 0 : index
    %c0_8 = arith.constant 0 : index
    %15 = vector.load %arg4[%c0_6, %c0_7, %c0_8] : memref<24x8x4xbf16, #tpu.memory_space<vmem>>, vector<1x8x4xbf16>
    %16 = vector.shape_cast %15 : vector<1x8x4xbf16> to vector<8x4xbf16>
    %c2_i32 = arith.constant 2 : i32
    %17 = arith.addi %1, %c2_i32 : i32
    %c0_9 = arith.constant 0 : index
    %18 = arith.index_cast %17 : i32 to index
    %c2 = arith.constant 2 : index
    %c0_10 = arith.constant 0 : index
    %19 = vector.load %arg3[%c0_9, %18, %c2, %c0_10] : memref<1x22x22x4xbf16, #tpu.memory_space<vmem>>, vector<1x8x16x4xbf16>
    %20 = vector.shape_cast %19 : vector<1x8x16x4xbf16> to vector<8x16x4xbf16>
    %21 = vector.shape_cast %20 : vector<8x16x4xbf16> to vector<128x4xbf16>
    %cst_11 = arith.constant dense<0.000000e+00> : vector<8x128xf32>
    %22 = tpu.matmul %16, %21, %cst_11 {dimension_numbers = #tpu.dot_dimension_numbers<[1], [1], [0], [0], [0, 0, 1, 0], [], []>} : vector<8x4xbf16>, vector<128x4xbf16>, vector<8x128xf32> -> vector<8x128xf32>
    %c1 = arith.constant 1 : index
    %c0_12 = arith.constant 0 : index
    %c0_13 = arith.constant 0 : index
    %23 = vector.load %arg4[%c1, %c0_12, %c0_13] : memref<24x8x4xbf16, #tpu.memory_space<vmem>>, vector<1x8x4xbf16>
    %24 = vector.shape_cast %23 : vector<1x8x4xbf16> to vector<8x4xbf16>
    %c2_i32_14 = arith.constant 2 : i32
    %25 = arith.addi %1, %c2_i32_14 : i32
    %c0_15 = arith.constant 0 : index
    %26 = arith.index_cast %25 : i32 to index
    %c3_16 = arith.constant 3 : index
    %c0_17 = arith.constant 0 : index
    %27 = vector.load %arg3[%c0_15, %26, %c3_16, %c0_17] : memref<1x22x22x4xbf16, #tpu.memory_space<vmem>>, vector<1x8x16x4xbf16>
    %28 = vector.shape_cast %27 : vector<1x8x16x4xbf16> to vector<8x16x4xbf16>
    %29 = vector.shape_cast %28 : vector<8x16x4xbf16> to vector<128x4xbf16>
    %cst_18 = arith.constant dense<0.000000e+00> : vector<8x128xf32>
    %30 = tpu.matmul %24, %29, %cst_18 {dimension_numbers = #tpu.dot_dimension_numbers<[1], [1], [0], [0], [0, 0, 1, 0], [], []>} : vector<8x4xbf16>, vector<128x4xbf16>, vector<8x128xf32> -> vector<8x128xf32>
    %31 = arith.addf %22, %30 : vector<8x128xf32>
    %c2_19 = arith.constant 2 : index
    %c0_20 = arith.constant 0 : index
    %c0_21 = arith.constant 0 : index
    %32 = vector.load %arg4[%c2_19, %c0_20, %c0_21] : memref<24x8x4xbf16, #tpu.memory_space<vmem>>, vector<1x8x4xbf16>
    %33 = vector.shape_cast %32 : vector<1x8x4xbf16> to vector<8x4xbf16>
    %c2_i32_22 = arith.constant 2 : i32
    %34 = arith.addi %1, %c2_i32_22 : i32
    %c0_23 = arith.constant 0 : index
    %35 = arith.index_cast %34 : i32 to index
    %c4 = arith.constant 4 : index
    %c0_24 = arith.constant 0 : index
    %36 = vector.load %arg3[%c0_23, %35, %c4, %c0_24] : memref<1x22x22x4xbf16, #tpu.memory_space<vmem>>, vector<1x8x16x4xbf16>
    %37 = vector.shape_cast %36 : vector<1x8x16x4xbf16> to vector<8x16x4xbf16>
    %38 = vector.shape_cast %37 : vector<8x16x4xbf16> to vector<128x4xbf16>
    %cst_25 = arith.constant dense<0.000000e+00> : vector<8x128xf32>
    %39 = tpu.matmul %33, %38, %cst_25 {dimension_numbers = #tpu.dot_dimension_numbers<[1], [1], [0], [0], [0, 0, 1, 0], [], []>} : vector<8x4xbf16>, vector<128x4xbf16>, vector<8x128xf32> -> vector<8x128xf32>
    %40 = arith.addf %31, %39 : vector<8x128xf32>
    %c3_26 = arith.constant 3 : index
    %c0_27 = arith.constant 0 : index
    %c0_28 = arith.constant 0 : index
    %41 = vector.load %arg4[%c3_26, %c0_27, %c0_28] : memref<24x8x4xbf16, #tpu.memory_space<vmem>>, vector<1x8x4xbf16>
    %42 = vector.shape_cast %41 : vector<1x8x4xbf16> to vector<8x4xbf16>
    %c3_i32_29 = arith.constant 3 : i32
    %43 = arith.addi %1, %c3_i32_29 : i32
    %c0_30 = arith.constant 0 : index
    %44 = arith.index_cast %43 : i32 to index
    %c2_31 = arith.constant 2 : index
    %c0_32 = arith.constant 0 : index
    %45 = vector.load %arg3[%c0_30, %44, %c2_31, %c0_32] : memref<1x22x22x4xbf16, #tpu.memory_space<vmem>>, vector<1x8x16x4xbf16>
    %46 = vector.shape_cast %45 : vector<1x8x16x4xbf16> to vector<8x16x4xbf16>
    %47 = vector.shape_cast %46 : vector<8x16x4xbf16> to vector<128x4xbf16>
    %cst_33 = arith.constant dense<0.000000e+00> : vector<8x128xf32>
    %48 = tpu.matmul %42, %47, %cst_33 {dimension_numbers = #tpu.dot_dimension_numbers<[1], [1], [0], [0], [0, 0, 1, 0], [], []>} : vector<8x4xbf16>, vector<128x4xbf16>, vector<8x128xf32> -> vector<8x128xf32>
    %49 = arith.addf %40, %48 : vector<8x128xf32>
    %c4_34 = arith.constant 4 : index
    %c0_35 = arith.constant 0 : index
    %c0_36 = arith.constant 0 : index
    %50 = vector.load %arg4[%c4_34, %c0_35, %c0_36] : memref<24x8x4xbf16, #tpu.memory_space<vmem>>, vector<1x8x4xbf16>
    %51 = vector.shape_cast %50 : vector<1x8x4xbf16> to vector<8x4xbf16>
    %c3_i32_37 = arith.constant 3 : i32
    %52 = arith.addi %1, %c3_i32_37 : i32
    %c0_38 = arith.constant 0 : index
    %53 = arith.index_cast %52 : i32 to index
    %c4_39 = arith.constant 4 : index
    %c0_40 = arith.constant 0 : index
    %54 = vector.load %arg3[%c0_38, %53, %c4_39, %c0_40] : memref<1x22x22x4xbf16, #tpu.memory_space<vmem>>, vector<1x8x16x4xbf16>
    %55 = vector.shape_cast %54 : vector<1x8x16x4xbf16> to vector<8x16x4xbf16>
    %56 = vector.shape_cast %55 : vector<8x16x4xbf16> to vector<128x4xbf16>
    %cst_41 = arith.constant dense<0.000000e+00> : vector<8x128xf32>
    %57 = tpu.matmul %51, %56, %cst_41 {dimension_numbers = #tpu.dot_dimension_numbers<[1], [1], [0], [0], [0, 0, 1, 0], [], []>} : vector<8x4xbf16>, vector<128x4xbf16>, vector<8x128xf32> -> vector<8x128xf32>
    %58 = arith.addf %49, %57 : vector<8x128xf32>
    %c5 = arith.constant 5 : index
    %c0_42 = arith.constant 0 : index
    %c0_43 = arith.constant 0 : index
    %59 = vector.load %arg4[%c5, %c0_42, %c0_43] : memref<24x8x4xbf16, #tpu.memory_space<vmem>>, vector<1x8x4xbf16>
    %60 = vector.shape_cast %59 : vector<1x8x4xbf16> to vector<8x4xbf16>
    %c4_i32 = arith.constant 4 : i32
    %61 = arith.addi %1, %c4_i32 : i32
    %c0_44 = arith.constant 0 : index
    %62 = arith.index_cast %61 : i32 to index
    %c2_45 = arith.constant 2 : index
    %c0_46 = arith.constant 0 : index
    %63 = vector.load %arg3[%c0_44, %62, %c2_45, %c0_46] : memref<1x22x22x4xbf16, #tpu.memory_space<vmem>>, vector<1x8x16x4xbf16>
    %64 = vector.shape_cast %63 : vector<1x8x16x4xbf16> to vector<8x16x4xbf16>
    %65 = vector.shape_cast %64 : vector<8x16x4xbf16> to vector<128x4xbf16>
    %cst_47 = arith.constant dense<0.000000e+00> : vector<8x128xf32>
    %66 = tpu.matmul %60, %65, %cst_47 {dimension_numbers = #tpu.dot_dimension_numbers<[1], [1], [0], [0], [0, 0, 1, 0], [], []>} : vector<8x4xbf16>, vector<128x4xbf16>, vector<8x128xf32> -> vector<8x128xf32>
    %67 = arith.addf %58, %66 : vector<8x128xf32>
    %c6 = arith.constant 6 : index
    %c0_48 = arith.constant 0 : index
    %c0_49 = arith.constant 0 : index
    %68 = vector.load %arg4[%c6, %c0_48, %c0_49] : memref<24x8x4xbf16, #tpu.memory_space<vmem>>, vector<1x8x4xbf16>
    %69 = vector.shape_cast %68 : vector<1x8x4xbf16> to vector<8x4xbf16>
    %c4_i32_50 = arith.constant 4 : i32
    %70 = arith.addi %1, %c4_i32_50 : i32
    %c0_51 = arith.constant 0 : index
    %71 = arith.index_cast %70 : i32 to index
    %c3_52 = arith.constant 3 : index
    %c0_53 = arith.constant 0 : index
    %72 = vector.load %arg3[%c0_51, %71, %c3_52, %c0_53] : memref<1x22x22x4xbf16, #tpu.memory_space<vmem>>, vector<1x8x16x4xbf16>
    %73 = vector.shape_cast %72 : vector<1x8x16x4xbf16> to vector<8x16x4xbf16>
    %74 = vector.shape_cast %73 : vector<8x16x4xbf16> to vector<128x4xbf16>
    %cst_54 = arith.constant dense<0.000000e+00> : vector<8x128xf32>
    %75 = tpu.matmul %69, %74, %cst_54 {dimension_numbers = #tpu.dot_dimension_numbers<[1], [1], [0], [0], [0, 0, 1, 0], [], []>} : vector<8x4xbf16>, vector<128x4xbf16>, vector<8x128xf32> -> vector<8x128xf32>
    %76 = arith.addf %67, %75 : vector<8x128xf32>
    %c7 = arith.constant 7 : index
    %c0_55 = arith.constant 0 : index
    %c0_56 = arith.constant 0 : index
    %77 = vector.load %arg4[%c7, %c0_55, %c0_56] : memref<24x8x4xbf16, #tpu.memory_space<vmem>>, vector<1x8x4xbf16>
    %78 = vector.shape_cast %77 : vector<1x8x4xbf16> to vector<8x4xbf16>
    %c4_i32_57 = arith.constant 4 : i32
    %79 = arith.addi %1, %c4_i32_57 : i32
    %c0_58 = arith.constant 0 : index
    %80 = arith.index_cast %79 : i32 to index
    %c4_59 = arith.constant 4 : index
    %c0_60 = arith.constant 0 : index
    %81 = vector.load %arg3[%c0_58, %80, %c4_59, %c0_60] : memref<1x22x22x4xbf16, #tpu.memory_space<vmem>>, vector<1x8x16x4xbf16>
    %82 = vector.shape_cast %81 : vector<1x8x16x4xbf16> to vector<8x16x4xbf16>
    %83 = vector.shape_cast %82 : vector<8x16x4xbf16> to vector<128x4xbf16>
    %cst_61 = arith.constant dense<0.000000e+00> : vector<8x128xf32>
    %84 = tpu.matmul %78, %83, %cst_61 {dimension_numbers = #tpu.dot_dimension_numbers<[1], [1], [0], [0], [0, 0, 1, 0], [], []>} : vector<8x4xbf16>, vector<128x4xbf16>, vector<8x128xf32> -> vector<8x128xf32>
    %85 = arith.addf %76, %84 : vector<8x128xf32>
    %c0_62 = arith.constant 0 : index
    %c0_63 = arith.constant 0 : index
    %86 = vector.load %arg9[%c0_62, %c0_63] : memref<32x128xf32, #tpu.memory_space<vmem>>, vector<8x128xf32>
    %87 = arith.addf %86, %85 : vector<8x128xf32>
    %c0_64 = arith.constant 0 : index
    %c0_65 = arith.constant 0 : index
    %88 = vector.load %arg9[%c0_64, %c0_65] : memref<32x128xf32, #tpu.memory_space<vmem>>, vector<8x128xf32>
    tpu.vector_store %arg9[%c0_64, %c0_65], %87 {strides = array<i32>} : memref<32x128xf32, #tpu.memory_space<vmem>>, vector<8x128xf32>,
    %c8 = arith.constant 8 : index
    %c0_66 = arith.constant 0 : index
    %c0_67 = arith.constant 0 : index
    %89 = vector.load %arg4[%c8, %c0_66, %c0_67] : memref<24x8x4xbf16, #tpu.memory_space<vmem>>, vector<1x8x4xbf16>
    %90 = vector.shape_cast %89 : vector<1x8x4xbf16> to vector<8x4xbf16>
    %c1_i32 = arith.constant 1 : i32
    %91 = arith.addi %1, %c1_i32 : i32
    %c0_68 = arith.constant 0 : index
    %92 = arith.index_cast %91 : i32 to index
    %c1_69 = arith.constant 1 : index
    %c0_70 = arith.constant 0 : index
    %93 = vector.load %arg3[%c0_68, %92, %c1_69, %c0_70] : memref<1x22x22x4xbf16, #tpu.memory_space<vmem>>, vector<1x8x16x4xbf16>
    %94 = vector.shape_cast %93 : vector<1x8x16x4xbf16> to vector<8x16x4xbf16>
    %95 = vector.shape_cast %94 : vector<8x16x4xbf16> to vector<128x4xbf16>
    %cst_71 = arith.constant dense<0.000000e+00> : vector<8x128xf32>
    %96 = tpu.matmul %90, %95, %cst_71 {dimension_numbers = #tpu.dot_dimension_numbers<[1], [1], [0], [0], [0, 0, 1, 0], [], []>} : vector<8x4xbf16>, vector<128x4xbf16>, vector<8x128xf32> -> vector<8x128xf32>
    %c9 = arith.constant 9 : index
    %c0_72 = arith.constant 0 : index
    %c0_73 = arith.constant 0 : index
    %97 = vector.load %arg4[%c9, %c0_72, %c0_73] : memref<24x8x4xbf16, #tpu.memory_space<vmem>>, vector<1x8x4xbf16>
    %98 = vector.shape_cast %97 : vector<1x8x4xbf16> to vector<8x4xbf16>
    %c1_i32_74 = arith.constant 1 : i32
    %99 = arith.addi %1, %c1_i32_74 : i32
    %c0_75 = arith.constant 0 : index
    %100 = arith.index_cast %99 : i32 to index
    %c3_76 = arith.constant 3 : index
    %c0_77 = arith.constant 0 : index
    %101 = vector.load %arg3[%c0_75, %100, %c3_76, %c0_77] : memref<1x22x22x4xbf16, #tpu.memory_space<vmem>>, vector<1x8x16x4xbf16>
    %102 = vector.shape_cast %101 : vector<1x8x16x4xbf16> to vector<8x16x4xbf16>
    %103 = vector.shape_cast %102 : vector<8x16x4xbf16> to vector<128x4xbf16>
    %cst_78 = arith.constant dense<0.000000e+00> : vector<8x128xf32>
    %104 = tpu.matmul %98, %103, %cst_78 {dimension_numbers = #tpu.dot_dimension_numbers<[1], [1], [0], [0], [0, 0, 1, 0], [], []>} : vector<8x4xbf16>, vector<128x4xbf16>, vector<8x128xf32> -> vector<8x128xf32>
    %105 = arith.addf %96, %104 : vector<8x128xf32>
    %c10 = arith.constant 10 : index
    %c0_79 = arith.constant 0 : index
    %c0_80 = arith.constant 0 : index
    %106 = vector.load %arg4[%c10, %c0_79, %c0_80] : memref<24x8x4xbf16, #tpu.memory_space<vmem>>, vector<1x8x4xbf16>
    %107 = vector.shape_cast %106 : vector<1x8x4xbf16> to vector<8x4xbf16>
    %c1_i32_81 = arith.constant 1 : i32
    %108 = arith.addi %1, %c1_i32_81 : i32
    %c0_82 = arith.constant 0 : index
    %109 = arith.index_cast %108 : i32 to index
    %c5_83 = arith.constant 5 : index
    %c0_84 = arith.constant 0 : index
    %110 = vector.load %arg3[%c0_82, %109, %c5_83, %c0_84] : memref<1x22x22x4xbf16, #tpu.memory_space<vmem>>, vector<1x8x16x4xbf16>
    %111 = vector.shape_cast %110 : vector<1x8x16x4xbf16> to vector<8x16x4xbf16>
    %112 = vector.shape_cast %111 : vector<8x16x4xbf16> to vector<128x4xbf16>
    %cst_85 = arith.constant dense<0.000000e+00> : vector<8x128xf32>
    %113 = tpu.matmul %107, %112, %cst_85 {dimension_numbers = #tpu.dot_dimension_numbers<[1], [1], [0], [0], [0, 0, 1, 0], [], []>} : vector<8x4xbf16>, vector<128x4xbf16>, vector<8x128xf32> -> vector<8x128xf32>
    %114 = arith.addf %105, %113 : vector<8x128xf32>
    %c11 = arith.constant 11 : index
    %c0_86 = arith.constant 0 : index
    %c0_87 = arith.constant 0 : index
    %115 = vector.load %arg4[%c11, %c0_86, %c0_87] : memref<24x8x4xbf16, #tpu.memory_space<vmem>>, vector<1x8x4xbf16>
    %116 = vector.shape_cast %115 : vector<1x8x4xbf16> to vector<8x4xbf16>
    %c3_i32_88 = arith.constant 3 : i32
    %117 = arith.addi %1, %c3_i32_88 : i32
    %c0_89 = arith.constant 0 : index
    %118 = arith.index_cast %117 : i32 to index
    %c1_90 = arith.constant 1 : index
    %c0_91 = arith.constant 0 : index
    %119 = vector.load %arg3[%c0_89, %118, %c1_90, %c0_91] : memref<1x22x22x4xbf16, #tpu.memory_space<vmem>>, vector<1x8x16x4xbf16>
    %120 = vector.shape_cast %119 : vector<1x8x16x4xbf16> to vector<8x16x4xbf16>
    %121 = vector.shape_cast %120 : vector<8x16x4xbf16> to vector<128x4xbf16>
    %cst_92 = arith.constant dense<0.000000e+00> : vector<8x128xf32>
    %122 = tpu.matmul %116, %121, %cst_92 {dimension_numbers = #tpu.dot_dimension_numbers<[1], [1], [0], [0], [0, 0, 1, 0], [], []>} : vector<8x4xbf16>, vector<128x4xbf16>, vector<8x128xf32> -> vector<8x128xf32>
    %123 = arith.addf %114, %122 : vector<8x128xf32>
    %c12 = arith.constant 12 : index
    %c0_93 = arith.constant 0 : index
    %c0_94 = arith.constant 0 : index
    %124 = vector.load %arg4[%c12, %c0_93, %c0_94] : memref<24x8x4xbf16, #tpu.memory_space<vmem>>, vector<1x8x4xbf16>
    %125 = vector.shape_cast %124 : vector<1x8x4xbf16> to vector<8x4xbf16>
    %c3_i32_95 = arith.constant 3 : i32
    %126 = arith.addi %1, %c3_i32_95 : i32
    %c0_96 = arith.constant 0 : index
    %127 = arith.index_cast %126 : i32 to index
    %c5_97 = arith.constant 5 : index
    %c0_98 = arith.constant 0 : index
    %128 = vector.load %arg3[%c0_96, %127, %c5_97, %c0_98] : memref<1x22x22x4xbf16, #tpu.memory_space<vmem>>, vector<1x8x16x4xbf16>
    %129 = vector.shape_cast %128 : vector<1x8x16x4xbf16> to vector<8x16x4xbf16>
    %130 = vector.shape_cast %129 : vector<8x16x4xbf16> to vector<128x4xbf16>
    %cst_99 = arith.constant dense<0.000000e+00> : vector<8x128xf32>
    %131 = tpu.matmul %125, %130, %cst_99 {dimension_numbers = #tpu.dot_dimension_numbers<[1], [1], [0], [0], [0, 0, 1, 0], [], []>} : vector<8x4xbf16>, vector<128x4xbf16>, vector<8x128xf32> -> vector<8x128xf32>
    %132 = arith.addf %123, %131 : vector<8x128xf32>
    %c13 = arith.constant 13 : index
    %c0_100 = arith.constant 0 : index
    %c0_101 = arith.constant 0 : index
    %133 = vector.load %arg4[%c13, %c0_100, %c0_101] : memref<24x8x4xbf16, #tpu.memory_space<vmem>>, vector<1x8x4xbf16>
    %134 = vector.shape_cast %133 : vector<1x8x4xbf16> to vector<8x4xbf16>
    %c5_i32 = arith.constant 5 : i32
    %135 = arith.addi %1, %c5_i32 : i32
    %c0_102 = arith.constant 0 : index
    %136 = arith.index_cast %135 : i32 to index
    %c1_103 = arith.constant 1 : index
    %c0_104 = arith.constant 0 : index
    %137 = vector.load %arg3[%c0_102, %136, %c1_103, %c0_104] : memref<1x22x22x4xbf16, #tpu.memory_space<vmem>>, vector<1x8x16x4xbf16>
    %138 = vector.shape_cast %137 : vector<1x8x16x4xbf16> to vector<8x16x4xbf16>
    %139 = vector.shape_cast %138 : vector<8x16x4xbf16> to vector<128x4xbf16>
    %cst_105 = arith.constant dense<0.000000e+00> : vector<8x128xf32>
    %140 = tpu.matmul %134, %139, %cst_105 {dimension_numbers = #tpu.dot_dimension_numbers<[1], [1], [0], [0], [0, 0, 1, 0], [], []>} : vector<8x4xbf16>, vector<128x4xbf16>, vector<8x128xf32> -> vector<8x128xf32>
    %141 = arith.addf %132, %140 : vector<8x128xf32>
    %c14 = arith.constant 14 : index
    %c0_106 = arith.constant 0 : index
    %c0_107 = arith.constant 0 : index
    %142 = vector.load %arg4[%c14, %c0_106, %c0_107] : memref<24x8x4xbf16, #tpu.memory_space<vmem>>, vector<1x8x4xbf16>
    %143 = vector.shape_cast %142 : vector<1x8x4xbf16> to vector<8x4xbf16>
    %c5_i32_108 = arith.constant 5 : i32
    %144 = arith.addi %1, %c5_i32_108 : i32
    %c0_109 = arith.constant 0 : index
    %145 = arith.index_cast %144 : i32 to index
    %c3_110 = arith.constant 3 : index
    %c0_111 = arith.constant 0 : index
    %146 = vector.load %arg3[%c0_109, %145, %c3_110, %c0_111] : memref<1x22x22x4xbf16, #tpu.memory_space<vmem>>, vector<1x8x16x4xbf16>
    %147 = vector.shape_cast %146 : vector<1x8x16x4xbf16> to vector<8x16x4xbf16>
    %148 = vector.shape_cast %147 : vector<8x16x4xbf16> to vector<128x4xbf16>
    %cst_112 = arith.constant dense<0.000000e+00> : vector<8x128xf32>
    %149 = tpu.matmul %143, %148, %cst_112 {dimension_numbers = #tpu.dot_dimension_numbers<[1], [1], [0], [0], [0, 0, 1, 0], [], []>} : vector<8x4xbf16>, vector<128x4xbf16>, vector<8x128xf32> -> vector<8x128xf32>
    %150 = arith.addf %141, %149 : vector<8x128xf32>
    %c15 = arith.constant 15 : index
    %c0_113 = arith.constant 0 : index
    %c0_114 = arith.constant 0 : index
    %151 = vector.load %arg4[%c15, %c0_113, %c0_114] : memref<24x8x4xbf16, #tpu.memory_space<vmem>>, vector<1x8x4xbf16>
    %152 = vector.shape_cast %151 : vector<1x8x4xbf16> to vector<8x4xbf16>
    %c5_i32_115 = arith.constant 5 : i32
    %153 = arith.addi %1, %c5_i32_115 : i32
    %c0_116 = arith.constant 0 : index
    %154 = arith.index_cast %153 : i32 to index
    %c5_117 = arith.constant 5 : index
    %c0_118 = arith.constant 0 : index
    %155 = vector.load %arg3[%c0_116, %154, %c5_117, %c0_118] : memref<1x22x22x4xbf16, #tpu.memory_space<vmem>>, vector<1x8x16x4xbf16>
    %156 = vector.shape_cast %155 : vector<1x8x16x4xbf16> to vector<8x16x4xbf16>
    %157 = vector.shape_cast %156 : vector<8x16x4xbf16> to vector<128x4xbf16>
    %cst_119 = arith.constant dense<0.000000e+00> : vector<8x128xf32>
    %158 = tpu.matmul %152, %157, %cst_119 {dimension_numbers = #tpu.dot_dimension_numbers<[1], [1], [0], [0], [0, 0, 1, 0], [], []>} : vector<8x4xbf16>, vector<128x4xbf16>, vector<8x128xf32> -> vector<8x128xf32>
    %159 = arith.addf %150, %158 : vector<8x128xf32>
    %c8_120 = arith.constant 8 : index
    %c0_121 = arith.constant 0 : index
    %160 = vector.load %arg9[%c8_120, %c0_121] : memref<32x128xf32, #tpu.memory_space<vmem>>, vector<8x128xf32>
    %161 = arith.addf %160, %159 : vector<8x128xf32>
    %c8_122 = arith.constant 8 : index
    %c0_123 = arith.constant 0 : index
    %162 = vector.load %arg9[%c8_122, %c0_123] : memref<32x128xf32, #tpu.memory_space<vmem>>, vector<8x128xf32>
    tpu.vector_store %arg9[%c8_122, %c0_123], %161 {strides = array<i32>} : memref<32x128xf32, #tpu.memory_space<vmem>>, vector<8x128xf32>,
    %c16 = arith.constant 16 : index
    %c0_124 = arith.constant 0 : index
    %c0_125 = arith.constant 0 : index
    %163 = vector.load %arg4[%c16, %c0_124, %c0_125] : memref<24x8x4xbf16, #tpu.memory_space<vmem>>, vector<1x8x4xbf16>
    %164 = vector.shape_cast %163 : vector<1x8x4xbf16> to vector<8x4xbf16>
    %c0_i32_126 = arith.constant 0 : i32
    %165 = arith.addi %1, %c0_i32_126 : i32
    %c0_127 = arith.constant 0 : index
    %166 = arith.index_cast %165 : i32 to index
    %c0_128 = arith.constant 0 : index
    %c0_129 = arith.constant 0 : index
    %167 = vector.load %arg3[%c0_127, %166, %c0_128, %c0_129] : memref<1x22x22x4xbf16, #tpu.memory_space<vmem>>, vector<1x8x16x4xbf16>
    %168 = vector.shape_cast %167 : vector<1x8x16x4xbf16> to vector<8x16x4xbf16>
    %169 = vector.shape_cast %168 : vector<8x16x4xbf16> to vector<128x4xbf16>
    %cst_130 = arith.constant dense<0.000000e+00> : vector<8x128xf32>
    %170 = tpu.matmul %164, %169, %cst_130 {dimension_numbers = #tpu.dot_dimension_numbers<[1], [1], [0], [0], [0, 0, 1, 0], [], []>} : vector<8x4xbf16>, vector<128x4xbf16>, vector<8x128xf32> -> vector<8x128xf32>
    %c17 = arith.constant 17 : index
    %c0_131 = arith.constant 0 : index
    %c0_132 = arith.constant 0 : index
    %171 = vector.load %arg4[%c17, %c0_131, %c0_132] : memref<24x8x4xbf16, #tpu.memory_space<vmem>>, vector<1x8x4xbf16>
    %172 = vector.shape_cast %171 : vector<1x8x4xbf16> to vector<8x4xbf16>
    %c0_i32_133 = arith.constant 0 : i32
    %173 = arith.addi %1, %c0_i32_133 : i32
    %c0_134 = arith.constant 0 : index
    %174 = arith.index_cast %173 : i32 to index
    %c3_135 = arith.constant 3 : index
    %c0_136 = arith.constant 0 : index
    %175 = vector.load %arg3[%c0_134, %174, %c3_135, %c0_136] : memref<1x22x22x4xbf16, #tpu.memory_space<vmem>>, vector<1x8x16x4xbf16>
    %176 = vector.shape_cast %175 : vector<1x8x16x4xbf16> to vector<8x16x4xbf16>
    %177 = vector.shape_cast %176 : vector<8x16x4xbf16> to vector<128x4xbf16>
    %cst_137 = arith.constant dense<0.000000e+00> : vector<8x128xf32>
    %178 = tpu.matmul %172, %177, %cst_137 {dimension_numbers = #tpu.dot_dimension_numbers<[1], [1], [0], [0], [0, 0, 1, 0], [], []>} : vector<8x4xbf16>, vector<128x4xbf16>, vector<8x128xf32> -> vector<8x128xf32>
    %179 = arith.addf %170, %178 : vector<8x128xf32>
    %c18 = arith.constant 18 : index
    %c0_138 = arith.constant 0 : index
    %c0_139 = arith.constant 0 : index
    %180 = vector.load %arg4[%c18, %c0_138, %c0_139] : memref<24x8x4xbf16, #tpu.memory_space<vmem>>, vector<1x8x4xbf16>
    %181 = vector.shape_cast %180 : vector<1x8x4xbf16> to vector<8x4xbf16>
    %c0_i32_140 = arith.constant 0 : i32
    %182 = arith.addi %1, %c0_i32_140 : i32
    %c0_141 = arith.constant 0 : index
    %183 = arith.index_cast %182 : i32 to index
    %c6_142 = arith.constant 6 : index
    %c0_143 = arith.constant 0 : index
    %184 = vector.load %arg3[%c0_141, %183, %c6_142, %c0_143] : memref<1x22x22x4xbf16, #tpu.memory_space<vmem>>, vector<1x8x16x4xbf16>
    %185 = vector.shape_cast %184 : vector<1x8x16x4xbf16> to vector<8x16x4xbf16>
    %186 = vector.shape_cast %185 : vector<8x16x4xbf16> to vector<128x4xbf16>
    %cst_144 = arith.constant dense<0.000000e+00> : vector<8x128xf32>
    %187 = tpu.matmul %181, %186, %cst_144 {dimension_numbers = #tpu.dot_dimension_numbers<[1], [1], [0], [0], [0, 0, 1, 0], [], []>} : vector<8x4xbf16>, vector<128x4xbf16>, vector<8x128xf32> -> vector<8x128xf32>
    %188 = arith.addf %179, %187 : vector<8x128xf32>
    %c19 = arith.constant 19 : index
    %c0_145 = arith.constant 0 : index
    %c0_146 = arith.constant 0 : index
    %189 = vector.load %arg4[%c19, %c0_145, %c0_146] : memref<24x8x4xbf16, #tpu.memory_space<vmem>>, vector<1x8x4xbf16>
    %190 = vector.shape_cast %189 : vector<1x8x4xbf16> to vector<8x4xbf16>
    %c3_i32_147 = arith.constant 3 : i32
    %191 = arith.addi %1, %c3_i32_147 : i32
    %c0_148 = arith.constant 0 : index
    %192 = arith.index_cast %191 : i32 to index
    %c0_149 = arith.constant 0 : index
    %c0_150 = arith.constant 0 : index
    %193 = vector.load %arg3[%c0_148, %192, %c0_149, %c0_150] : memref<1x22x22x4xbf16, #tpu.memory_space<vmem>>, vector<1x8x16x4xbf16>
    %194 = vector.shape_cast %193 : vector<1x8x16x4xbf16> to vector<8x16x4xbf16>
    %195 = vector.shape_cast %194 : vector<8x16x4xbf16> to vector<128x4xbf16>
    %cst_151 = arith.constant dense<0.000000e+00> : vector<8x128xf32>
    %196 = tpu.matmul %190, %195, %cst_151 {dimension_numbers = #tpu.dot_dimension_numbers<[1], [1], [0], [0], [0, 0, 1, 0], [], []>} : vector<8x4xbf16>, vector<128x4xbf16>, vector<8x128xf32> -> vector<8x128xf32>
    %197 = arith.addf %188, %196 : vector<8x128xf32>
    %c20 = arith.constant 20 : index
    %c0_152 = arith.constant 0 : index
    %c0_153 = arith.constant 0 : index
    %198 = vector.load %arg4[%c20, %c0_152, %c0_153] : memref<24x8x4xbf16, #tpu.memory_space<vmem>>, vector<1x8x4xbf16>
    %199 = vector.shape_cast %198 : vector<1x8x4xbf16> to vector<8x4xbf16>
    %c3_i32_154 = arith.constant 3 : i32
    %200 = arith.addi %1, %c3_i32_154 : i32
    %c0_155 = arith.constant 0 : index
    %201 = arith.index_cast %200 : i32 to index
    %c6_156 = arith.constant 6 : index
    %c0_157 = arith.constant 0 : index
    %202 = vector.load %arg3[%c0_155, %201, %c6_156, %c0_157] : memref<1x22x22x4xbf16, #tpu.memory_space<vmem>>, vector<1x8x16x4xbf16>
    %203 = vector.shape_cast %202 : vector<1x8x16x4xbf16> to vector<8x16x4xbf16>
    %204 = vector.shape_cast %203 : vector<8x16x4xbf16> to vector<128x4xbf16>
    %cst_158 = arith.constant dense<0.000000e+00> : vector<8x128xf32>
    %205 = tpu.matmul %199, %204, %cst_158 {dimension_numbers = #tpu.dot_dimension_numbers<[1], [1], [0], [0], [0, 0, 1, 0], [], []>} : vector<8x4xbf16>, vector<128x4xbf16>, vector<8x128xf32> -> vector<8x128xf32>
    %206 = arith.addf %197, %205 : vector<8x128xf32>
    %c21 = arith.constant 21 : index
    %c0_159 = arith.constant 0 : index
    %c0_160 = arith.constant 0 : index
    %207 = vector.load %arg4[%c21, %c0_159, %c0_160] : memref<24x8x4xbf16, #tpu.memory_space<vmem>>, vector<1x8x4xbf16>
    %208 = vector.shape_cast %207 : vector<1x8x4xbf16> to vector<8x4xbf16>
    %c6_i32 = arith.constant 6 : i32
    %209 = arith.addi %1, %c6_i32 : i32
    %c0_161 = arith.constant 0 : index
    %210 = arith.index_cast %209 : i32 to index
    %c0_162 = arith.constant 0 : index
    %c0_163 = arith.constant 0 : index
    %211 = vector.load %arg3[%c0_161, %210, %c0_162, %c0_163] : memref<1x22x22x4xbf16, #tpu.memory_space<vmem>>, vector<1x8x16x4xbf16>
    %212 = vector.shape_cast %211 : vector<1x8x16x4xbf16> to vector<8x16x4xbf16>
    %213 = vector.shape_cast %212 : vector<8x16x4xbf16> to vector<128x4xbf16>
    %cst_164 = arith.constant dense<0.000000e+00> : vector<8x128xf32>
    %214 = tpu.matmul %208, %213, %cst_164 {dimension_numbers = #tpu.dot_dimension_numbers<[1], [1], [0], [0], [0, 0, 1, 0], [], []>} : vector<8x4xbf16>, vector<128x4xbf16>, vector<8x128xf32> -> vector<8x128xf32>
    %215 = arith.addf %206, %214 : vector<8x128xf32>
    %c22 = arith.constant 22 : index
    %c0_165 = arith.constant 0 : index
    %c0_166 = arith.constant 0 : index
    %216 = vector.load %arg4[%c22, %c0_165, %c0_166] : memref<24x8x4xbf16, #tpu.memory_space<vmem>>, vector<1x8x4xbf16>
    %217 = vector.shape_cast %216 : vector<1x8x4xbf16> to vector<8x4xbf16>
    %c6_i32_167 = arith.constant 6 : i32
    %218 = arith.addi %1, %c6_i32_167 : i32
    %c0_168 = arith.constant 0 : index
    %219 = arith.index_cast %218 : i32 to index
    %c3_169 = arith.constant 3 : index
    %c0_170 = arith.constant 0 : index
    %220 = vector.load %arg3[%c0_168, %219, %c3_169, %c0_170] : memref<1x22x22x4xbf16, #tpu.memory_space<vmem>>, vector<1x8x16x4xbf16>
    %221 = vector.shape_cast %220 : vector<1x8x16x4xbf16> to vector<8x16x4xbf16>
    %222 = vector.shape_cast %221 : vector<8x16x4xbf16> to vector<128x4xbf16>
    %cst_171 = arith.constant dense<0.000000e+00> : vector<8x128xf32>
    %223 = tpu.matmul %217, %222, %cst_171 {dimension_numbers = #tpu.dot_dimension_numbers<[1], [1], [0], [0], [0, 0, 1, 0], [], []>} : vector<8x4xbf16>, vector<128x4xbf16>, vector<8x128xf32> -> vector<8x128xf32>
    %224 = arith.addf %215, %223 : vector<8x128xf32>
    %c23 = arith.constant 23 : index
    %c0_172 = arith.constant 0 : index
    %c0_173 = arith.constant 0 : index
    %225 = vector.load %arg4[%c23, %c0_172, %c0_173] : memref<24x8x4xbf16, #tpu.memory_space<vmem>>, vector<1x8x4xbf16>
    %226 = vector.shape_cast %225 : vector<1x8x4xbf16> to vector<8x4xbf16>
    %c6_i32_174 = arith.constant 6 : i32
    %227 = arith.addi %1, %c6_i32_174 : i32
    %c0_175 = arith.constant 0 : index
    %228 = arith.index_cast %227 : i32 to index
    %c6_176 = arith.constant 6 : index
    %c0_177 = arith.constant 0 : index
    %229 = vector.load %arg3[%c0_175, %228, %c6_176, %c0_177] : memref<1x22x22x4xbf16, #tpu.memory_space<vmem>>, vector<1x8x16x4xbf16>
    %230 = vector.shape_cast %229 : vector<1x8x16x4xbf16> to vector<8x16x4xbf16>
    %231 = vector.shape_cast %230 : vector<8x16x4xbf16> to vector<128x4xbf16>
    %cst_178 = arith.constant dense<0.000000e+00> : vector<8x128xf32>
    %232 = tpu.matmul %226, %231, %cst_178 {dimension_numbers = #tpu.dot_dimension_numbers<[1], [1], [0], [0], [0, 0, 1, 0], [], []>} : vector<8x4xbf16>, vector<128x4xbf16>, vector<8x128xf32> -> vector<8x128xf32>
    %233 = arith.addf %224, %232 : vector<8x128xf32>
    %c16_179 = arith.constant 16 : index
    %c0_180 = arith.constant 0 : index
    %234 = vector.load %arg9[%c16_179, %c0_180] : memref<32x128xf32, #tpu.memory_space<vmem>>, vector<8x128xf32>
    %235 = arith.addf %234, %233 : vector<8x128xf32>
    %c16_181 = arith.constant 16 : index
    %c0_182 = arith.constant 0 : index
    %236 = vector.load %arg9[%c16_181, %c0_182] : memref<32x128xf32, #tpu.memory_space<vmem>>, vector<8x128xf32>
    tpu.vector_store %arg9[%c16_181, %c0_182], %235 {strides = array<i32>} : memref<32x128xf32, #tpu.memory_space<vmem>>, vector<8x128xf32>,
    %c0_i32_183 = arith.constant 0 : i32
    %237 = arith.cmpi eq, %arg2, %c0_i32_183 : i32
    %238 = arith.extui %237 : i1 to i32
    %c0_i32_184 = arith.constant 0 : i32
    %239 = arith.cmpi ne, %238, %c0_i32_184 : i32
    scf.if %239 {
      %c0_185 = arith.constant 0 : index
      %c0_186 = arith.constant 0 : index
      %240 = vector.load %arg9[%c0_185, %c0_186] : memref<32x128xf32, #tpu.memory_space<vmem>>, vector<32x128xf32>
      %c0_187 = arith.constant 0 : index
      %c0_188 = arith.constant 0 : index
      %241 = vector.load %arg6[%c0_187, %c0_188] : memref<32x1xf32, #tpu.memory_space<vmem>>, vector<32x1xf32>
      %242 = vector.broadcast %241 : vector<32x1xf32> to vector<32x128xf32>
      %243 = arith.addf %240, %242 : vector<32x128xf32>
      %cst_189 = arith.constant 0.000000e+00 : f32
      %244 = vector.broadcast %cst_189 : f32 to vector<32x128xf32>
      %245 = arith.maximumf %243, %244 : vector<32x128xf32>
      %c0_190 = arith.constant 0 : index
      %c0_191 = arith.constant 0 : index
      %c0_192 = arith.constant 0 : index
      %246 = vector.load %arg8[%c0_190, %c0_191, %c0_192] : memref<1x40x128xf32, #tpu.memory_space<vmem>>, vector<1x32x128xf32>
      %247 = vector.shape_cast %246 : vector<1x32x128xf32> to vector<32x128xf32>
      %248 = vector.shape_cast %245 : vector<32x128xf32> to vector<1x32x128xf32>
      tpu.vector_store %arg8[%c0_190, %c0_191, %c0_192], %248 {strides = array<i32>} : memref<1x40x128xf32, #tpu.memory_space<vmem>>, vector<1x32x128xf32>,
      %c0_193 = arith.constant 0 : index
      %c0_194 = arith.constant 0 : index
      %c0_195 = arith.constant 0 : index
      %249 = vector.load %arg7[%c0_193, %c0_194, %c0_195] : memref<1x8x1xf32, #tpu.memory_space<vmem>>, vector<1x8x1xf32>
      %250 = vector.shape_cast %249 : vector<1x8x1xf32> to vector<8x1xf32>
      %251 = vector.shape_cast %250 : vector<8x1xf32> to vector<8x1xf32>
      %252 = vector.broadcast %251 : vector<8x1xf32> to vector<8x128xf32>
      %c0_196 = arith.constant 0 : index
      %c32 = arith.constant 32 : index
      %c0_197 = arith.constant 0 : index
      %253 = vector.load %arg8[%c0_196, %c32, %c0_197] : memref<1x40x128xf32, #tpu.memory_space<vmem>>, vector<1x8x128xf32>
      %254 = vector.shape_cast %253 : vector<1x8x128xf32> to vector<8x128xf32>
      %255 = vector.shape_cast %252 : vector<8x128xf32> to vector<1x8x128xf32>
      tpu.vector_store %arg8[%c0_196, %c32, %c0_197], %255 {strides = array<i32>} : memref<1x40x128xf32, #tpu.memory_space<vmem>>, vector<1x8x128xf32>,
    } else {
    }
    return
  }
  func.func @transform_0(%arg0: i32, %arg1: i32, %arg2: i32) -> (i32, i32, i32, i32) {
    %c0_i32 = arith.constant 0 : i32
    %c0_i32_0 = arith.constant 0 : i32
    %c0_i32_1 = arith.constant 0 : i32
    return %arg0, %c0_i32, %c0_i32_0, %arg2 : i32, i32, i32, i32
  }
  func.func @transform_1(%arg0: i32, %arg1: i32, %arg2: i32) -> (i32, i32, i32) {
    %c0_i32 = arith.constant 0 : i32
    %c0_i32_0 = arith.constant 0 : i32
    %c0_i32_1 = arith.constant 0 : i32
    return %c0_i32, %c0_i32_0, %arg2 : i32, i32, i32
  }
  func.func @transform_2(%arg0: i32, %arg1: i32, %arg2: i32) -> (i32, i32) {
    %c0_i32 = arith.constant 0 : i32
    %c0_i32_0 = arith.constant 0 : i32
    return %c0_i32, %arg2 : i32, i32
  }
  func.func @transform_3(%arg0: i32, %arg1: i32, %arg2: i32) -> (i32, i32) {
    %c0_i32 = arith.constant 0 : i32
    %c0_i32_0 = arith.constant 0 : i32
    %c0_i32_1 = arith.constant 0 : i32
    return %c0_i32, %c0_i32_0 : i32, i32
  }
  func.func @transform_4(%arg0: i32, %arg1: i32, %arg2: i32) -> (i32, i32, i32) {
    %c0_i32 = arith.constant 0 : i32
    %c0_i32_0 = arith.constant 0 : i32
    %c0_i32_1 = arith.constant 0 : i32
    return %arg0, %c0_i32, %c0_i32_0 : i32, i32, i32
  }
  func.func @transform_5(%arg0: i32, %arg1: i32, %arg2: i32) -> (i32, i32, i32) {
    %c0_i32 = arith.constant 0 : i32
    %c0_i32_0 = arith.constant 0 : i32
    return %arg0, %c0_i32, %arg1 : i32, i32, i32
  }
}

</mosaic_0001>

<bundles_post_ra>
// kernel: tpu_custom_call.1
= control target key start
LH: loop header
LB: loop body
LE: loop exit
PB: predicated region body
PF: predicated region fallthrough
CT: control target
= control target key end

     0   :  { %10 = vsyncpa [#allocation4], 0  ;;  %s11413_s0 = inlined_call_operand.vmem [shape: bf16[2,22,22,4], index: 0, kind: input, shape index: {}]   ;;  %s11414_s1 = inlined_call_operand.vmem [shape: bf16[24,8,4], index: 1, kind: input, shape index: {}]   ;;  %s11415_s2 = inlined_call_operand.vmem [shape: bf16[32,4], index: 2, kind: input, shape index: {}]   ;;  %s11416_s3 = inlined_call_operand.vmem [shape: f32[32,1], index: 3, kind: input, shape index: {}]   ;;  %s11417_s4 = inlined_call_operand.vmem [shape: f32[2,8,1], index: 4, kind: input, shape index: {}]   ;;  %s11418_s5 = inlined_call_operand.hbm [shape: f32[2,40,256], index: 5, kind: output, shape index: {}]  }
   0x1   :  { %12 = vsyncpa [#allocation4 + $0x1], 0  ;;  %s8591_s18 = smov 0   ;;  %s8593_s19 = smov 0  }
   0x2   :  { %s8595_s20 = smov 0   ;;  %s8597_s21 = smov 0  }
   0x3   :  { %s8599_s22 = smov 0   ;;  %s8601_s23 = smov 0  }
   0x4   :  { %s8603_s24 = smov 0   ;;  %s8605_s25 = smov 0  }
   0x5 LB: > { %s6762_s26 = sadd.s32 4294967295, %s8552_s25   ;;  %s6763_s27 = sadd.s32 4294967294, %s8552_s25   ;;  %s8552_s25 = sphi %s8605_s25, %s18_s25   ;;  %s8548_s24 = sphi %s8603_s24, %s11454_s24   ;;  %s8544_s23 = sphi %s8601_s23, %s11453_s23   ;;  %s8540_s22 = sphi %s8599_s22, %s11452_s22   ;;  %s8536_s21 = sphi %s8597_s21, %s11451_s21   ;;  %s8532_s20 = sphi %s8595_s20, %s11450_s20   ;;  %s8528_s19 = sphi %s8593_s19, %s11449_s19   ;;  %s8524_s18 = sphi %s8591_s18, %s11448_s18  }
   0x6   : > { %s33_s28 = sadd.s32 1, %s8544_s23  ;;  %s37_s29 = sadd.s32 1, %s8548_s24 }
   0x7   : > { %p35_p0 = scmp.ge.s32.totalorder %s33_s28, 2  ;;  %p183_p1 = scmp.ne.s32.totalorder %s8532_s20, %s8528_s19 }
   0x8   : > { %p184_p2 = scmp.eq.s32.totalorder %s6762_s26, 3  ;;  %p189_p5 = scmp.ne.s32.totalorder %s8528_s19, %s8524_s18 }
   0x9   : > { %s11456_s28 = smov (%p35_p0, %s33_s28), 0  ;;  %s11458_s29 = smov (!%p35_p0, %s37_s29), %s8548_s24 }
   0xa   : > { %s169_s30 = ssub.s32 %s8544_s23, %s11456_s28  ;;  %p8642_p3 = por %p184_p2, %p183_p1 }
   0xb   : > { %p39_p4 = scmp.ge.s32.totalorder %s11458_s29, 2  ;;  %p190_p6 = scmp.eq.s32.totalorder %s6763_s27, 3 }
   0xc   : > { %p6768_p7 = scmp.ge.s32.totalorder %s8552_s25, 1  ;;  %p243_p9 = scmp.lt.s32.totalorder %s8552_s25, 5 }
   0xd   : > { %s11460_s29 = smov (%p39_p4, %s11458_s29), 0  ;;  %p8651_p8 = por %p190_p6, %p189_p5 }
   0xe   : > { %s168_s8 = ssub.s32 %s8548_s24, %s11460_s29  ;;  %s173_s9 = sadd.s32 1, %s8532_s20 }
   0xf   : > { %s170_s10 = sor.u32 %s169_s30, %s168_s8  ;;  %p244_p10 = pnand %p6768_p7, %p243_p9 }
  0x10   : > { %p171_p11 = scmp.eq.s32.totalorder %s170_s10, 0 }
  0x11   : > { %247 = sbr.rel (%p244_p10) target bundleno = 1106 (0x452), region = 40 }
  0x12   : > { %s8660_s11 = scalar_select %p171_p11, %s8532_s20, %s173_s9  }
  0x18   : > { %p286_p12 = scmp.lt.s32.totalorder %s8540_s22, 1  ;;  %v11419_v0 = vmov 0.0   ;;  %vm8555_vm0 = vmmov 0   ;;  %s6773_s13 = smul.u32 96, %s8536_s21  ;;  %vm601_vm1 = vcmask 31744   ;;  %vm758_vm2 = vcmask 1042432  }
  0x19   : > { %7811 = vmatprep.subr.bf16.mxu1 %v11419_v0  ;;  %7827 = vmatprep.mubr.msk.bf16.mxu1 %vm8555_vm0, %v11419_v0  ;;  %v8402_v1 = vld [vmem:[%s11415_s2] sm:$0xff]   ;;  %vm759_vm3 = vcmask 1046532   ;;  %vm340_vm5 = vsmask.f32 2304  ;;  %vm341_vm6 = vsmask.f32 6416 }
  0x1a   : > { %s8665_s12 = scalar_select %p286_p12, %s8540_s22, 1  ;;  %7747 = vmatprep.mubr.msk.bf16.mxu0 %vm601_vm1, %v8402_v1  ;;  %vm8680_vm4 = vmor %vm758_vm2, %vm759_vm3  ;;  %vm1259_vm8 = vcmask 1041408   ;;  %vm1260_vm9 = vcmask 1045508   ;;  %vm2525_vm11 = vsmask.f32 3328  ;;  %vm5405_vm3 = vcmask 1040384  }
  0x1b   : > { %vm8706_vm7 = vmor %vm340_vm5, %vm341_vm6  ;;  %s283_s10 = sand.u32 1, %s8528_s19   ;;  %vm2526_vm12 = vsmask.f32 7440  ;;  %vm3122_vm14 = vsmask.f32 1280  ;;  %s8322_s9 = smul.u32 10, %s8540_s22 }
  0x1c   : > { %s8321_s16 = smul.u32 264, %s8665_s12  ;;  %vm8851_vm10 = vmor %vm1259_vm8, %vm1260_vm9  ;;  %vm3123_vm15 = vsmask.f32 5392  ;;  %s11361_s17 = scalar_lea.sflag [#allocation4], %s283_s10 }
  0x1d   : > { %vm9877_vm13 = vmor %vm2525_vm11, %vm2526_vm12 }
  0x1e   : > { %s293_s27 = scalar_lea.vmem %s11413_s0, %s8321_s16  ;;  %vm10131_vm2 = vmor %vm3122_vm14, %vm3123_vm15 }
  0x1f   : > { %s8678_s30 = scalar_lea.vmem %s293_s27, %s6773_s13  ;;  %s9822_s13 = smul.u32 40, %s283_s10 }
  0x20   : > { %v6898_v3 = vld [vmem:[%s8678_s30 + $0x24] sm:$0xe]  ;;  %v8686_v4 = vld [vmem:[%s8678_s30 + $0x28] sm:$0xf]  ;;  %v6900_v5 = vld [vmem:[%s8678_s30 + $0x2c] sm:$0x1] }
  0x21   : > { %v6922_v6 = vrot.slane %v6898_v3, 9  ;;  %v1462_v7 = vrot.slane %v8686_v4, 5  ;;  %v1465_v8 = vrot.slane %v6900_v5, 5  ;;  %v1644_v9 = vrot.slane %v8686_v4, 6  ;;  %v6774_v10 = vld [vmem:[%s8678_s30 + $0x24] sm:$0xe] }
  0x22   : > { %v6775_v11 = vld [vmem:[%s8678_s30 + $0x28] sm:$0xf]  ;;  %v6776_v12 = vld [vmem:[%s8678_s30 + $0x2c] sm:$0x3]  ;;  %v344_v13 = vshrl.u32 %v6774_v10, 16  ;;  %v347_v14 = vshll.u32 %v6774_v10, 16 }
  0x23   : > { %v1463_v15 = vsel %vm8680_vm4, %v6922_v6, %v1462_v7  ;;  %v1464_v16 = vrot.slane %v1462_v7, 4  ;;  %v353_v17 = vshrl.u32 %v6775_v11, 16  ;;  %v356_v18 = vshll.u32 %v6775_v11, 16  ;;  %v6901_v19 = vld [vmem:[%s8678_s30 + $0x30] sm:$0xe]  ;;  %s9853_s14 = scalar_lea.vmem [#allocation3], %s9822_s13 }
  0x24   : > { %v346_v20 = vrot.slane %v344_v13, 5  ;;  %v349_v21 = vrot.slane %v347_v14, 6  ;;  %v363_v22 = vshrl.u32 %v6776_v12, 16  ;;  %v366_v23 = vshll.u32 %v6776_v12, 16  ;;  %v8698_v24 = vld [vmem:[%s8678_s30 + $0x34] sm:$0xf] }
  0x25   : > { %v1466_v25 = vsel %vm8680_vm4, %v1464_v16, %v1465_v8  ;;  %v355_v26 = vrot.slane %v353_v17, 5  ;;  %v358_v27 = vrot.slane %v356_v18, 6  ;;  %v6903_v28 = vld [vmem:[%s8678_s30 + $0x38] sm:$0x1]  ;;  %v6923_v29 = vrot.slane %v6901_v19, 9  ;;  %s6770_s27 = sshll.u32 %s8665_s12, 3 }
  0x26   : > { %v6930_v30 = vcombine.low %v1463_v15, %v1466_v25  ;;  %v350_v31 = vor.u32 %v349_v21, %v346_v20  ;;  %v365_v32 = vrot.slane %v363_v22, 5  ;;  %v368_v33 = vrot.slane %v366_v23, 6  ;;  %v6777_v34 = vld [vmem:[%s8678_s30 + $0x30] sm:$0xe]  ;;  %v6778_v39 = vld [vmem:[%s8678_s30 + $0x34] sm:$0xf]  ;;  %s305_s13 = scalar_lea.vmem %s11417_s4, %s6770_s27 }
  0x27   : > { %v359_v36 = vor.u32 %v358_v27, %v355_v26  ;;  %v1469_v37 = vrot.slane %v8698_v24, 5  ;;  %v1472_v38 = vrot.slane %v6903_v28, 5  ;;  %v372_v40 = vshrl.u32 %v6777_v34, 16  ;;  %v6779_v44 = vld [vmem:[%s8678_s30 + $0x38] sm:$0x3]  ;;  %s6610_s15 = sshll.u32 %s9853_s14, 4  ;;  %s11350_s15 = int_to_ptr.vmem [resolvable:$true] %s6610_s15 }
  0x28   : > { %v1544_v41 = vsel %vm601_vm1, %v6930_v30, 0  ;;  %v351_v42 = vrot.slane %v350_v31, 4  ;;  %v369_v43 = vor.u32 %v368_v33, %v365_v32  ;;  %v375_v45 = vshll.u32 %v6777_v34, 16  ;;  %v6904_v54 = vld [vmem:[%s8678_s30 + $0x3c] sm:$0xe]  ;;  %s8458_s26 = scalar_lea.vmem %s11350_s15, 640 }
  0x29   : > { %7812 = vmatpush3.bf16.xpose.msra.mxu1 %v1544_v41  ;;  %v361_v46 = vrot.slane %v359_v36, 4  ;;  %v1470_v47 = vsel %vm8680_vm4, %v6923_v29, %v1469_v37  ;;  %v1471_v48 = vrot.slane %v1469_v37, 4  ;;  %v374_v49 = vrot.slane %v372_v40, 5  ;;  %v8725_v59 = vld [vmem:[%s8678_s30 + $0x40] sm:$0xf]  ;;  %p8459_p13 = scmp.ne.s32.totalorder %s11350_s15, %s8458_s26  ;;  %s8557_s27 = smov [#allocation3]  }
  0x2a   : > { %v360_v50 = vsel %vm8706_vm7, %v351_v42, %v359_v36  ;;  %7813 = vmatprep.subr.bf16.mxu1 %v11419_v0  ;;  %v377_v51 = vrot.slane %v375_v45, 6  ;;  %v381_v52 = vshrl.u32 %v6778_v39, 16  ;;  %v384_v53 = vshll.u32 %v6778_v39, 16  ;;  %v6906_v1 = vld [vmem:[%s8678_s30 + $0x44] sm:$0x1] }
  0x2b   : > { %v370_v55 = vsel %vm8706_vm7, %v361_v46, %v369_v43  ;;  %v1473_v56 = vsel %vm8680_vm4, %v1471_v48, %v1472_v38  ;;  %v391_v57 = vshrl.u32 %v6779_v44, 16  ;;  %v394_v58 = vshll.u32 %v6779_v44, 16  ;;  %v6780_v3 = vld [vmem:[%s8678_s30 + $0x3c] sm:$0xe]  ;;  %v6781_v10 = vld [vmem:[%s8678_s30 + $0x40] sm:$0xf]  ;;  %p8460_p0 = pnand %p8459_p13, %p8642_p3 }
  0x2c   : > { %v6800_v60 = vcombine.low %v360_v50, %v370_v55  ;;  %v6931_v61 = vcombine.low %v1470_v47, %v1473_v56  ;;  %v378_v62 = vor.u32 %v377_v51, %v374_v49  ;;  %v383_v63 = vrot.slane %v381_v52, 5  ;;  %v6782_v18 = vld [vmem:[%s8678_s30 + $0x44] sm:$0x3]  ;;  %v6907_v29 = vld [vmem:[%s8678_s30 + $0x48] sm:$0xe] }
  0x2d   : > { %v386_v5 = vrot.slane %v384_v53, 6  ;;  %v393_v6 = vrot.slane %v391_v57, 5  ;;  %v396_v7 = vrot.slane %v394_v58, 6  ;;  %v6924_v8 = vrot.slane %v6904_v54, 9  ;;  %v8744_v34 = vld [vmem:[%s8678_s30 + $0x4c] sm:$0xf]  ;;  %p8461_p1 = pneg %p8460_p0 }
  0x2e   : > { %8312 = vmatprep.subr.msk.bf16.mxu0 %vm601_vm1, %v6800_v60  ;;  %v609_v11 = vsel %vm601_vm1, %v6800_v60, 0  ;;  %v1547_v12 = vsel %vm601_vm1, %v6931_v61, 0  ;;  %v379_v13 = vrot.slane %v378_v62, 4  ;;  %v1476_v14 = vrot.slane %v8725_v59, 5  ;;  %v6909_v40 = vld [vmem:[%s8678_s30 + $0x50] sm:$0x1] }
  0x2f   : > { %7732 = vmatpush3.bf16.xpose.msra.mxu0 %v609_v11  ;;  %v387_v15 = vor.u32 %v386_v5, %v383_v63  ;;  %v397_v16 = vor.u32 %v396_v7, %v393_v6  ;;  %v1479_v17 = vrot.slane %v6906_v1, 5  ;;  %v400_v19 = vshrl.u32 %v6780_v3, 16  ;;  %v6783_v41 = vld [vmem:[%s8678_s30 + $0x48] sm:$0xe]  ;;  %v6784_v50 = vld [vmem:[%s8678_s30 + $0x4c] sm:$0xf] }
  0x30   : > { %v1477_v20 = vsel %vm8680_vm4, %v6924_v8, %v1476_v14  ;;  %v1478_v21 = vrot.slane %v1476_v14, 4  ;;  %v403_v22 = vshll.u32 %v6780_v3, 16  ;;  %v409_v23 = vshrl.u32 %v6781_v10, 16  ;;  %v6785_v54 = vld [vmem:[%s8678_s30 + $0x50] sm:$0x3] }
  0x31   : > { %7814 = vmatpush3.bf16.xpose.msra.mxu1 %v1547_v12  ;;  %v388_v25 = vsel %vm8706_vm7, %v379_v13, %v387_v15  ;;  %v389_v26 = vrot.slane %v387_v15, 4  ;;  %v402_v27 = vrot.slane %v400_v19, 5  ;;  %v412_v28 = vshll.u32 %v6781_v10, 16  ;;  %v6910_v3 = vld [vmem:[%s8678_s30 + $0x54] sm:$0xe] }
  0x32   : > { %7815 = vmatprep.subr.bf16.mxu1 %v11419_v0  ;;  %v1480_v30 = vsel %vm8680_vm4, %v1478_v21, %v1479_v17  ;;  %v405_v31 = vrot.slane %v403_v22, 6  ;;  %v411_v32 = vrot.slane %v409_v23, 5  ;;  %v419_v33 = vshrl.u32 %v6782_v18, 16  ;;  %v8766_v10 = vld [vmem:[%s8678_s30 + $0x58] sm:$0xf] }
  0x33   : > { %v398_v36 = vsel %vm8706_vm7, %v389_v26, %v397_v16  ;;  %v6932_v37 = vcombine.low %v1477_v20, %v1480_v30  ;;  %v414_v38 = vrot.slane %v412_v28, 6  ;;  %v422_v39 = vshll.u32 %v6782_v18, 16  ;;  %v6912_v15 = vld [vmem:[%s8678_s30 + $0x5c] sm:$0x1]  ;;  %v6786_v16 = vld [vmem:[%s8678_s30 + $0x54] sm:$0xe] }
  0x34   : > { %v6801_v42 = vcombine.low %v388_v25, %v398_v36  ;;  %v406_v43 = vor.u32 %v405_v31, %v402_v27  ;;  %v421_v44 = vrot.slane %v419_v33, 5  ;;  %v6925_v45 = vrot.slane %v6907_v29, 9  ;;  %v6787_v26 = vld [vmem:[%s8678_s30 + $0x58] sm:$0xf]  ;;  %v6788_v36 = vld [vmem:[%s8678_s30 + $0x5c] sm:$0x3] }
  0x35   : > { %v1550_v46 = vsel %vm601_vm1, %v6932_v37, 0  ;;  %v415_v47 = vor.u32 %v414_v38, %v411_v32  ;;  %v424_v48 = vrot.slane %v422_v39, 6  ;;  %v1483_v49 = vrot.slane %v8744_v34, 5 }
  0x36   : > { %8313 = vmatprep.subr.msk.bf16.mxu0 %vm601_vm1, %v6801_v42  ;;  %v612_v51 = vsel %vm601_vm1, %v6801_v42, 0  ;;  %v407_v52 = vrot.slane %v406_v43, 4  ;;  %v1486_v53 = vrot.slane %v6909_v40, 5  ;;  %v428_v55 = vshrl.u32 %v6783_v41, 16 }
  0x37   : > { %7734 = vmatpush3.bf16.xpose.msra.mxu0 %v612_v51  ;;  %v417_v56 = vrot.slane %v415_v47, 4  ;;  %v425_v57 = vor.u32 %v424_v48, %v421_v44  ;;  %v1484_v58 = vsel %vm8680_vm4, %v6925_v45, %v1483_v49  ;;  %v1485_v60 = vrot.slane %v1483_v49, 4 }
  0x38   : > { %v416_v61 = vsel %vm8706_vm7, %v407_v52, %v415_v47  ;;  %v430_v62 = vrot.slane %v428_v55, 5  ;;  %v431_v63 = vshll.u32 %v6783_v41, 16  ;;  %v437_v1 = vshrl.u32 %v6784_v50, 16  ;;  %v8785_v47 = vld [vmem:[%s8678_s30 + $0x64] sm:$0xf] }
  0x39   : > { %7816 = vmatpush3.bf16.xpose.msra.mxu1 %v1550_v46  ;;  %v426_v5 = vsel %vm8706_vm7, %v417_v56, %v425_v57  ;;  %v1487_v6 = vsel %vm8680_vm4, %v1485_v60, %v1486_v53  ;;  %v440_v7 = vshll.u32 %v6784_v50, 16  ;;  %v447_v8 = vshrl.u32 %v6785_v54, 16  ;;  %v6913_v46 = vld [vmem:[%s8678_s30 + $0x60] sm:$0xe]  ;;  %v6915_v56 = vld [vmem:[%s8678_s30 + $0x68] sm:$0x1] }
  0x3a   : > { %v6802_v11 = vcombine.low %v416_v61, %v426_v5  ;;  %7817 = vmatprep.subr.bf16.mxu1 %v11419_v0  ;;  %v6933_v12 = vcombine.low %v1484_v58, %v1487_v6  ;;  %v433_v13 = vrot.slane %v431_v63, 6  ;;  %v439_v14 = vrot.slane %v437_v1, 5  ;;  %v6789_v57 = vld [vmem:[%s8678_s30 + $0x60] sm:$0xe]  ;;  %v6790_v6 = vld [vmem:[%s8678_s30 + $0x64] sm:$0xf] }
  0x3b   : > { %v442_v17 = vrot.slane %v440_v7, 6  ;;  %v449_v18 = vrot.slane %v447_v8, 5  ;;  %v450_v19 = vshll.u32 %v6785_v54, 16  ;;  %v6926_v20 = vrot.slane %v6910_v3, 9 }
  0x3c   : > { %8314 = vmatprep.subr.msk.bf16.mxu0 %vm601_vm1, %v6802_v11  ;;  %v615_v21 = vsel %vm601_vm1, %v6802_v11, 0  ;;  %v1553_v22 = vsel %vm601_vm1, %v6933_v12, 0  ;;  %v434_v23 = vor.u32 %v433_v13, %v430_v62  ;;  %v1490_v25 = vrot.slane %v8766_v10, 5  ;;  %v6791_v12 = vld [vmem:[%s8678_s30 + $0x68] sm:$0x3] }
  0x3d   : > { %v443_v27 = vor.u32 %v442_v17, %v439_v14  ;;  %v452_v28 = vrot.slane %v450_v19, 6  ;;  %v1493_v29 = vrot.slane %v6912_v15, 5  ;;  %v456_v30 = vshrl.u32 %v6786_v16, 16 }
  0x3e   : > { %v435_v31 = vrot.slane %v434_v23, 4  ;;  %v1491_v32 = vsel %vm8680_vm4, %v6926_v20, %v1490_v25  ;;  %v1492_v33 = vrot.slane %v1490_v25, 4  ;;  %v459_v37 = vshll.u32 %v6786_v16, 16 }
  0x3f   : > { %7736 = vmatpush3.bf16.xpose.msra.mxu0 %v615_v21  ;;  %v445_v38 = vrot.slane %v443_v27, 4  ;;  %v453_v39 = vor.u32 %v452_v28, %v449_v18  ;;  %v458_v40 = vrot.slane %v456_v30, 5  ;;  %v465_v41 = vshrl.u32 %v6787_v26, 16  ;;  %v8808_v28 = vld [vmem:[%s8678_s30 + $0x70] sm:$0xf] }
  0x40   : > { %v444_v42 = vsel %vm8706_vm7, %v435_v31, %v443_v27  ;;  %v1494_v43 = vsel %vm8680_vm4, %v1492_v33, %v1493_v29  ;;  %v461_v44 = vrot.slane %v459_v37, 6  ;;  %v468_v45 = vshll.u32 %v6787_v26, 16  ;;  %v6918_v29 = vld [vmem:[%s8678_s30 + $0x74] sm:$0x1] }
  0x41   : > { %7818 = vmatpush3.bf16.xpose.msra.mxu1 %v1553_v22  ;;  %v454_v48 = vsel %vm8706_vm7, %v445_v38, %v453_v39  ;;  %v6934_v49 = vcombine.low %v1491_v32, %v1494_v43  ;;  %v467_v50 = vrot.slane %v465_v41, 5  ;;  %v475_v51 = vshrl.u32 %v6788_v36, 16  ;;  %v6916_v22 = vld [vmem:[%s8678_s30 + $0x6c] sm:$0xe] }
  0x42   : > { %v6803_v52 = vcombine.low %v444_v42, %v454_v48  ;;  %7819 = vmatprep.subr.bf16.mxu1 %v11419_v0  ;;  %v462_v53 = vor.u32 %v461_v44, %v458_v40  ;;  %v470_v54 = vrot.slane %v468_v45, 6  ;;  %v478_v55 = vshll.u32 %v6788_v36, 16  ;;  %v6792_v36 = vld [vmem:[%s8678_s30 + $0x6c] sm:$0xe]  ;;  %v6793_v45 = vld [vmem:[%s8678_s30 + $0x70] sm:$0xf] }
  0x43   : > { %v1556_v58 = vsel %vm601_vm1, %v6934_v49, 0  ;;  %v477_v60 = vrot.slane %v475_v51, 5  ;;  %v6927_v61 = vrot.slane %v6913_v46, 9  ;;  %v1497_v62 = vrot.slane %v8785_v47, 5  ;;  %v6794_v49 = vld [vmem:[%s8678_s30 + $0x74] sm:$0x3] }
  0x44   : > { %8315 = vmatprep.subr.msk.bf16.mxu0 %vm601_vm1, %v6803_v52  ;;  %v618_v63 = vsel %vm601_vm1, %v6803_v52, 0  ;;  %v463_v1 = vrot.slane %v462_v53, 4  ;;  %v471_v3 = vor.u32 %v470_v54, %v467_v50  ;;  %v480_v5 = vrot.slane %v478_v55, 6 }
  0x45   : > { %v1498_v7 = vsel %vm8680_vm4, %v6927_v61, %v1497_v62  ;;  %v1499_v8 = vrot.slane %v1497_v62, 4  ;;  %v1500_v11 = vrot.slane %v6915_v56, 5  ;;  %v484_v13 = vshrl.u32 %v6789_v57, 16  ;;  %v6919_v61 = vld [vmem:[%s8678_s30 + $0x78] sm:$0xe] }
  0x46   : > { %v472_v14 = vsel %vm8706_vm7, %v463_v1, %v471_v3  ;;  %v473_v15 = vrot.slane %v471_v3, 4  ;;  %v481_v16 = vor.u32 %v480_v5, %v477_v60  ;;  %v487_v17 = vshll.u32 %v6789_v57, 16  ;;  %v8829_v5 = vld [vmem:[%s8678_s30 + $0x7c] sm:$0xf] }
  0x47   : > { %7738 = vmatpush3.bf16.xpose.msra.mxu0 %v618_v63  ;;  %v1501_v18 = vsel %vm8680_vm4, %v1499_v8, %v1500_v11  ;;  %v486_v19 = vrot.slane %v484_v13, 5  ;;  %v493_v20 = vshrl.u32 %v6790_v6, 16  ;;  %v496_v21 = vshll.u32 %v6790_v6, 16  ;;  %v6795_v13 = vld [vmem:[%s8678_s30 + $0x78] sm:$0xe] }
  0x48   : > { %v482_v23 = vsel %vm8706_vm7, %v473_v15, %v481_v16  ;;  %v6935_v25 = vcombine.low %v1498_v7, %v1501_v18  ;;  %v489_v26 = vrot.slane %v487_v17, 6  ;;  %v503_v27 = vshrl.u32 %v6791_v12, 16  ;;  %v6796_v18 = vld [vmem:[%s8678_s30 + $0x7c] sm:$0xf] }
  0x49   : > { %7820 = vmatpush3.bf16.xpose.msra.mxu1 %v1556_v58  ;;  %v6804_v30 = vcombine.low %v472_v14, %v482_v23  ;;  %v495_v31 = vrot.slane %v493_v20, 5  ;;  %v498_v32 = vrot.slane %v496_v21, 6  ;;  %v506_v33 = vshll.u32 %v6791_v12, 16  ;;  %v6921_v12 = vld [vmem:[%s8678_s30 + $0x80] sm:$0x1] }
  0x4a   : > { %7821 = vmatprep.subr.bf16.mxu1 %v11419_v0  ;;  %v1559_v37 = vsel %vm601_vm1, %v6935_v25, 0  ;;  %v490_v38 = vor.u32 %v489_v26, %v486_v19  ;;  %v505_v39 = vrot.slane %v503_v27, 5  ;;  %v6928_v40 = vrot.slane %v6916_v22, 9 }
  0x4b   : > { %8316 = vmatprep.subr.msk.bf16.mxu0 %vm601_vm1, %v6804_v30  ;;  %v621_v41 = vsel %vm601_vm1, %v6804_v30, 0  ;;  %v499_v42 = vor.u32 %v498_v32, %v495_v31  ;;  %v508_v43 = vrot.slane %v506_v33, 6  ;;  %v1504_v44 = vrot.slane %v8808_v28, 5  ;;  %v6797_v31 = vld [vmem:[%s8678_s30 + $0x80] sm:$0x3] }
  0x4c   : > { %v491_v46 = vrot.slane %v490_v38, 4  ;;  %v1507_v48 = vrot.slane %v6918_v29, 5  ;;  %v512_v50 = vshrl.u32 %v6792_v36, 16  ;;  %v515_v51 = vshll.u32 %v6792_v36, 16 }
  0x4d   : > { %v501_v52 = vrot.slane %v499_v42, 4  ;;  %v509_v53 = vor.u32 %v508_v43, %v505_v39  ;;  %v1505_v54 = vsel %vm8680_vm4, %v6928_v40, %v1504_v44  ;;  %v1506_v55 = vrot.slane %v1504_v44, 4  ;;  %v6940_v40 = vld [vmem:[%s8678_s30 + $0x24] sm:$0xc] }
  0x4e   : > { %v500_v56 = vsel %vm8706_vm7, %v491_v46, %v499_v42  ;;  %v514_v57 = vrot.slane %v512_v50, 5  ;;  %v517_v58 = vrot.slane %v515_v51, 6  ;;  %v521_v60 = vshrl.u32 %v6793_v45, 16 }
  0x4f   : > { %7740 = vmatpush3.bf16.xpose.msra.mxu0 %v621_v41  ;;  %v510_v62 = vsel %vm8706_vm7, %v501_v52, %v509_v53  ;;  %v1508_v63 = vsel %vm8680_vm4, %v1506_v55, %v1507_v48  ;;  %v524_v1 = vshll.u32 %v6793_v45, 16  ;;  %v531_v3 = vshrl.u32 %v6794_v49, 16 }
  0x50   : > { %v6805_v6 = vcombine.low %v500_v56, %v510_v62  ;;  %v6936_v7 = vcombine.low %v1505_v54, %v1508_v63  ;;  %v518_v8 = vor.u32 %v517_v58, %v514_v57  ;;  %v523_v11 = vrot.slane %v521_v60, 5  ;;  %v6941_v54 = vld [vmem:[%s8678_s30 + $0x2c] sm:$0x3]  ;;  %v8857_v56 = vld [vmem:[%s8678_s30 + $0x18] sm:$0xe] }
  0x51   : > { %7822 = vmatpush3.bf16.xpose.msra.mxu1 %v1559_v37  ;;  %v526_v14 = vrot.slane %v524_v1, 6  ;;  %v533_v15 = vrot.slane %v531_v3, 5  ;;  %v534_v16 = vshll.u32 %v6794_v49, 16  ;;  %v6929_v17 = vrot.slane %v6919_v61, 9  ;;  %v8863_v62 = vld [vmem:[%s8678_s30 + $0x1c] sm:$0xf] }
  0x52   : > { %8317 = vmatprep.subr.msk.bf16.mxu0 %vm601_vm1, %v6805_v6  ;;  %v624_v19 = vsel %vm601_vm1, %v6805_v6, 0  ;;  %7823 = vmatprep.subr.bf16.mxu1 %v11419_v0  ;;  %v1562_v20 = vsel %vm601_vm1, %v6936_v7, 0  ;;  %v519_v21 = vrot.slane %v518_v8, 4  ;;  %v1511_v22 = vrot.slane %v8829_v5, 5  ;;  %v6845_v7 = vld [vmem:[%s8678_s30 + $0x20] sm:$0x3] }
  0x53   : > { %v527_v23 = vor.u32 %v526_v14, %v523_v11  ;;  %v536_v25 = vrot.slane %v534_v16, 6  ;;  %v1514_v26 = vrot.slane %v6921_v12, 5  ;;  %v540_v27 = vshrl.u32 %v6795_v13, 16 }
  0x54   : > { %v1512_v29 = vsel %vm8680_vm4, %v6929_v17, %v1511_v22  ;;  %v1513_v30 = vrot.slane %v1511_v22, 4  ;;  %v543_v32 = vshll.u32 %v6795_v13, 16  ;;  %v549_v33 = vshrl.u32 %v6796_v18, 16 }
  0x55   : > { %v528_v36 = vsel %vm8706_vm7, %v519_v21, %v527_v23  ;;  %v529_v37 = vrot.slane %v527_v23, 4  ;;  %v537_v38 = vor.u32 %v536_v25, %v533_v15  ;;  %v542_v39 = vrot.slane %v540_v27, 5 }
  0x56   : > { %v1515_v41 = vsel %vm8680_vm4, %v1513_v30, %v1514_v26  ;;  %v545_v42 = vrot.slane %v543_v32, 6  ;;  %v551_v43 = vrot.slane %v549_v33, 5  ;;  %v552_v44 = vshll.u32 %v6796_v18, 16  ;;  %v6943_v26 = vld [vmem:[%s8678_s30 + $0x38] sm:$0x3] }
  0x57   : > { %7742 = vmatpush3.bf16.xpose.msra.mxu0 %v624_v19  ;;  %v538_v45 = vsel %vm8706_vm7, %v529_v37, %v537_v38  ;;  %v6937_v46 = vcombine.low %v1512_v29, %v1515_v41  ;;  %v559_v48 = vshrl.u32 %v6797_v31, 16  ;;  %v562_v49 = vshll.u32 %v6797_v31, 16  ;;  %v8886_v32 = vld [vmem:[%s8678_s30 + $0x24] sm:$0xe]  ;;  %v8890_v38 = vld [vmem:[%s8678_s30 + $0x28] sm:$0xf] }
  0x58   : > { %v6806_v51 = vcombine.low %v528_v36, %v538_v45  ;;  %v546_v52 = vor.u32 %v545_v42, %v542_v39  ;;  %v554_v53 = vrot.slane %v552_v44, 6  ;;  %v6956_v55 = vrot.slane %v6940_v40, 10 }
  0x59   : > { %7824 = vmatpush3.bf16.xpose.msra.mxu1 %v1562_v20  ;;  %v1565_v57 = vsel %vm601_vm1, %v6937_v46, 0  ;;  %v561_v58 = vrot.slane %v559_v48, 5  ;;  %v564_v60 = vrot.slane %v562_v49, 6  ;;  %v1646_v61 = vrot.slane %v1644_v9, 4  ;;  %v6942_v20 = vld [vmem:[%s8678_s30 + $0x30] sm:$0xc] }
  0x5a   : > { %8318 = vmatprep.subr.msk.bf16.mxu0 %vm601_vm1, %v6806_v51  ;;  %v627_v63 = vsel %vm601_vm1, %v6806_v51, 0  ;;  %7825 = vmatprep.subr.bf16.mxu1 %v11419_v0  ;;  %v547_v1 = vrot.slane %v546_v52, 4  ;;  %v555_v3 = vor.u32 %v554_v53, %v551_v43  ;;  %v1645_v6 = vsel %vm8851_vm10, %v6956_v55, %v1644_v9  ;;  %v6846_v43 = vld [vmem:[%s8678_s30 + $0x2c] sm:$0x3] }
  0x5b   : > { %v565_v8 = vor.u32 %v564_v60, %v561_v58  ;;  %v1647_v11 = vrot.slane %v6941_v54, 6  ;;  %v828_v12 = vshrl.u32 %v8857_v56, 16  ;;  %v831_v13 = vshll.u32 %v8857_v56, 16  ;;  %v6944_v58 = vld [vmem:[%s8678_s30 + $0x3c] sm:$0xc] }
  0x5c   : > { %v556_v14 = vsel %vm8706_vm7, %v547_v1, %v555_v3  ;;  %v557_v15 = vrot.slane %v555_v3, 4  ;;  %v837_v16 = vshrl.u32 %v8863_v62, 16  ;;  %v840_v17 = vshll.u32 %v8863_v62, 16  ;;  %v6897_v60 = vld [vmem:[%s11414_s1 + $0xc] sm:$0xf] }
  0x5d   : > { %v1648_v4 = vsel %vm8851_vm10, %v1646_v61, %v1647_v11  ;;  %v830_v9 = vrot.slane %v828_v12, 5  ;;  %v833_v18 = vrot.slane %v831_v13, 6  ;;  %v847_v19 = vshrl.u32 %v6845_v7, 16  ;;  %v8915_v13 = vld [vmem:[%s8678_s30 + $0x30] sm:$0xe] }
  0x5e   : > { %v566_v21 = vsel %vm8706_vm7, %v557_v15, %v565_v8  ;;  %v6964_v22 = vcombine.low %v1645_v6, %v1648_v4  ;;  %v839_v23 = vrot.slane %v837_v16, 5  ;;  %v842_v25 = vrot.slane %v840_v17, 6  ;;  %v6945_v6 = vld [vmem:[%s8678_s30 + $0x44] sm:$0x3]  ;;  %v8919_v17 = vld [vmem:[%s8678_s30 + $0x34] sm:$0xf] }
  0x5f   : > { %7744 = vmatpush3.bf16.xpose.msra.mxu0 %v627_v63  ;;  %v6807_v27 = vcombine.low %v556_v14, %v566_v21  ;;  %v834_v29 = vor.u32 %v833_v18, %v830_v9  ;;  %v849_v30 = vrot.slane %v847_v19, 5  ;;  %v850_v31 = vshll.u32 %v6845_v7, 16 }
  0x60   : > { %v843_v33 = vor.u32 %v842_v25, %v839_v23  ;;  %v6957_v36 = vrot.slane %v6942_v20, 10  ;;  %v1651_v37 = vrot.slane %v8698_v24, 6  ;;  %v1726_v39 = vsel %vm601_vm1, %v6964_v22, 0 }
  0x61   : > { %7826 = vmatpush3.bf16.xpose.msra.mxu1 %v1565_v57  ;;  %8319 = vmatprep.subr.msk.bf16.mxu0 %vm601_vm1, %v6807_v27  ;;  %v835_v40 = vrot.slane %v834_v29, 4  ;;  %v852_v41 = vrot.slane %v850_v31, 6  ;;  %v1654_v42 = vrot.slane %v6943_v26, 6  ;;  %v630_v44 = vsel %vm601_vm1, %v6807_v27, 0  ;;  %v6847_v27 = vld [vmem:[%s8678_s30 + $0x38] sm:$0x3] }
  0x62   : > { %7831 = vmatprep.subr.bf16.mxu1 %v11419_v0  ;;  %v845_v45 = vrot.slane %v843_v33, 4  ;;  %v1653_v46 = vrot.slane %v1651_v37, 4  ;;  %v856_v24 = vshrl.u32 %v8886_v32, 16  ;;  %v859_v51 = vshll.u32 %v8886_v32, 16 }
  0x63   : > { %v844_v48 = vsel %vm8706_vm7, %v835_v40, %v843_v33  ;;  %v853_v49 = vor.u32 %v852_v41, %v849_v30  ;;  %v865_v52 = vshrl.u32 %v8890_v38, 16  ;;  %v1652_v53 = vsel %vm8851_vm10, %v6957_v36, %v1651_v37 }
  0x64   : > { %v858_v54 = vrot.slane %v856_v24, 5  ;;  %v868_v55 = vshll.u32 %v8890_v38, 16  ;;  %v875_v57 = vshrl.u32 %v6846_v43, 16  ;;  %v1655_v63 = vsel %vm8851_vm10, %v1653_v46, %v1654_v42  ;;  %v6947_v24 = vld [vmem:[%s8678_s30 + $0x50] sm:$0x3] }
  0x65   : > { %v854_v61 = vsel %vm8706_vm7, %v845_v45, %v853_v49  ;;  %v861_v1 = vrot.slane %v859_v51, 6  ;;  %v867_v3 = vrot.slane %v865_v52, 5  ;;  %v878_v12 = vshll.u32 %v6846_v43, 16  ;;  %v6946_v43 = vld [vmem:[%s8678_s30 + $0x48] sm:$0xc] }
  0x66   : > { %v6853_v7 = vcombine.low %v844_v48, %v854_v61  ;;  %v870_v8 = vrot.slane %v868_v55, 6  ;;  %v877_v11 = vrot.slane %v875_v57, 5  ;;  %v6958_v15 = vrot.slane %v6944_v58, 10 }
  0x67   : > { %7746 = vmatpush3.bf16.xpose.msra.mxu0 %v630_v44  ;;  %v862_v14 = vor.u32 %v861_v1, %v858_v54  ;;  %v1658_v16 = vrot.slane %v8725_v59, 6  ;;  %v6965_v4 = vcombine.low %v1652_v53, %v1655_v63  ;;  %v880_v18 = vrot.slane %v878_v12, 6  ;;  %v8403_v59 = vld [vmem:[%s11415_s2 + $0x8] sm:$0xff]   ;;  %v8949_v53 = vld [vmem:[%s8678_s30 + $0x3c] sm:$0xe] }
  0x68   : > { %7828 = vmatmul.mubr.msk.bf16.vlgmr.msra.gmra.mrb[0].mxu1 %vm601_vm1, %v6897_v60  ;;  %7751 = vmatprep.subr.bf16.mxu0 %v11419_v0  ;;  %v871_v9 = vor.u32 %v870_v8, %v867_v3  ;;  %v1661_v19 = vrot.slane %v6945_v6, 6  ;;  %v1079_v20 = vsel %vm601_vm1, %v6853_v7, 0  ;;  %v884_v23 = vshrl.u32 %v8915_v13, 16  ;;  %v8952_v60 = vld [vmem:[%s8678_s30 + $0x40] sm:$0xf] }
  0x69   : > { %7832 = vmatpush3.bf16.xpose.msra.mxu1 %v1726_v39  ;;  %v863_v21 = vrot.slane %v862_v14, 4  ;;  %v1660_v22 = vrot.slane %v1658_v16, 4  ;;  %7847 = vmatprep.mubr.msk.bf16.mxu1 %vm8555_vm0, %v11419_v0  ;;  %v881_v26 = vor.u32 %v880_v18, %v877_v11  ;;  %v887_v29 = vshll.u32 %v8915_v13, 16  ;;  %v6848_v7 = vld [vmem:[%s8678_s30 + $0x44] sm:$0x3] }
  0x6a   : > { %7833 = vmatprep.subr.bf16.mxu1 %v11419_v0  ;;  %v873_v25 = vrot.slane %v871_v9, 4  ;;  %v893_v30 = vshrl.u32 %v8919_v17, 16  ;;  %v1659_v31 = vsel %vm8851_vm10, %v6958_v15, %v1658_v16  ;;  %v886_v36 = vrot.slane %v884_v23, 5 }
  0x6b   : > { %v1662_v33 = vsel %vm8851_vm10, %v1660_v22, %v1661_v19  ;;  %v896_v37 = vshll.u32 %v8919_v17, 16  ;;  %v872_v39 = vsel %vm8706_vm7, %v863_v21, %v871_v9  ;;  %v889_v41 = vrot.slane %v887_v29, 6  ;;  %v6949_v21 = vld [vmem:[%s8678_s30 + $0x5c] sm:$0x3] }
  0x6c   : > { %v882_v40 = vsel %vm8706_vm7, %v873_v25, %v881_v26  ;;  %v895_v42 = vrot.slane %v893_v30, 5  ;;  %v903_v45 = vshrl.u32 %v6847_v27, 16  ;;  %v906_v46 = vshll.u32 %v6847_v27, 16  ;;  %v8974_v26 = vld [vmem:[%s8678_s30 + $0x48] sm:$0xe] }
  0x6d   : > { %v898_v44 = vrot.slane %v896_v37, 6  ;;  %v1729_v48 = vsel %vm601_vm1, %v6965_v4, 0  ;;  %v6966_v49 = vcombine.low %v1659_v31, %v1662_v33  ;;  %v890_v51 = vor.u32 %v889_v41, %v886_v36  ;;  %v6948_v4 = vld [vmem:[%s8678_s30 + $0x54] sm:$0xc] }
  0x6e   : > { %7748 = vmatmul.mubr.msk.bf16.vlgmr.msra.gmra.mrb[0].mxu0 %vm601_vm1, %v8403_v59  ;;  %v1665_v52 = vrot.slane %v8744_v34, 6  ;;  %v6854_v54 = vcombine.low %v872_v39, %v882_v40  ;;  %v905_v57 = vrot.slane %v903_v45, 5  ;;  %v908_v58 = vrot.slane %v906_v46, 6  ;;  %v8980_v40 = vld [vmem:[%s8678_s30 + $0x4c] sm:$0xf] }
  0x6f   : > { %7752 = vmatpush3.bf16.xpose.msra.mxu0 %v1079_v20  ;;  %v899_v55 = vor.u32 %v898_v44, %v895_v42  ;;  %7767 = vmatprep.mubr.msk.bf16.mxu0 %vm8555_vm0, %v11419_v0  ;;  %v891_v61 = vrot.slane %v890_v51, 4  ;;  %v6959_v63 = vrot.slane %v6946_v43, 10  ;;  %v1668_v34 = vrot.slane %v6947_v24, 6  ;;  %v6849_v44 = vld [vmem:[%s8678_s30 + $0x50] sm:$0x3] }
  0x70   : > { %7753 = vmatprep.subr.bf16.mxu0 %v11419_v0  ;;  %v1667_v1 = vrot.slane %v1665_v52, 4  ;;  %v909_v6 = vor.u32 %v908_v58, %v905_v57  ;;  %v912_v8 = vshrl.u32 %v8949_v53, 16  ;;  %v915_v11 = vshll.u32 %v8949_v53, 16 }
  0x71   : > { %7834 = vmatpush3.bf16.xpose.msra.mxu1 %v1729_v48  ;;  %v901_v3 = vrot.slane %v899_v55, 4  ;;  %v1732_v12 = vsel %vm601_vm1, %v6966_v49, 0  ;;  %v900_v14 = vsel %vm8706_vm7, %v891_v61, %v899_v55  ;;  %v921_v15 = vshrl.u32 %v8952_v60, 16 }
  0x72   : > { %7835 = vmatprep.subr.bf16.mxu1 %v11419_v0  ;;  %v924_v16 = vshll.u32 %v8952_v60, 16  ;;  %v1082_v9 = vsel %vm601_vm1, %v6854_v54, 0  ;;  %v914_v19 = vrot.slane %v912_v8, 5  ;;  %v917_v20 = vrot.slane %v915_v11, 6 }
  0x73   : > { %v910_v18 = vsel %vm8706_vm7, %v901_v3, %v909_v6  ;;  %v1666_v22 = vsel %vm8851_vm10, %v6959_v63, %v1665_v52  ;;  %v923_v23 = vrot.slane %v921_v15, 5  ;;  %v931_v25 = vshrl.u32 %v6848_v7, 16 }
  0x74   : > { %v926_v59 = vrot.slane %v924_v16, 6  ;;  %v6855_v27 = vcombine.low %v900_v14, %v910_v18  ;;  %v1669_v29 = vsel %vm8851_vm10, %v1667_v1, %v1668_v34  ;;  %v918_v30 = vor.u32 %v917_v20, %v914_v19  ;;  %v9000_v14 = vld [vmem:[%s8678_s30 + $0x54] sm:$0xe]  ;;  %v6951_v16 = vld [vmem:[%s8678_s30 + $0x68] sm:$0x3] }
  0x75   : > { %v934_v31 = vshll.u32 %v6848_v7, 16  ;;  %v933_v36 = vrot.slane %v931_v25, 5  ;;  %v6960_v37 = vrot.slane %v6948_v4, 10  ;;  %v1672_v39 = vrot.slane %v8766_v10, 6 }
  0x76   : > { %v927_v33 = vor.u32 %v926_v59, %v923_v23  ;;  %v919_v41 = vrot.slane %v918_v30, 4  ;;  %v1675_v43 = vrot.slane %v6949_v21, 6  ;;  %v940_v45 = vshrl.u32 %v8974_v26, 16 }
  0x77   : > { %7754 = vmatpush3.bf16.xpose.msra.mxu0 %v1082_v9  ;;  %v936_v42 = vrot.slane %v934_v31, 6  ;;  %v6967_v46 = vcombine.low %v1666_v22, %v1669_v29  ;;  %v1674_v48 = vrot.slane %v1672_v39, 4  ;;  %v943_v49 = vshll.u32 %v8974_v26, 16  ;;  %v9005_v9 = vld [vmem:[%s8678_s30 + $0x58] sm:$0xf] }
  0x78   : > { %7755 = vmatprep.subr.bf16.mxu0 %v11419_v0  ;;  %v929_v24 = vrot.slane %v927_v33, 4  ;;  %v1085_v51 = vsel %vm601_vm1, %v6855_v27, 0  ;;  %v942_v52 = vrot.slane %v940_v45, 5  ;;  %v949_v54 = vshrl.u32 %v8980_v40, 16  ;;  %v6850_v22 = vld [vmem:[%s8678_s30 + $0x5c] sm:$0x3] }
  0x79   : > { %7836 = vmatpush3.bf16.xpose.msra.mxu1 %v1732_v12  ;;  %v937_v10 = vor.u32 %v936_v42, %v933_v36  ;;  %v1673_v55 = vsel %vm8851_vm10, %v6960_v37, %v1672_v39  ;;  %v945_v57 = vrot.slane %v943_v49, 6  ;;  %v952_v58 = vshll.u32 %v8980_v40, 16  ;;  %v6950_v12 = vld [vmem:[%s8678_s30 + $0x60] sm:$0xc]  ;;  %v6952_v49 = vld [vmem:[%s8678_s30 + $0x6c] sm:$0xc] }
  0x7a   : > { %7837 = vmatprep.subr.bf16.mxu1 %v11419_v0  ;;  %v959_v61 = vshrl.u32 %v6849_v44, 16  ;;  %v928_v63 = vsel %vm8706_vm7, %v919_v41, %v927_v33  ;;  %v1676_v1 = vsel %vm8851_vm10, %v1674_v48, %v1675_v43  ;;  %v951_v34 = vrot.slane %v949_v54, 5  ;;  %v9015_v41 = vld [vmem:[%s8678_s30 + $0x60] sm:$0xe]  ;;  %v9026_v54 = vld [vmem:[%s8678_s30 + $0x64] sm:$0xf] }
  0x7b   : > { %v962_v3 = vshll.u32 %v6849_v44, 16  ;;  %v938_v6 = vsel %vm8706_vm7, %v929_v24, %v937_v10  ;;  %v946_v7 = vor.u32 %v945_v57, %v942_v52  ;;  %v954_v8 = vrot.slane %v952_v58, 6 }
  0x7c   : > { %v961_v11 = vrot.slane %v959_v61, 5  ;;  %v1679_v4 = vrot.slane %v8785_v47, 6  ;;  %v1735_v18 = vsel %vm601_vm1, %v6967_v46, 0  ;;  %v6968_v19 = vcombine.low %v1673_v55, %v1676_v1 }
  0x7d   : > { %v964_v15 = vrot.slane %v962_v3, 6  ;;  %v947_v20 = vrot.slane %v946_v7, 4  ;;  %v955_v21 = vor.u32 %v954_v8, %v951_v34  ;;  %v6856_v23 = vcombine.low %v928_v63, %v938_v6  ;;  %v6851_v63 = vld [vmem:[%s8678_s30 + $0x68] sm:$0x3] }
  0x7e   : > { %v6961_v25 = vrot.slane %v6950_v12, 10  ;;  %v968_v27 = vshrl.u32 %v9000_v14, 16  ;;  %v1682_v30 = vrot.slane %v6951_v16, 6  ;;  %v971_v47 = vshll.u32 %v9000_v14, 16 }
  0x7f   : > { %7756 = vmatpush3.bf16.xpose.msra.mxu0 %v1085_v51  ;;  %v965_v59 = vor.u32 %v964_v15, %v961_v11  ;;  %v957_v29 = vrot.slane %v955_v21, 4  ;;  %v977_v31 = vshrl.u32 %v9005_v9, 16  ;;  %v1681_v33 = vrot.slane %v1679_v4, 4  ;;  %v6953_v15 = vld [vmem:[%s8678_s30 + $0x74] sm:$0x3] }
  0x80   : > { %7757 = vmatprep.subr.bf16.mxu0 %v11419_v0  ;;  %v970_v36 = vrot.slane %v968_v27, 5  ;;  %v980_v37 = vshll.u32 %v9005_v9, 16  ;;  %v987_v39 = vshrl.u32 %v6850_v22, 16  ;;  %v956_v42 = vsel %vm8706_vm7, %v947_v20, %v955_v21 }
  0x81   : > { %7838 = vmatpush3.bf16.xpose.msra.mxu1 %v1735_v18  ;;  %v973_v43 = vrot.slane %v971_v47, 6  ;;  %v979_v44 = vrot.slane %v977_v31, 5  ;;  %v966_v45 = vsel %vm8706_vm7, %v957_v29, %v965_v59  ;;  %v990_v48 = vshll.u32 %v6850_v22, 16  ;;  %v9047_v47 = vld [vmem:[%s8678_s30 + $0x6c] sm:$0xe] }
  0x82   : > { %7839 = vmatprep.subr.bf16.mxu1 %v11419_v0  ;;  %v982_v46 = vrot.slane %v980_v37, 6  ;;  %v989_v24 = vrot.slane %v987_v39, 5  ;;  %v1088_v51 = vsel %vm601_vm1, %v6856_v23, 0  ;;  %v1738_v10 = vsel %vm601_vm1, %v6968_v19, 0  ;;  %v9050_v39 = vld [vmem:[%s8678_s30 + $0x70] sm:$0xf] }
  0x83   : > { %v974_v52 = vor.u32 %v973_v43, %v970_v36  ;;  %v1680_v55 = vsel %vm8851_vm10, %v6961_v25, %v1679_v4  ;;  %v1683_v57 = vsel %vm8851_vm10, %v1681_v33, %v1682_v30  ;;  %v992_v61 = vrot.slane %v990_v48, 6  ;;  %v6852_v43 = vld [vmem:[%s8678_s30 + $0x74] sm:$0x3] }
  0x84   : > { %v983_v58 = vor.u32 %v982_v46, %v979_v44  ;;  %v6857_v1 = vcombine.low %v956_v42, %v966_v45  ;;  %v1686_v3 = vrot.slane %v8808_v28, 6  ;;  %v996_v6 = vshrl.u32 %v9015_v41, 16  ;;  %v6954_v45 = vld [vmem:[%s8678_s30 + $0x78] sm:$0xc] }
  0x85   : > { %v975_v34 = vrot.slane %v974_v52, 4  ;;  %v993_v8 = vor.u32 %v992_v61, %v989_v24  ;;  %v999_v11 = vshll.u32 %v9015_v41, 16  ;;  %v1005_v12 = vshrl.u32 %v9026_v54, 16  ;;  %v6955_v61 = vld [vmem:[%s8678_s30 + $0x80] sm:$0x3] }
  0x86   : > { %v985_v7 = vrot.slane %v983_v58, 4  ;;  %v6962_v16 = vrot.slane %v6952_v49, 10  ;;  %v998_v4 = vrot.slane %v996_v6, 5  ;;  %v1008_v18 = vshll.u32 %v9026_v54, 16 }
  0x87   : > { %7758 = vmatpush3.bf16.xpose.msra.mxu0 %v1088_v51  ;;  %v6969_v19 = vcombine.low %v1680_v55, %v1683_v57  ;;  %v1001_v28 = vrot.slane %v999_v11, 6  ;;  %v1007_v20 = vrot.slane %v1005_v12, 5  ;;  %v1091_v21 = vsel %vm601_vm1, %v6857_v1, 0 }
  0x88   : > { %7759 = vmatprep.subr.bf16.mxu0 %v11419_v0  ;;  %v1010_v22 = vrot.slane %v1008_v18, 6  ;;  %v1015_v23 = vshrl.u32 %v6851_v63, 16  ;;  %v1018_v59 = vshll.u32 %v6851_v63, 16  ;;  %v984_v25 = vsel %vm8706_vm7, %v975_v34, %v983_v58  ;;  %v9073_v18 = vld [vmem:[%s8678_s30 + $0x34] sm:$0xf] }
  0x89   : > { %7840 = vmatpush3.bf16.xpose.msra.mxu1 %v1738_v10  ;;  %v994_v27 = vsel %vm8706_vm7, %v985_v7, %v993_v8  ;;  %v1688_v29 = vrot.slane %v1686_v3, 4  ;;  %v1689_v30 = vrot.slane %v6953_v15, 6  ;;  %v1002_v31 = vor.u32 %v1001_v28, %v998_v4 }
  0x8a   : > { %7841 = vmatprep.subr.bf16.mxu1 %v11419_v0  ;;  %v1011_v33 = vor.u32 %v1010_v22, %v1007_v20  ;;  %v1017_v36 = vrot.slane %v1015_v23, 5  ;;  %v1020_v37 = vrot.slane %v1018_v59, 6  ;;  %v1741_v42 = vsel %vm601_vm1, %v6969_v19, 0 }
  0x8b   : > { %v1687_v44 = vsel %vm8851_vm10, %v6962_v16, %v1686_v3  ;;  %v1693_v46 = vrot.slane %v8829_v5, 6  ;;  %v1024_v24 = vshrl.u32 %v9047_v47, 16  ;;  %v1027_v48 = vshll.u32 %v9047_v47, 16 }
  0x8c   : > { %v6858_v49 = vcombine.low %v984_v25, %v994_v27  ;;  %v1690_v51 = vsel %vm8851_vm10, %v1688_v29, %v1689_v30  ;;  %v1033_v10 = vshrl.u32 %v9050_v39, 16  ;;  %v1036_v52 = vshll.u32 %v9050_v39, 16  ;;  %v9083_v29 = vld [vmem:[%s8678_s30 + $0x30] sm:$0xe]  ;;  %v6978_v30 = vld [vmem:[%s8678_s30 + $0x38] sm:$0x1] }
  0x8d   : > { %v1003_v55 = vrot.slane %v1002_v31, 4  ;;  %v1013_v57 = vrot.slane %v1011_v33, 4  ;;  %v1021_v58 = vor.u32 %v1020_v37, %v1017_v36  ;;  %v1026_v5 = vrot.slane %v1024_v24, 5 }
  0x8e   : > { %v1029_v63 = vrot.slane %v1027_v48, 6  ;;  %v1035_v1 = vrot.slane %v1033_v10, 5  ;;  %v1038_v34 = vrot.slane %v1036_v52, 6  ;;  %v1043_v3 = vshrl.u32 %v6852_v43, 16  ;;  %v6814_v10 = vld [vmem:[%s8678_s30 + $0x20] sm:$0x1] }
  0x8f   : > { %7760 = vmatpush3.bf16.xpose.msra.mxu0 %v1091_v21  ;;  %v6970_v6 = vcombine.low %v1687_v44, %v1690_v51  ;;  %v1046_v7 = vshll.u32 %v6852_v43, 16  ;;  %v6963_v8 = vrot.slane %v6954_v45, 10  ;;  %v1695_v11 = vrot.slane %v1693_v46, 4 }
  0x90   : > { %7761 = vmatprep.subr.bf16.mxu0 %v11419_v0  ;;  %v1696_v12 = vrot.slane %v6955_v61, 6  ;;  %v1094_v15 = vsel %vm601_vm1, %v6858_v49, 0  ;;  %v1012_v16 = vsel %vm8706_vm7, %v1003_v55, %v1011_v33  ;;  %v1022_v4 = vsel %vm8706_vm7, %v1013_v57, %v1021_v58  ;;  %v9106_v61 = vld [vmem:[%s8678_s30 + $0x3c] sm:$0xe] }
  0x91   : > { %7842 = vmatpush3.bf16.xpose.msra.mxu1 %v1741_v42  ;;  %v1030_v19 = vor.u32 %v1029_v63, %v1026_v5  ;;  %v1039_v28 = vor.u32 %v1038_v34, %v1035_v1  ;;  %v1045_v20 = vrot.slane %v1043_v3, 5  ;;  %v1048_v21 = vrot.slane %v1046_v7, 6  ;;  %v9088_v42 = vld [vmem:[%s8678_s30 + $0x40] sm:$0xf]  ;;  %v6981_v5 = vld [vmem:[%s8678_s30 + $0x44] sm:$0x1] }
  0x92   : > { %7843 = vmatprep.subr.bf16.mxu1 %v11419_v0  ;;  %v1744_v22 = vsel %vm601_vm1, %v6970_v6, 0  ;;  %v1694_v23 = vsel %vm8851_vm10, %v6963_v8, %v1693_v46  ;;  %v1697_v59 = vsel %vm8851_vm10, %v1695_v11, %v1696_v12  ;;  %v1846_v25 = vrot.slane %v9073_v18, 5  ;;  %v9114_v11 = vld [vmem:[%s8678_s30 + $0x4c] sm:$0xf]  ;;  %v6939_v12 = vld [vmem:[%s11414_s1 + $0x10] sm:$0xf] }
  0x93   : > { %v6859_v27 = vcombine.low %v1012_v16, %v1022_v4  ;;  %v1031_v31 = vrot.slane %v1030_v19, 4  ;;  %v1041_v33 = vrot.slane %v1039_v28, 4  ;;  %v1049_v36 = vor.u32 %v1048_v21, %v1045_v20  ;;  %v6817_v19 = vld [vmem:[%s8678_s30 + $0x2c] sm:$0x1] }
  0x94   : > { %v6971_v37 = vcombine.low %v1694_v23, %v1697_v59  ;;  %v7000_v43 = vrot.slane %v9083_v29, 9  ;;  %v1848_v44 = vrot.slane %v1846_v25, 4  ;;  %v1849_v45 = vrot.slane %v6978_v30, 5  ;;  %v9134_v23 = vld [vmem:[%s8678_s30 + $0x48] sm:$0xe] }
  0x95   : > { %v1097_v46 = vsel %vm601_vm1, %v6859_v27, 0  ;;  %v1040_v24 = vsel %vm8706_vm7, %v1031_v31, %v1039_v28  ;;  %v1050_v48 = vsel %vm8706_vm7, %v1041_v33, %v1049_v36  ;;  %v763_v49 = vrot.slane %v8863_v62, 5  ;;  %v6844_v31 = vld [vmem:[%s11414_s1 + $0x4] sm:$0xf] }
  0x96   : > { %v1747_v51 = vsel %vm601_vm1, %v6971_v37, 0  ;;  %v1847_v52 = vsel %vm8680_vm4, %v7000_v43, %v1846_v25  ;;  %v1850_v55 = vsel %vm8680_vm4, %v1848_v44, %v1849_v45  ;;  %v1853_v57 = vrot.slane %v9088_v42, 5  ;;  %v9147_v43 = vld [vmem:[%s8678_s30 + $0x58] sm:$0xf] }
  0x97   : > { %7762 = vmatpush3.bf16.xpose.msra.mxu0 %v1094_v15  ;;  %v6860_v58 = vcombine.low %v1040_v24, %v1050_v48  ;;  %v6836_v62 = vrot.slane %v8857_v56, 9  ;;  %v765_v63 = vrot.slane %v763_v49, 4  ;;  %v766_v1 = vrot.slane %v6814_v10, 5  ;;  %v6820_v48 = vld [vmem:[%s8678_s30 + $0x38] sm:$0x1] }
  0x98   : > { %7763 = vmatprep.subr.bf16.mxu0 %v11419_v0  ;;  %v7008_v34 = vcombine.low %v1847_v52, %v1850_v55  ;;  %v7001_v3 = vrot.slane %v9106_v61, 9  ;;  %v1855_v6 = vrot.slane %v1853_v57, 4  ;;  %v1856_v7 = vrot.slane %v6981_v5, 5  ;;  %v9166_v52 = vld [vmem:[%s8678_s30 + $0x54] sm:$0xe] }
  0x99   : > { %7844 = vmatpush3.bf16.xpose.msra.mxu1 %v1744_v22  ;;  %v1100_v8 = vsel %vm601_vm1, %v6860_v58, 0  ;;  %v764_v56 = vsel %vm8680_vm4, %v6836_v62, %v763_v49  ;;  %v767_v15 = vsel %vm8680_vm4, %v765_v63, %v766_v1  ;;  %v770_v16 = vrot.slane %v8890_v38, 5  ;;  %v6984_v38 = vld [vmem:[%s8678_s30 + $0x50] sm:$0x1]  ;;  %v6987_v55 = vld [vmem:[%s8678_s30 + $0x5c] sm:$0x1] }
  0x9a   : > { %7845 = vmatprep.subr.bf16.mxu1 %v11419_v0  ;;  %v1928_v4 = vsel %vm601_vm1, %v7008_v34, 0  ;;  %v1854_v28 = vsel %vm8680_vm4, %v7001_v3, %v1853_v57  ;;  %v1857_v20 = vsel %vm8680_vm4, %v1855_v6, %v1856_v7  ;;  %v1860_v21 = vrot.slane %v9114_v11, 5  ;;  %v9175_v7 = vld [vmem:[%s8678_s30 + $0x64] sm:$0xf] }
  0x9b   : > { %v6862_v22 = vcombine.low %v764_v56, %v767_v15  ;;  %v6837_v59 = vrot.slane %v8886_v32, 9  ;;  %v772_v25 = vrot.slane %v770_v16, 4  ;;  %v773_v27 = vrot.slane %v6817_v19, 5 }
  0x9c   : > { %v7009_v30 = vcombine.low %v1854_v28, %v1857_v20  ;;  %v7002_v33 = vrot.slane %v9134_v23, 9  ;;  %v1862_v36 = vrot.slane %v1860_v21, 4  ;;  %v1863_v37 = vrot.slane %v6984_v38, 5  ;;  %v9195_v38 = vld [vmem:[%s8678_s30 + $0x70] sm:$0xf] }
  0x9d   : > { %v1170_v32 = vsel %vm601_vm1, %v6862_v22, 0  ;;  %v771_v44 = vsel %vm8680_vm4, %v6837_v59, %v770_v16  ;;  %v774_v45 = vsel %vm8680_vm4, %v772_v25, %v773_v27  ;;  %v1867_v10 = vrot.slane %v9147_v43, 5  ;;  %v9188_v16 = vld [vmem:[%s8678_s30 + $0x60] sm:$0xe]  ;;  %v6990_v22 = vld [vmem:[%s8678_s30 + $0x68] sm:$0x1] }
  0x9e   : > { %v1931_v24 = vsel %vm601_vm1, %v7009_v30, 0  ;;  %v1861_v49 = vsel %vm8680_vm4, %v7002_v33, %v1860_v21  ;;  %v6838_v57 = vrot.slane %v8915_v13, 9  ;;  %v780_v5 = vrot.slane %v6820_v48, 5 }
  0x9f   : > { %7764 = vmatpush3.bf16.xpose.msra.mxu0 %v1097_v46  ;;  %v777_v46 = vrot.slane %v8919_v17, 5  ;;  %v6863_v17 = vcombine.low %v771_v44, %v774_v45  ;;  %v7003_v63 = vrot.slane %v9166_v52, 9  ;;  %v1869_v1 = vrot.slane %v1867_v10, 4  ;;  %v6993_v45 = vld [vmem:[%s8678_s30 + $0x74] sm:$0x1] }
  0xa0   : > { %7765 = vmatprep.subr.bf16.mxu0 %v11419_v0  ;;  %v1870_v34 = vrot.slane %v6987_v55, 5  ;;  %v784_v6 = vrot.slane %v8952_v60, 5  ;;  %v6839_v28 = vrot.slane %v8949_v53, 9  ;;  %v7004_v25 = vrot.slane %v9188_v16, 9 }
  0xa1   : > { %7846 = vmatpush3.bf16.xpose.msra.mxu1 %v1747_v51  ;;  %v1864_v51 = vsel %vm8680_vm4, %v1862_v36, %v1863_v37  ;;  %v779_v58 = vrot.slane %v777_v46, 4  ;;  %v1173_v3 = vsel %vm601_vm1, %v6863_v17, 0  ;;  %v778_v13 = vsel %vm8680_vm4, %v6838_v57, %v777_v46 }
  0xa2   : > { %7851 = vmatprep.subr.bf16.mxu1 %v11419_v0  ;;  %v7010_v62 = vcombine.low %v1861_v49, %v1864_v51  ;;  %v1868_v15 = vsel %vm8680_vm4, %v7003_v63, %v1867_v10  ;;  %v1871_v60 = vsel %vm8680_vm4, %v1869_v1, %v1870_v34  ;;  %v786_v20 = vrot.slane %v784_v6, 4  ;;  %v9216_v49 = vld [vmem:[%s8678_s30 + $0x7c] sm:$0xf]  ;;  %v9228_v63 = vld [vmem:[%s8678_s30 + $0x78] sm:$0xe] }
  0xa3   : > { %v7011_v59 = vcombine.low %v1868_v15, %v1871_v60  ;;  %v1877_v30 = vrot.slane %v6990_v22, 5  ;;  %v791_v33 = vrot.slane %v8980_v40, 5  ;;  %v785_v36 = vsel %vm8680_vm4, %v6839_v28, %v784_v6  ;;  %v6996_v6 = vld [vmem:[%s8678_s30 + $0x80] sm:$0x1]  ;;  %v6555_v28 = vld [vmem:[%s11416_s3 + $0x18] sm:$0xff] }
  0xa4   : > { %v1934_v56 = vsel %vm601_vm1, %v7010_v62, 0  ;;  %v1881_v44 = vrot.slane %v9195_v38, 5  ;;  %v6840_v40 = vrot.slane %v8974_v26, 9  ;;  %v6554_v26 = vld [vmem:[%s11416_s3 + $0x10] sm:$0xff]  ;;  %v6829_v62 = vld [vmem:[%s8678_s30 + $0x5c] sm:$0x1] }
  0xa5   : > { %v1937_v46 = vsel %vm601_vm1, %v7011_v59, 0  ;;  %v793_v17 = vrot.slane %v791_v33, 4  ;;  %v1888_v1 = vrot.slane %v9216_v49, 5 }
  0xa6   : > { %v1883_v57 = vrot.slane %v1881_v44, 4 }
  0xa7   : > { %7766 = vmatpush3.bf16.xpose.msra.mxu0 %v1100_v8  ;;  %v781_v8 = vsel %vm8680_vm4, %v779_v58, %v780_v5  ;;  %v1884_v58 = vrot.slane %v6993_v45, 5  ;;  %v798_v5 = vrot.slane %v9005_v9, 5  ;;  %v2006_v45 = vshll.u32 %v9083_v29, 16 }
  0xa8   : > { %7848 = vmatmul.mubr.msk.bf16.vlgmr.msra.gmra.mrb[0].mxu1 %vm601_vm1, %v6939_v12  ;;  %7771 = vmatprep.subr.bf16.mxu0 %v11419_v0  ;;  %v6823_v12 = vld [vmem:[%s8678_s30 + $0x44] sm:$0x1]  ;;  %v6864_v19 = vcombine.low %v778_v13, %v781_v8  ;;  %v8556_v13 = vmov 0  }
  0xa9   : > { %7852 = vmatpush3.bf16.xpose.msra.mxu1 %v1928_v4  ;;  %7867 = vmatprep.mubr.msk.bf16.mxu1 %vm8555_vm0, %v11419_v0  ;;  %v1874_v4 = vrot.slane %v9175_v7, 5  ;;  %v787_v21 = vrot.slane %v6823_v12, 5  ;;  %v1885_v15 = vsel %vm8680_vm4, %v1883_v57, %v1884_v58  ;;  %v800_v60 = vrot.slane %v798_v5, 4 }
  0xaa   : > { %7853 = vmatprep.subr.bf16.mxu1 %v11419_v0  ;;  %v1176_v53 = vsel %vm601_vm1, %v6864_v19, 0  ;;  %8401 = vset.pattern.permute.xlu1 %v8556_v13  ;;  %v7006_v19 = vrot.slane %v9228_v63, 9 }
  0xab   : > { %v1876_v27 = vrot.slane %v1874_v4, 4  ;;  %v788_v37 = vsel %vm8680_vm4, %v786_v20, %v787_v21  ;;  %6568 = vperm.xlu1 %8401, %v6554_v26   ;;  %8400 = vset.pattern.permute.xlu0 %v8556_v13  ;;  %v1890_v20 = vrot.slane %v1888_v1, 4  ;;  %v1891_v21 = vrot.slane %v6996_v6, 5 }
  0xac   : > { %v6865_v51 = vcombine.low %v785_v36, %v788_v37  ;;  %v9267_v37 = vld [vmem:[%s8678_s30 + $0x84] sm:$0xe]  ;;  %v2008_v26 = vrot.slane %v2006_v45, 6  ;;  %v2031_v6 = vshrl.u32 %v9106_v61, 16  ;;  %v2034_v13 = vshll.u32 %v9106_v61, 16 }
  0xad   : > { %v1878_v10 = vsel %vm8680_vm4, %v1876_v27, %v1877_v30  ;;  %v9255_v30 = vsel %vm8680_vm4, %v7006_v19, %v1888_v1  ;;  %v9264_v36 = vsel %vm8680_vm4, %v1890_v20, %v1891_v21  ;;  %v7007_v58 = vrot.slane %v9267_v37, 9 }
  0xae   : > { %7768 = vmatmul.mubr.msk.bf16.vlgmr.msra.gmra.mrb[4].mxu0 %vm601_vm1, %v6844_v31  ;;  %v6826_v31 = vld [vmem:[%s8678_s30 + $0x50] sm:$0x1]  ;;  %v1179_v9 = vsel %vm601_vm1, %v6865_v51, 0  ;;  %v2040_v19 = vshrl.u32 %v9088_v42, 16  ;;  %v2043_v61 = vshll.u32 %v9088_v42, 16 }
  0xaf   : > { %7772 = vmatpush3.bf16.xpose.msra.mxu0 %v1170_v32  ;;  %7787 = vmatprep.mubr.msk.bf16.mxu0 %vm8555_vm0, %v11419_v0  ;;  %v9207_v32 = vld [vmem:[%s8678_s30 + $0x6c] sm:$0xe]  ;;  %v794_v48 = vrot.slane %v6826_v31, 5  ;;  %v6832_v31 = vld [vmem:[%s8678_s30 + $0x68] sm:$0x1] }
  0xb0   : > { %7773 = vmatprep.subr.bf16.mxu0 %v11419_v0  ;;  %v7005_v55 = vrot.slane %v9207_v32, 9  ;;  %6573 = vperm.xlu1 %8401, %v6555_v28   ;;  %v6843_v28 = vrot.slane %v9047_v47, 9  ;;  %v2042_v45 = vrot.slane %v2040_v19, 5  ;;  %v2062_v19 = vshll.u32 %v9134_v23, 16 }
  0xb1   : > { %7854 = vmatpush3.bf16.xpose.msra.mxu1 %v1931_v24  ;;  %v1875_v24 = vsel %vm8680_vm4, %v7004_v25, %v1874_v4  ;;  %v795_v8 = vsel %vm8680_vm4, %v793_v17, %v794_v48  ;;  %v801_v4 = vrot.slane %v6829_v62, 5 }
  0xb2   : > { %7855 = vmatprep.subr.bf16.mxu1 %v11419_v0  ;;  %v7012_v34 = vcombine.low %v1875_v24, %v1878_v10  ;;  %v1882_v12 = vsel %vm8680_vm4, %v7005_v55, %v1881_v44  ;;  %v2003_v44 = vshrl.u32 %v9083_v29, 16  ;;  %v9275_v24 = vld [vmem:[%s8678_s30 + $0x38] sm:$0x3]  ;;  %v808_v10 = vrot.slane %v6832_v31, 5 }
  0xb3   : > { %v7013_v59 = vcombine.low %v1882_v12, %v1885_v15  ;;  %v802_v27 = vsel %vm8680_vm4, %v800_v60, %v801_v4  ;;  %v7014_v29 = vcombine.low %v9255_v30, %v9264_v36  ;;  %v2022_v1 = vshrl.u32 %v9275_v24, 16  ;;  %v6835_v4 = vld [vmem:[%s8678_s30 + $0x74] sm:$0x1]  ;;  %v6872_v30 = vld [vmem:[%s8678_s30 + $0x18] sm:$0xc] }
  0xb4   : > { %v2033_v31 = vrot.slane %v2031_v6, 5 }
  0xb5   : > { %v1943_v51 = vsel %vm601_vm1, %v7013_v59, 0  ;;  %v2024_v21 = vrot.slane %v2022_v1, 5  ;;  %v9304_v59 = vld [vmem:[%s8678_s30 + $0x44] sm:$0x3] }
  0xb7   : > { %7774 = vmatpush3.bf16.xpose.msra.mxu0 %v1173_v3  ;;  %v792_v3 = vsel %vm8680_vm4, %v6840_v40, %v791_v33  ;;  %v6842_v33 = vrot.slane %v9015_v41, 9  ;;  %v805_v41 = vrot.slane %v9026_v54, 5  ;;  %v2015_v40 = vshll.u32 %v9073_v18, 16  ;;  %v6999_v54 = vld [vmem:[%s8678_s30 + $0x8c] sm:$0x1] }
  0xb8   : > { %7775 = vmatprep.subr.bf16.mxu0 %v11419_v0  ;;  %v6866_v22 = vcombine.low %v792_v3, %v795_v8  ;;  %v2025_v3 = vshll.u32 %v9275_v24, 16  ;;  %v1898_v12 = vrot.slane %v6999_v54, 5 }
  0xb9   : > { %7856 = vmatpush3.bf16.xpose.msra.mxu1 %v1934_v56  ;;  %v6841_v56 = vrot.slane %v9000_v14, 9  ;;  %v1940_v14 = vsel %vm601_vm1, %v7012_v34, 0  ;;  %v9285_v57 = vsel %vm8680_vm4, %v6842_v33, %v805_v41  ;;  %v2017_v34 = vrot.slane %v2015_v40, 6 }
  0xba   : > { %7857 = vmatprep.subr.bf16.mxu1 %v11419_v0  ;;  %v1182_v48 = vsel %vm601_vm1, %v6866_v22, 0  ;;  %v2036_v33 = vrot.slane %v2034_v13, 6  ;;  %v2053_v40 = vshll.u32 %v9304_v59, 16 }
  0xbb   : > { %v799_v25 = vsel %vm8680_vm4, %v6841_v56, %v798_v5  ;;  %v2005_v5 = vrot.slane %v2003_v44, 5  ;;  %v812_v56 = vrot.slane %v9050_v39, 5  ;;  %v815_v44 = vrot.slane %v6835_v4, 5 }
  0xbc   : > { %v6867_v55 = vcombine.low %v799_v25, %v802_v27  ;;  %v2027_v27 = vrot.slane %v2025_v3, 6  ;;  %v2055_v13 = vrot.slane %v2053_v40, 6  ;;  %v2059_v4 = vshrl.u32 %v9134_v23, 16 }
  0xbd   : > { %v2009_v20 = vor.u32 %v2008_v26, %v2005_v5  ;;  %v814_v36 = vrot.slane %v812_v56, 4  ;;  %v2037_v26 = vor.u32 %v2036_v33, %v2033_v31 }
  0xbe   : > { %v1185_v15 = vsel %vm601_vm1, %v6867_v55, 0  ;;  %v8429_v55 = vld [vmem:[%s8678_s30 + $0x20] sm:$0x3] }
  0xbf   : > { %7776 = vmatpush3.bf16.xpose.msra.mxu0 %v1176_v53  ;;  %v9260_v53 = vld [vmem:[%s8678_s30 + $0x88] sm:$0xf]  ;;  %v1267_v54 = vrot.slane %v8429_v55, 6 }
  0xc0   : > { %7777 = vmatprep.subr.bf16.mxu0 %v11419_v0  ;;  %v1895_v17 = vrot.slane %v9260_v53, 5 }
  0xc1   : > { %7858 = vmatpush3.bf16.xpose.msra.mxu1 %v1937_v46  ;;  %v2012_v46 = vshrl.u32 %v9073_v18, 16 }
  0xc2   : > { %7859 = vmatprep.subr.bf16.mxu1 %v11419_v0  ;;  %v1897_v8 = vrot.slane %v1895_v17, 4  ;;  %v1896_v60 = vsel %vm8680_vm4, %v7007_v58, %v1895_v17  ;;  %v1946_v58 = vsel %vm601_vm1, %v7014_v29, 0  ;;  %v816_v29 = vsel %vm8680_vm4, %v814_v36, %v815_v44 }
  0xc3   : > { %v2014_v62 = vrot.slane %v2012_v46, 5  ;;  %v2045_v46 = vrot.slane %v2043_v61, 6  ;;  %v2068_v61 = vshrl.u32 %v9114_v11, 16  ;;  %v2061_v44 = vrot.slane %v2059_v4, 5 }
  0xc4   : > { %v1899_v47 = vsel %vm8680_vm4, %v1897_v8, %v1898_v12 }
  0xc5   : > { %v2018_v25 = vor.u32 %v2017_v34, %v2014_v62  ;;  %v7015_v1 = vcombine.low %v1896_v60, %v1899_v47  ;;  %v813_v34 = vsel %vm8680_vm4, %v6843_v28, %v812_v56  ;;  %v2046_v3 = vor.u32 %v2045_v46, %v2042_v45  ;;  %v8430_v60 = vld [vmem:[%s8678_s30 + $0x28] sm:$0xf]  ;;  %v8431_v47 = vld [vmem:[%s8678_s30 + $0x2c] sm:$0x3] }
  0xc6   : > { %v2038_v56 = vrot.slane %v2037_v26, 4  ;;  %v1271_v2 = vrot.slane %v8430_v60, 6  ;;  %v2071_v28 = vshll.u32 %v9114_v11, 16  ;;  %v1274_v36 = vrot.slane %v8431_v47, 6 }
  0xc7   : > { %7778 = vmatpush3.bf16.xpose.msra.mxu0 %v1179_v9  ;;  %v807_v9 = vrot.slane %v805_v41, 4  ;;  %v2050_v41 = vshrl.u32 %v9304_v59, 16  ;;  %v2020_v5 = vrot.slane %v2018_v25, 4  ;;  %v2064_v11 = vrot.slane %v2062_v19, 6  ;;  %v6875_v19 = vld [vmem:[%s8678_s30 + $0x3c] sm:$0xc] }
  0xc8   : > { %7779 = vmatprep.subr.bf16.mxu0 %v11419_v0  ;;  %v1273_v23 = vrot.slane %v1271_v2, 4  ;;  %v2070_v45 = vrot.slane %v2068_v61, 5  ;;  %v2073_v46 = vrot.slane %v2071_v28, 6  ;;  %v8433_v61 = vld [vmem:[%s8678_s30 + $0x40] sm:$0xf] }
  0xc9   : > { %7860 = vmatpush3.bf16.xpose.msra.mxu1 %v1940_v14  ;;  %v8428_v14 = vld [vmem:[%s8678_s30 + $0x1c] sm:$0xf]  ;;  %v809_v42 = vsel %vm8680_vm4, %v807_v9, %v808_v10  ;;  %v2028_v10 = vor.u32 %v2027_v27, %v2024_v21  ;;  %v2052_v6 = vrot.slane %v2050_v41, 5  ;;  %v1949_v21 = vsel %vm601_vm1, %v7015_v1, 0 }
  0xca   : > { %7861 = vmatprep.subr.bf16.mxu1 %v11419_v0  ;;  %v1264_v22 = vrot.slane %v8428_v14, 6  ;;  %v6868_v62 = vcombine.low %v9285_v57, %v809_v42  ;;  %v2048_v14 = vrot.slane %v2046_v3, 4  ;;  %v6869_v27 = vcombine.low %v813_v34, %v816_v29  ;;  %v8432_v29 = vld [vmem:[%s8678_s30 + $0x34] sm:$0xf] }
  0xcb   : > { %v2029_v12 = vsel %vm8706_vm7, %v2020_v5, %v2028_v10  ;;  %v2047_v42 = vsel %vm8706_vm7, %v2038_v56, %v2046_v3  ;;  %v9371_v34 = vor.u32 %v2073_v46, %v2070_v45  ;;  %v1285_v28 = vrot.slane %v8433_v61, 6  ;;  %v8435_v46 = vld [vmem:[%s8678_s30 + $0x44] sm:$0x3] }
  0xcc   : > { %v1266_v17 = vrot.slane %v1264_v22, 4  ;;  %v1191_v55 = vsel %vm601_vm1, %v6869_v27, 0  ;;  %v6883_v45 = vrot.slane %v6875_v19, 10  ;;  %vm5406_vm4 = vcmask 1044484  }
  0xcd   : > { %vm10269_vm5 = vmor %vm5405_vm3, %vm5406_vm4 }
  0xce   : > { %v1268_v8 = vsel %vm8851_vm10, %v1266_v17, %v1267_v54  ;;  %v2090_v17 = vshll.u32 %v9166_v52, 16  ;;  %v2096_v54 = vshrl.u32 %v9147_v43, 16 }
  0xcf   : > { %7780 = vmatpush3.bf16.xpose.msra.mxu0 %v1182_v48  ;;  %v2010_v48 = vrot.slane %v2009_v20, 4  ;;  %v1188_v20 = vsel %vm601_vm1, %v6868_v62, 0  ;;  %v9369_v62 = vld [vmem:[%s8678_s30 + $0x5c] sm:$0x3] }
  0xd0   : > { %7781 = vmatprep.subr.bf16.mxu0 %v11419_v0  ;;  %v2098_v56 = vrot.slane %v2096_v54, 5  ;;  %v2106_v60 = vshrl.u32 %v9369_v62, 16 }
  0xd1   : > { %7862 = vmatpush3.bf16.xpose.msra.mxu1 %v1943_v51  ;;  %v6880_v51 = vrot.slane %v6872_v30, 10  ;;  %v2019_v9 = vsel %vm8706_vm7, %v2010_v48, %v2018_v25  ;;  %v9340_v25 = vld [vmem:[%s8678_s30 + $0x50] sm:$0x3] }
  0xd2   : > { %7863 = vmatprep.subr.bf16.mxu1 %v11419_v0  ;;  %v7026_v30 = vcombine.low %v2019_v9, %v2029_v12  ;;  %v2078_v41 = vshrl.u32 %v9340_v25, 16  ;;  %v2081_v48 = vshll.u32 %v9340_v25, 16  ;;  %v1278_v9 = vrot.slane %v8432_v29, 6  ;;  %v6973_v12 = vld [vmem:[%s11414_s1 + $0x14] sm:$0xf] }
  0xd3   : > { %v1265_v57 = vsel %vm8851_vm10, %v6880_v51, %v1264_v22  ;;  %v2056_v22 = vor.u32 %v2055_v13, %v2052_v6  ;;  %v2087_v51 = vshrl.u32 %v9166_v52, 16  ;;  %v9366_v52 = vsel %vm8851_vm10, %v1273_v23, %v1274_v36  ;;  %v6874_v6 = vld [vmem:[%s8678_s30 + $0x30] sm:$0xc]  ;;  %v9391_v36 = vld [vmem:[%s8678_s30 + $0x68] sm:$0x3] }
  0xd4   : > { %v6888_v31 = vcombine.low %v1265_v57, %v1268_v8  ;;  %v2254_v5 = vsel %vm601_vm1, %v7026_v30, 0  ;;  %v2080_v3 = vrot.slane %v2078_v41, 5  ;;  %v2083_v13 = vrot.slane %v2081_v48, 6 }
  0xd5   : > { %v2057_v40 = vsel %vm8706_vm7, %v2048_v14, %v2056_v22  ;;  %v2089_v57 = vrot.slane %v2087_v51, 5  ;;  %v2092_v8 = vrot.slane %v2090_v17, 6  ;;  %v6882_v4 = vrot.slane %v6874_v6, 10  ;;  %v8434_v22 = vld [vmem:[%s8678_s30 + $0x38] sm:$0x3] }
  0xd6   : > { %v9358_v10 = vsel %vm601_vm1, %v6888_v31, 0  ;;  %v7027_v1 = vcombine.low %v2047_v42, %v2057_v40  ;;  %v1281_v27 = vrot.slane %v8434_v22, 6  ;;  %v2124_v30 = vshrl.u32 %v9175_v7, 16  ;;  %v705_v51 = vld [vmem:[%s11414_s1] sm:$0xf] }
  0xd7   : > { %7782 = vmatpush3.bf16.xpose.msra.mxu0 %v1185_v15  ;;  %v6873_v15 = vld [vmem:[%s8678_s30 + $0x24] sm:$0xc]  ;;  %v2127_v31 = vshll.u32 %v9175_v7, 16  ;;  %v2084_v42 = vor.u32 %v2083_v13, %v2080_v3  ;;  %v1280_v23 = vrot.slane %v1278_v9, 4  ;;  %v2093_v47 = vor.u32 %v2092_v8, %v2089_v57 }
  0xd8   : > { %7783 = vmatprep.subr.bf16.mxu0 %v11419_v0  ;;  %v6881_v33 = vrot.slane %v6873_v15, 10  ;;  %v1287_v7 = vrot.slane %v1285_v28, 4  ;;  %v1288_v41 = vrot.slane %v8435_v46, 6  ;;  %v2126_v17 = vrot.slane %v2124_v30, 5  ;;  %v8437_v30 = vld [vmem:[%s8678_s30 + $0x50] sm:$0x3] }
  0xd9   : > { %7864 = vmatpush3.bf16.xpose.msra.mxu1 %v1946_v58  ;;  %v2099_v58 = vshll.u32 %v9147_v43, 16  ;;  %v2065_v43 = vor.u32 %v2064_v11, %v2061_v44  ;;  %v2108_v44 = vrot.slane %v2106_v60, 5  ;;  %v2134_v54 = vshrl.u32 %v9391_v36, 16 }
  0xda   : > { %7865 = vmatprep.subr.bf16.mxu1 %v11419_v0  ;;  %v9362_v26 = vsel %vm8851_vm10, %v6881_v33, %v1271_v2  ;;  %v2109_v2 = vshll.u32 %v9369_v62, 16  ;;  %v2076_v33 = vrot.slane %v9371_v34, 4  ;;  %v1279_v3 = vsel %vm8851_vm10, %v6882_v4, %v1278_v9  ;;  %v8436_v9 = vld [vmem:[%s8678_s30 + $0x4c] sm:$0xf]  ;;  %v6876_v4 = vld [vmem:[%s8678_s30 + $0x48] sm:$0xc] }
  0xdb   : > { %v2101_v15 = vrot.slane %v2099_v58, 6  ;;  %v2066_v14 = vrot.slane %v2065_v43, 4  ;;  %v2137_v58 = vshll.u32 %v9391_v36, 16  ;;  %v1282_v6 = vsel %vm8851_vm10, %v1280_v23, %v1281_v27 }
  0xdc   : > { %v2111_v11 = vrot.slane %v2109_v2, 6  ;;  %v2085_v13 = vsel %vm8706_vm7, %v2076_v33, %v2084_v42  ;;  %v2094_v29 = vrot.slane %v2093_v47, 4  ;;  %v2136_v60 = vrot.slane %v2134_v54, 5 }
  0xdd   : > { %v2075_v43 = vsel %vm8706_vm7, %v2066_v14, %v9371_v34  ;;  %v1289_v34 = vsel %vm8851_vm10, %v1287_v7, %v1288_v41  ;;  %v2139_v2 = vrot.slane %v2137_v58, 6  ;;  %v6889_v19 = vcombine.low %v9362_v26, %v9366_v52 }
  0xde   : > { %v2112_v8 = vor.u32 %v2111_v11, %v2108_v44  ;;  %v6890_v61 = vcombine.low %v1279_v3, %v1282_v6  ;;  %v6884_v22 = vrot.slane %v6876_v4, 10  ;;  %v2143_v52 = vshrl.u32 %v9207_v32, 16  ;;  %v9481_v4 = vld [vmem:[%s8678_s30 + $0x8c] sm:$0x3] }
  0xdf   : > { %7784 = vmatpush3.bf16.xpose.msra.mxu0 %v1188_v20  ;;  %v2115_v20 = vshrl.u32 %v9188_v16, 16  ;;  %v2140_v26 = vor.u32 %v2139_v2, %v2136_v60  ;;  %v2146_v42 = vshll.u32 %v9207_v32, 16  ;;  %v1349_v23 = vsel %vm601_vm1, %v6889_v19, 0 }
  0xe0   : > { %7785 = vmatprep.subr.bf16.mxu0 %v11419_v0  ;;  %v2152_v47 = vshrl.u32 %v9195_v38, 16  ;;  %v1352_v11 = vsel %vm601_vm1, %v6890_v61, 0  ;;  %v2174_v3 = vshll.u32 %v9228_v63, 16  ;;  %v2180_v6 = vshrl.u32 %v9216_v49, 16 }
  0xe1   : > { %7866 = vmatpush3.bf16.xpose.msra.mxu1 %v1949_v21  ;;  %v2118_v21 = vshll.u32 %v9188_v16, 16  ;;  %v2102_v16 = vor.u32 %v2101_v15, %v2098_v56  ;;  %v2117_v40 = vrot.slane %v2115_v20, 5  ;;  %v1292_v56 = vrot.slane %v8436_v9, 6  ;;  %v9473_v9 = vld [vmem:[%s8678_s30 + $0x80] sm:$0x3] }
  0xe2   : > { %7871 = vmatprep.subr.bf16.mxu1 %v11419_v0  ;;  %v2176_v61 = vrot.slane %v2174_v3, 6 }
  0xe3   : > { %v2120_v48 = vrot.slane %v2118_v21, 6  ;;  %v2104_v57 = vrot.slane %v2102_v16, 4  ;;  %v2103_v20 = vsel %vm8706_vm7, %v2094_v29, %v2102_v16  ;;  %v1294_v27 = vrot.slane %v1292_v56, 4 }
  0xe4   : > { %v2155_v16 = vshll.u32 %v9195_v38, 16  ;;  %v9448_v41 = vsel %vm8851_vm10, %v6884_v22, %v1292_v56  ;;  %v2211_v56 = vshll.u32 %v9260_v53, 16 }
  0xe6   : > { %v2213_v22 = vrot.slane %v2211_v56, 6 }
  0xe7   : > { %7786 = vmatpush3.bf16.xpose.msra.mxu0 %v1191_v55  ;;  %v2129_v55 = vrot.slane %v2127_v31, 6  ;;  %v1295_v31 = vrot.slane %v8437_v30, 6  ;;  %v2221_v30 = vshll.u32 %v9481_v4, 16 }
  0xe8   : > { %7868 = vmatmul.mubr.msk.bf16.vlgmr.msra.gmra.mrb[0].mxu1 %vm601_vm1, %v6973_v12  ;;  %7791 = vmatprep.subr.bf16.mxu0 %v11419_v0  ;;  %v2121_v12 = vor.u32 %v2120_v48, %v2117_v40  ;;  %v2145_v48 = vrot.slane %v2143_v52, 5  ;;  %v8438_v52 = vld [vmem:[%s8678_s30 + $0x58] sm:$0xf] }
  0xe9   : > { %7872 = vmatpush3.bf16.xpose.msra.mxu1 %v2254_v5  ;;  %7887 = vmatprep.mubr.msk.bf16.mxu1 %vm8555_vm0, %v11419_v0  ;;  %v2257_v5 = vsel %vm601_vm1, %v7027_v1, 0  ;;  %v1286_v1 = vsel %vm8851_vm10, %v6883_v45, %v1285_v28  ;;  %v2130_v15 = vor.u32 %v2129_v55, %v2126_v17  ;;  %v7028_v28 = vcombine.low %v2075_v43, %v2085_v13  ;;  %v9439_v45 = vld [vmem:[%s8678_s30 + $0x74] sm:$0x3] }
  0xea   : > { %7873 = vmatprep.subr.bf16.mxu1 %v11419_v0  ;;  %v6891_v21 = vcombine.low %v1286_v1, %v1289_v34  ;;  %v2122_v14 = vrot.slane %v2121_v12, 4  ;;  %v9454_v40 = vsel %vm8851_vm10, %v1294_v27, %v1295_v31  ;;  %v2154_v17 = vrot.slane %v2152_v47, 5 }
  0xeb   : > { %v2132_v33 = vrot.slane %v2130_v15, 4  ;;  %v2260_v44 = vsel %vm601_vm1, %v7028_v28, 0  ;;  %v2157_v55 = vrot.slane %v2155_v16, 6  ;;  %v2162_v54 = vshrl.u32 %v9439_v45, 16 }
  0xec   : > { %v9442_v46 = vsel %vm601_vm1, %v6891_v21, 0  ;;  %v2131_v32 = vsel %vm8706_vm7, %v2122_v14, %v2130_v15  ;;  %v2165_v58 = vshll.u32 %v9439_v45, 16  ;;  %v2171_v43 = vshrl.u32 %v9228_v63, 16 }
  0xed   : > { %v2141_v38 = vsel %vm8706_vm7, %v2132_v33, %v2140_v26  ;;  %v2183_v13 = vshll.u32 %v9216_v49, 16  ;;  %v2202_v1 = vshll.u32 %v9267_v37, 16  ;;  %v2208_v63 = vshrl.u32 %v9260_v53, 16 }
  0xee   : > { %7788 = vmatmul.mubr.msk.bf16.vlgmr.msra.gmra.mrb[4].mxu0 %vm601_vm1, %v705_v51  ;;  %v2148_v51 = vrot.slane %v2146_v42, 6  ;;  %v7030_v34 = vcombine.low %v2131_v32, %v2141_v38  ;;  %v9477_v49 = vor.u32 %v2157_v55, %v2154_v17  ;;  %v2164_v15 = vrot.slane %v2162_v54, 5  ;;  %v8440_v32 = vld [vmem:[%s8678_s30 + $0x5c] sm:$0x3] }
  0xef   : > { %7792 = vmatpush3.bf16.xpose.msra.mxu0 %v9358_v10  ;;  %7807 = vmatprep.mubr.msk.bf16.mxu0 %vm8555_vm0, %v11419_v0  ;;  %v2113_v10 = vsel %vm8706_vm7, %v2104_v57, %v2112_v8  ;;  %v6892_v57 = vcombine.low %v9448_v41, %v9454_v40  ;;  %v2199_v8 = vshrl.u32 %v9267_v37, 16  ;;  %v2167_v60 = vrot.slane %v2165_v58, 6 }
  0xf0   : > { %7793 = vmatprep.subr.bf16.mxu0 %v11419_v0  ;;  %v7029_v7 = vcombine.low %v2103_v20, %v2113_v10  ;;  %v2149_v12 = vor.u32 %v2148_v51, %v2145_v48  ;;  %v2173_v19 = vrot.slane %v2171_v43, 5  ;;  %v2182_v37 = vrot.slane %v2180_v6, 5  ;;  %v6879_v43 = vld [vmem:[%s8678_s30 + $0x6c] sm:$0xc] }
  0xf1   : > { %7874 = vmatpush3.bf16.xpose.msra.mxu1 %v2257_v5  ;;  %v9460_v5 = vld [vmem:[%s8678_s30 + $0x54] sm:$0xc]  ;;  %v2185_v28 = vrot.slane %v2183_v13, 6  ;;  %v2190_v20 = vshrl.u32 %v9473_v9, 16  ;;  %v2193_v10 = vshll.u32 %v9473_v9, 16  ;;  %v2201_v21 = vrot.slane %v2199_v8, 5 }
  0xf2   : > { %7875 = vmatprep.subr.bf16.mxu1 %v11419_v0  ;;  %v2263_v29 = vsel %vm601_vm1, %v7029_v7, 0  ;;  %v6885_v2 = vrot.slane %v9460_v5, 10  ;;  %v2204_v14 = vrot.slane %v2202_v1, 6  ;;  %v2210_v53 = vrot.slane %v2208_v63, 5 }
  0xf3   : > { %v2218_v27 = vshrl.u32 %v9481_v4, 16  ;;  %v2150_v31 = vrot.slane %v2149_v12, 4  ;;  %v2160_v33 = vrot.slane %v9477_v49, 4  ;;  %v2168_v26 = vor.u32 %v2167_v60, %v2164_v15  ;;  %v8442_v60 = vld [vmem:[%s8678_s30 + $0x74] sm:$0x3] }
  0xf4   : > { %v1299_v42 = vrot.slane %v8438_v52, 6  ;;  %v2177_v47 = vor.u32 %v2176_v61, %v2173_v19  ;;  %v2186_v16 = vor.u32 %v2185_v28, %v2182_v37  ;;  %v1302_v38 = vrot.slane %v8440_v32, 6 }
  0xf5   : > { %v2192_v48 = vrot.slane %v2190_v20, 5  ;;  %v2195_v51 = vrot.slane %v2193_v10, 6  ;;  %v1313_v17 = vrot.slane %v9050_v39, 6  ;;  %v2205_v55 = vor.u32 %v2204_v14, %v2201_v21  ;;  %v8441_v39 = vld [vmem:[%s8678_s30 + $0x68] sm:$0x3] }
  0xf6   : > { %v2214_v54 = vor.u32 %v2213_v22, %v2210_v53  ;;  %v2220_v58 = vrot.slane %v2218_v27, 5  ;;  %v2223_v5 = vrot.slane %v2221_v30, 6  ;;  %v2159_v3 = vsel %vm8706_vm7, %v2150_v31, %v9477_v49  ;;  %v7036_v10 = vld [vmem:[%s8678_s30 + $0x30] sm:$0xc] }
  0xf7   : > { %7794 = vmatpush3.bf16.xpose.msra.mxu0 %v1349_v23  ;;  %v2266_v23 = vsel %vm601_vm1, %v7030_v34, 0  ;;  %v2169_v6 = vsel %vm8706_vm7, %v2160_v33, %v2168_v26  ;;  %v1301_v13 = vrot.slane %v1299_v42, 4  ;;  %v2178_v8 = vrot.slane %v2177_v47, 4 }
  0xf8   : > { %7795 = vmatprep.subr.bf16.mxu0 %v11419_v0  ;;  %v2188_v1 = vrot.slane %v2186_v16, 4  ;;  %v1309_v12 = vrot.slane %v8441_v39, 6  ;;  %v2196_v63 = vor.u32 %v2195_v51, %v2192_v48  ;;  %v6887_v56 = vrot.slane %v6879_v43, 10 }
  0xf9   : > { %7876 = vmatpush3.bf16.xpose.msra.mxu1 %v2260_v44  ;;  %v6878_v44 = vld [vmem:[%s8678_s30 + $0x60] sm:$0xc]  ;;  %v1315_v15 = vrot.slane %v1313_v17, 4  ;;  %v1316_v19 = vrot.slane %v8442_v60, 6  ;;  %v2206_v49 = vrot.slane %v2205_v55, 4  ;;  %v2216_v61 = vrot.slane %v2214_v54, 4 }
  0xfa   : > { %7877 = vmatprep.subr.bf16.mxu1 %v11419_v0  ;;  %v2224_v37 = vor.u32 %v2223_v5, %v2220_v58  ;;  %v1300_v28 = vsel %vm8851_vm10, %v6885_v2, %v1299_v42  ;;  %v1303_v20 = vsel %vm8851_vm10, %v1301_v13, %v1302_v38  ;;  %v2346_v21 = vrot.slane %v9073_v18, 6  ;;  %v7065_v2 = vld [vmem:[%s8678_s30 + $0x10] sm:$0xf]  ;;  %v7068_v55 = vld [vmem:[%s8678_s30 + $0x1c] sm:$0xf] }
  0xfb   : > { %v7031_v14 = vcombine.low %v2159_v3, %v2169_v6  ;;  %v2187_v53 = vsel %vm8706_vm7, %v2178_v8, %v2186_v16  ;;  %v2197_v27 = vsel %vm8706_vm7, %v2188_v1, %v2196_v63  ;;  %v1314_v41 = vsel %vm8851_vm10, %v6887_v56, %v1313_v17  ;;  %v7071_v6 = vld [vmem:[%s8678_s30 + $0x28] sm:$0xf]  ;;  %v7037_v56 = vld [vmem:[%s8678_s30 + $0x3c] sm:$0xc] }
  0xfc   : > { %v1317_v40 = vsel %vm8851_vm10, %v1315_v15, %v1316_v19  ;;  %v6893_v30 = vcombine.low %v1300_v28, %v1303_v20  ;;  %v2215_v31 = vsel %vm8706_vm7, %v2206_v49, %v2214_v54  ;;  %v2225_v33 = vsel %vm8706_vm7, %v2216_v61, %v2224_v37  ;;  %v7091_v54 = vld [vmem:[%s8678_s30 + $0x18] sm:$0xe]  ;;  %v7092_v49 = vld [vmem:[%s8678_s30 + $0x20] sm:$0x3] }
  0xfd   : > { %v7044_v26 = vrot.slane %v7036_v10, 10  ;;  %v2348_v52 = vrot.slane %v2346_v21, 4  ;;  %v2349_v42 = vrot.slane %v9275_v24, 6  ;;  %v9538_v47 = vshrl.u32 %v7065_v2, 16 }
  0xfe   : > { %v7032_v16 = vcombine.low %v2187_v53, %v2197_v27  ;;  %v2269_v38 = vsel %vm601_vm1, %v7031_v14, 0  ;;  %v7033_v48 = vcombine.low %v2215_v31, %v2225_v33  ;;  %v1361_v17 = vsel %vm601_vm1, %v6893_v30, 0  ;;  %v8443_v14 = vld [vmem:[%s8678_s30 + $0x40] sm:$0xf] }
  0xff   : > { %7796 = vmatpush3.bf16.xpose.msra.mxu0 %v1352_v11  ;;  %v8439_v11 = vld [vmem:[%s8678_s30 + $0x64] sm:$0xf]  ;;  %v9545_v24 = vsel %vm8851_vm10, %v7044_v26, %v2346_v21  ;;  %v9552_v58 = vsel %vm8851_vm10, %v2348_v52, %v2349_v42  ;;  %v2747_v5 = vrot.slane %v9538_v47, 5  ;;  %v9570_v15 = vshll.u32 %v7068_v55, 16  ;;  %v8444_v42 = vld [vmem:[%s8678_s30 + $0x4c] sm:$0xf] }
 0x100   : > { %7797 = vmatprep.subr.bf16.mxu0 %v11419_v0  ;;  %v1306_v7 = vrot.slane %v8439_v11, 6  ;;  %v6895_v11 = vcombine.low %v1314_v41, %v1317_v40  ;;  %v2272_v13 = vsel %vm601_vm1, %v7032_v16, 0  ;;  %v9567_v39 = vsel %vm601_vm1, %v7033_v48, 0 }
 0x101   : > { %7878 = vmatpush3.bf16.xpose.msra.mxu1 %v2263_v29  ;;  %v6886_v29 = vrot.slane %v6878_v44, 10  ;;  %v7052_v60 = vcombine.low %v9545_v24, %v9552_v58  ;;  %v9574_v19 = vshrl.u32 %v7068_v55, 16  ;;  %v2762_v61 = vshrl.u32 %v7091_v54, 16  ;;  %v7077_v24 = vld [vmem:[%s8678_s30 + $0x40] sm:$0xf] }
 0x102   : > { %7879 = vmatprep.subr.bf16.mxu1 %v11419_v0  ;;  %v1308_v34 = vrot.slane %v1306_v7, 4  ;;  %v9562_v8 = vsel %vm601_vm1, %v6895_v11, 0  ;;  %v2765_v37 = vshll.u32 %v7091_v54, 16  ;;  %v9579_v10 = vshll.u32 %v7071_v6, 16 }
 0x103   : > { %v1307_v22 = vsel %vm8851_vm10, %v6886_v29, %v1306_v7  ;;  %v7090_v7 = vld [vmem:[%s8678_s30 + $0x14] sm:$0x3]  ;;  %v2353_v53 = vrot.slane %v8443_v14, 6  ;;  %v2771_v41 = vrot.slane %v9570_v15, 6  ;;  %v2776_v40 = vshrl.u32 %v7092_v49, 16 }
 0x104   : > { %v1310_v18 = vsel %vm8851_vm10, %v1308_v34, %v1309_v12  ;;  %v2753_v3 = vshrl.u32 %v7090_v7, 16  ;;  %v7093_v34 = vld [vmem:[%s8678_s30 + $0x24] sm:$0xe]  ;;  %v2756_v63 = vshll.u32 %v7090_v7, 16  ;;  %v2764_v30 = vrot.slane %v2762_v61, 5 }
 0x105   : > { %v6894_v44 = vcombine.low %v1307_v22, %v1310_v18  ;;  %v2785_v21 = vshrl.u32 %v7093_v34, 16  ;;  %v9582_v22 = vshrl.u32 %v7071_v6, 16  ;;  %v2767_v31 = vrot.slane %v2765_v37, 6  ;;  %v7038_v7 = vld [vmem:[%s8678_s30 + $0x48] sm:$0xc] }
 0x106   : > { %v2755_v20 = vrot.slane %v2753_v3, 5  ;;  %v2758_v18 = vrot.slane %v2756_v63, 6  ;;  %v2770_v33 = vrot.slane %v9574_v19, 5  ;;  %v2779_v26 = vshll.u32 %v7092_v49, 16 }
 0x107   : > { %7798 = vmatpush3.bf16.xpose.msra.mxu0 %v9442_v46  ;;  %v1358_v46 = vsel %vm601_vm1, %v6892_v57, 0  ;;  %v7089_v57 = vld [vmem:[%s8678_s30 + $0xc] sm:$0xe]  ;;  %v9559_v29 = vsel %vm601_vm1, %v6894_v44, 0  ;;  %v2356_v52 = vrot.slane %v9304_v59, 6  ;;  %v2360_v16 = vrot.slane %v8444_v42, 6 }
 0x108   : > { %7799 = vmatprep.subr.bf16.mxu0 %v11419_v0  ;;  %v2739_v32 = vshrl.u32 %v7089_v57, 16  ;;  %v2742_v51 = vshll.u32 %v7089_v57, 16  ;;  %v7094_v57 = vld [vmem:[%s8678_s30 + $0x2c] sm:$0x3]  ;;  %v2787_v44 = vrot.slane %v2785_v21, 5  ;;  %v2794_v11 = vrot.slane %v9579_v10, 6 }
 0x109   : > { %7880 = vmatpush3.bf16.xpose.msra.mxu1 %v2266_v23  ;;  %v9536_v23 = vshll.u32 %v7065_v2, 16  ;;  %v2788_v2 = vshll.u32 %v7093_v34, 16  ;;  %v2799_v48 = vshrl.u32 %v7094_v57, 16  ;;  %v2759_v59 = vor.u32 %v2758_v18, %v2755_v20  ;;  %v7074_v20 = vld [vmem:[%s8678_s30 + $0x34] sm:$0xf] }
 0x10a   : > { %7881 = vmatprep.subr.bf16.mxu1 %v11419_v0  ;;  %v2741_v1 = vrot.slane %v2739_v32, 5  ;;  %v2744_v12 = vrot.slane %v2742_v51, 6  ;;  %v2802_v51 = vshll.u32 %v7094_v57, 16  ;;  %v2355_v54 = vrot.slane %v2353_v53, 4  ;;  %v8445_v57 = vld [vmem:[%s8678_s30 + $0x58] sm:$0xf] }
 0x10b   : > { %v2748_v43 = vrot.slane %v9536_v23, 6  ;;  %v2790_v32 = vrot.slane %v2788_v2, 6  ;;  %v2778_v3 = vrot.slane %v2776_v40, 5  ;;  %v2781_v6 = vrot.slane %v2779_v26, 6  ;;  %v7039_v40 = vld [vmem:[%s8678_s30 + $0x54] sm:$0xc] }
 0x10c   : > { %v2745_v27 = vor.u32 %v2744_v12, %v2741_v1  ;;  %v7095_v1 = vld [vmem:[%s8678_s30 + $0x30] sm:$0xe]  ;;  %v7046_v34 = vrot.slane %v7038_v7, 10  ;;  %v2362_v12 = vrot.slane %v2360_v16, 4  ;;  %v2363_v63 = vrot.slane %v9340_v25, 6 }
 0x10d   : > { %v9577_v28 = vor.u32 %v2748_v43, %v2747_v5  ;;  %v2768_v5 = vor.u32 %v2767_v31, %v2764_v30  ;;  %v2772_v43 = vor.u32 %v2771_v41, %v2770_v33  ;;  %v2801_v61 = vrot.slane %v2799_v48, 5  ;;  %v7096_v42 = vld [vmem:[%s8678_s30 + $0x38] sm:$0x3] }
 0x10e   : > { %v2804_v37 = vrot.slane %v2802_v51, 6  ;;  %v2357_v14 = vsel %vm8851_vm10, %v2355_v54, %v2356_v52  ;;  %v2808_v2 = vshrl.u32 %v7095_v1, 16  ;;  %v2782_v18 = vor.u32 %v2781_v6, %v2778_v3  ;;  %v7017_v54 = vld [vmem:[%s11414_s1 + $0x18] sm:$0xf] }
 0x10f   : > { %7800 = vmatpush3.bf16.xpose.msra.mxu0 %v1358_v46  ;;  %v7045_v46 = vrot.slane %v7037_v56, 10  ;;  %v2751_v55 = vrot.slane %v9577_v28, 4  ;;  %v2791_v56 = vor.u32 %v2790_v32, %v2787_v44  ;;  %v2361_v41 = vsel %vm8851_vm10, %v7046_v34, %v2360_v16  ;;  %v8446_v34 = vld [vmem:[%s8678_s30 + $0x64] sm:$0xf] }
 0x110   : > { %7801 = vmatprep.subr.bf16.mxu0 %v11419_v0  ;;  %v2367_v30 = vrot.slane %v8445_v57, 6  ;;  %v9615_v31 = vshll.u32 %v7074_v20, 16  ;;  %v2805_v26 = vor.u32 %v2804_v37, %v2801_v61  ;;  %v9618_v52 = vshrl.u32 %v7074_v20, 16  ;;  %v7097_v20 = vld [vmem:[%s8678_s30 + $0x3c] sm:$0xe] }
 0x111   : > { %7882 = vmatpush3.bf16.xpose.msra.mxu1 %v2269_v38  ;;  %v2793_v38 = vrot.slane %v9582_v22, 5  ;;  %v2760_v25 = vsel %vm8706_vm7, %v2751_v55, %v2759_v59  ;;  %v7047_v48 = vrot.slane %v7039_v40, 10  ;;  %v2822_v59 = vshrl.u32 %v7096_v42, 16  ;;  %v6871_v40 = vld [vmem:[%s11414_s1 + $0x8] sm:$0xf] }
 0x112   : > { %7883 = vmatprep.subr.bf16.mxu1 %v11419_v0  ;;  %v2369_v51 = vrot.slane %v2367_v30, 4  ;;  %v2817_v55 = vrot.slane %v9615_v31, 6  ;;  %v2816_v3 = vrot.slane %v9618_v52, 5  ;;  %v2825_v6 = vshll.u32 %v7096_v42, 16 }
 0x113   : > { %v2795_v49 = vor.u32 %v2794_v11, %v2793_v38  ;;  %v2810_v11 = vrot.slane %v2808_v2, 5  ;;  %v2824_v37 = vrot.slane %v2822_v59, 5  ;;  %v7101_v59 = vld [vmem:[%s8678_s30 + $0x54] sm:$0xe] }
 0x114   : > { %v2827_v2 = vrot.slane %v2825_v6, 6  ;;  %v7083_v6 = vld [vmem:[%s8678_s30 + $0x58] sm:$0xf] }
 0x115   : > { %v2797_v33 = vrot.slane %v2795_v49, 4 }
 0x117   : > { %7802 = vmatpush3.bf16.xpose.msra.mxu0 %v1361_v17  ;;  %v2746_v17 = vrot.slane %v2745_v27, 4  ;;  %v2774_v27 = vrot.slane %v2772_v43, 4 }
 0x118   : > { %7803 = vmatprep.subr.bf16.mxu0 %v11419_v0 }
 0x119   : > { %7884 = vmatpush3.bf16.xpose.msra.mxu1 %v2272_v13  ;;  %v2354_v13 = vsel %vm8851_vm10, %v7045_v46, %v2353_v53  ;;  %v2750_v21 = vsel %vm8706_vm7, %v2746_v17, %v9577_v28  ;;  %v2811_v46 = vshll.u32 %v7095_v1, 16  ;;  %v2769_v53 = vrot.slane %v2768_v5, 4 }
 0x11a   : > { %7885 = vmatprep.subr.bf16.mxu1 %v11419_v0  ;;  %v2364_v28 = vsel %vm8851_vm10, %v2362_v12, %v2363_v63  ;;  %v7105_v44 = vcombine.low %v2750_v21, %v2760_v25  ;;  %v7053_v16 = vcombine.low %v2354_v13, %v2357_v14  ;;  %v2370_v17 = vrot.slane %v9369_v62, 6  ;;  %v7040_v13 = vld [vmem:[%s8678_s30 + $0x60] sm:$0xc]  ;;  %v7080_v21 = vld [vmem:[%s8678_s30 + $0x4c] sm:$0xf] }
 0x11b   : > { %v2813_v7 = vrot.slane %v2811_v46, 6  ;;  %v2773_v32 = vsel %vm8706_vm7, %v2769_v53, %v2772_v43  ;;  %v7054_v38 = vcombine.low %v2361_v41, %v2364_v28  ;;  %v2806_v43 = vsel %vm8706_vm7, %v2797_v33, %v2805_v26  ;;  %v7099_v53 = vld [vmem:[%s8678_s30 + $0x48] sm:$0xe]  ;;  %v7098_v26 = vld [vmem:[%s8678_s30 + $0x44] sm:$0x3] }
 0x11c   : > { %v2428_v62 = vsel %vm601_vm1, %v7052_v60, 0  ;;  %v2374_v12 = vrot.slane %v8446_v34, 6  ;;  %v2950_v63 = vsel %vm601_vm1, %v7105_v44, 0  ;;  %v9653_v60 = vsel %vm8851_vm10, %v7047_v48, %v2367_v30 }
 0x11d   : > { %v2814_v1 = vor.u32 %v2813_v7, %v2810_v11  ;;  %v9646_v61 = vsel %vm601_vm1, %v7054_v38, 0  ;;  %v9661_v14 = vor.u32 %v2817_v55, %v2816_v3  ;;  %v7048_v46 = vrot.slane %v7040_v13, 10  ;;  %v7100_v38 = vld [vmem:[%s8678_s30 + $0x50] sm:$0x3] }
 0x11e   : > { %v2377_v25 = vrot.slane %v9391_v36, 6  ;;  %v9670_v41 = vshll.u32 %v7077_v24, 16  ;;  %v9672_v28 = vshrl.u32 %v7077_v24, 16  ;;  %v2831_v30 = vshrl.u32 %v7097_v20, 16 }
 0x11f   : > { %7804 = vmatpush3.bf16.xpose.msra.mxu0 %v9559_v29  ;;  %v2792_v29 = vrot.slane %v2791_v56, 4  ;;  %v2431_v56 = vsel %vm601_vm1, %v7053_v16, 0  ;;  %v9684_v42 = vshrl.u32 %v7080_v21, 16  ;;  %v2854_v44 = vshrl.u32 %v7099_v53, 16 }
 0x120   : > { %7805 = vmatprep.subr.bf16.mxu0 %v11419_v0  ;;  %v2857_v16 = vshll.u32 %v7099_v53, 16  ;;  %v2820_v11 = vrot.slane %v9661_v14, 4  ;;  %v2828_v7 = vor.u32 %v2827_v2, %v2824_v37  ;;  %v2840_v55 = vrot.slane %v9670_v41, 6  ;;  %v8447_v53 = vld [vmem:[%s8678_s30 + $0x70] sm:$0xf] }
 0x121   : > { %7886 = vmatpush3.bf16.xpose.msra.mxu1 %v9567_v39  ;;  %v2783_v39 = vsel %vm8706_vm7, %v2774_v27, %v2782_v18  ;;  %v2796_v5 = vsel %vm8706_vm7, %v2792_v29, %v2795_v49  ;;  %v9668_v27 = vrot.slane %v2814_v1, 4  ;;  %v2376_v18 = vrot.slane %v2374_v12, 4 }
 0x122   : > { %7891 = vmatprep.subr.bf16.mxu1 %v11419_v0  ;;  %v7106_v49 = vcombine.low %v2773_v32, %v2783_v39  ;;  %v7107_v58 = vcombine.low %v2796_v5, %v2806_v43  ;;  %v2834_v29 = vshll.u32 %v7097_v20, 16  ;;  %v9689_v32 = vsel %vm8851_vm10, %v7048_v46, %v2374_v12 }
 0x123   : > { %v9691_v39 = vshll.u32 %v7080_v21, 16  ;;  %v2819_v48 = vsel %vm8706_vm7, %v9668_v27, %v9661_v14  ;;  %v2845_v43 = vshrl.u32 %v7098_v26, 16  ;;  %v2848_v3 = vshll.u32 %v7098_v26, 16 }
 0x124   : > { %v2953_v36 = vsel %vm601_vm1, %v7106_v49, 0  ;;  %v9681_v33 = vsel %vm601_vm1, %v7107_v58, 0  ;;  %v2836_v5 = vrot.slane %v2834_v29, 6  ;;  %v2856_v1 = vrot.slane %v2854_v44, 5  ;;  %v8448_v44 = vld [vmem:[%s8678_s30 + $0x7c] sm:$0xf] }
 0x125   : > { %v2859_v13 = vrot.slane %v2857_v16, 6  ;;  %v2862_v34 = vrot.slane %v9684_v42, 5  ;;  %v2868_v12 = vshrl.u32 %v7100_v38, 16  ;;  %v2871_v49 = vshll.u32 %v7100_v38, 16 }
 0x126   : > { %v2877_v24 = vshrl.u32 %v7101_v59, 16  ;;  %v2880_v58 = vshll.u32 %v7101_v59, 16  ;;  %v2829_v37 = vsel %vm8706_vm7, %v2820_v11, %v2828_v7  ;;  %v9718_v21 = vshll.u32 %v7083_v6, 16  ;;  %v7042_v7 = vld [vmem:[%s8678_s30 + $0x78] sm:$0xc] }
 0x127   : > { %7806 = vmatpush3.bf16.xpose.msra.mxu0 %v9562_v8  ;;  %v9657_v8 = vsel %vm8851_vm10, %v2369_v51, %v2370_v17  ;;  %v9701_v51 = vsel %vm8851_vm10, %v2376_v18, %v2377_v25  ;;  %v2839_v17 = vrot.slane %v9672_v28, 5  ;;  %v9720_v2 = vshrl.u32 %v7083_v6, 16 }
 0x128   : > { %7888 = vmatmul.mubr.msk.bf16.vlgmr.msra.gmra.mrb[0].mxu1 %vm601_vm1, %v7017_v54  ;;  %7911 = vmatprep.subr.bf16.mxu0 %v11419_v0  ;;  %v7055_v57 = vcombine.low %v9653_v60, %v9657_v8  ;;  %v2833_v54 = vrot.slane %v2831_v30, 5  ;;  %v2381_v18 = vrot.slane %v8447_v53, 6  ;;  %v2850_v30 = vrot.slane %v2848_v3, 6 }
 0x129   : > { %7892 = vmatpush3.bf16.xpose.msra.mxu1 %v2428_v62  ;;  %7907 = vmatprep.mubr.msk.bf16.mxu1 %vm8555_vm0, %v11419_v0  ;;  %v7041_v62 = vld [vmem:[%s8678_s30 + $0x6c] sm:$0xc]  ;;  %v9716_v20 = vor.u32 %v2840_v55, %v2839_v17  ;;  %v2860_v29 = vor.u32 %v2859_v13, %v2856_v1  ;;  %v2870_v26 = vrot.slane %v2868_v12, 5  ;;  %v2388_v16 = vrot.slane %v8448_v44, 6 }
 0x12a   : > { %7893 = vmatprep.subr.bf16.mxu1 %v11419_v0  ;;  %v2837_v46 = vor.u32 %v2836_v5, %v2833_v54  ;;  %v7049_v25 = vrot.slane %v7041_v62, 10  ;;  %v2873_v11 = vrot.slane %v2871_v49, 6  ;;  %v2879_v17 = vrot.slane %v2877_v24, 5 }
 0x12b   : > { %v2882_v55 = vrot.slane %v2880_v58, 6  ;;  %v2885_v59 = vrot.slane %v9720_v2, 5  ;;  %v2886_v6 = vrot.slane %v9718_v21, 6  ;;  %v2843_v62 = vrot.slane %v9716_v20, 4 }
 0x12c   : > { %v2383_v3 = vrot.slane %v2381_v18, 4  ;;  %v2384_v1 = vrot.slane %v9439_v45, 6  ;;  %v2390_v12 = vrot.slane %v2388_v16, 4  ;;  %v2861_v49 = vrot.slane %v2860_v29, 4 }
 0x12d   : > { %v2874_v58 = vor.u32 %v2873_v11, %v2870_v26  ;;  %v2437_v45 = vsel %vm601_vm1, %v7055_v57, 0  ;;  %v2382_v8 = vsel %vm8851_vm10, %v7049_v25, %v2381_v18  ;;  %v7103_v57 = vld [vmem:[%s8678_s30 + $0x60] sm:$0xe]  ;;  %v7086_v18 = vld [vmem:[%s8678_s30 + $0x64] sm:$0xf] }
 0x12e   : > { %7808 = vmatmul.mubr.msk.bf16.vlgmr.msra.gmra.mrb[4].mxu0 %vm601_vm1, %v6871_v40  ;;  %v7102_v40 = vld [vmem:[%s8678_s30 + $0x5c] sm:$0x3]  ;;  %v2900_v44 = vshrl.u32 %v7103_v57, 16 }
 0x12f   : > { %7912 = vmatpush3.bf16.xpose.msra.mxu0 %v2950_v63  ;;  %7927 = vmatprep.mubr.msk.bf16.mxu0 %vm8555_vm0, %v11419_v0  ;;  %v2863_v63 = vrot.slane %v9691_v39, 6  ;;  %v2891_v54 = vshrl.u32 %v7102_v40, 16  ;;  %v2894_v5 = vshll.u32 %v7102_v40, 16 }
 0x130   : > { %7913 = vmatprep.subr.bf16.mxu0 %v11419_v0 }
 0x131   : > { %7894 = vmatpush3.bf16.xpose.msra.mxu1 %v2431_v56  ;;  %v2847_v56 = vrot.slane %v2845_v43, 5  ;;  %v2864_v38 = vor.u32 %v2863_v63, %v2862_v34  ;;  %v2838_v43 = vrot.slane %v2837_v46, 4  ;;  %v7050_v34 = vrot.slane %v7042_v7, 10 }
 0x132   : > { %7895 = vmatprep.subr.bf16.mxu1 %v11419_v0  ;;  %v2391_v63 = vrot.slane %v9473_v9, 6  ;;  %v9738_v46 = vor.u32 %v2886_v6, %v2885_v59  ;;  %v2896_v53 = vrot.slane %v2894_v5, 6  ;;  %v7108_v9 = vcombine.low %v2819_v48, %v2829_v37  ;;  %v7043_v37 = vld [vmem:[%s8678_s30 + $0x84] sm:$0xc] }
 0x133   : > { %v2851_v13 = vor.u32 %v2850_v30, %v2847_v56  ;;  %v2866_v24 = vrot.slane %v2864_v38, 4  ;;  %v2893_v56 = vrot.slane %v2891_v54, 5  ;;  %v2842_v60 = vsel %vm8706_vm7, %v2838_v43, %v9716_v20  ;;  %v8449_v20 = vld [vmem:[%s8678_s30 + $0x88] sm:$0xf]  ;;  %v6552_v59 = vld [vmem:[%s11416_s3] sm:$0xff] }
 0x134   : > { %v2385_v30 = vsel %vm8851_vm10, %v2383_v3, %v2384_v1  ;;  %v2389_v14 = vsel %vm8851_vm10, %v7050_v34, %v2388_v16  ;;  %v2392_v27 = vsel %vm8851_vm10, %v2390_v12, %v2391_v63  ;;  %v2395_v25 = vrot.slane %v8449_v20, 6  ;;  %6558 = vperm.xlu0 %8400, %v6552_v59  }
 0x135   : > { %v2852_v40 = vsel %vm8706_vm7, %v2843_v62, %v2851_v13  ;;  %v2875_v48 = vsel %vm8706_vm7, %v2866_v24, %v2874_v58  ;;  %v2889_v29 = vrot.slane %v9738_v46, 4  ;;  %v2897_v26 = vor.u32 %v2896_v53, %v2893_v56  ;;  %v4933_v62 = vld [vmem:[%s8678_s30] sm:$0xe] }
 0x136   : > { %v2903_v16 = vshll.u32 %v7103_v57, 16  ;;  %v7109_v11 = vcombine.low %v2842_v60, %v2852_v40  ;;  %v7057_v7 = vcombine.low %v2382_v8, %v2385_v30  ;;  %v2959_v6 = vsel %vm601_vm1, %v7108_v9, 0 }
 0x137   : > { %7914 = vmatpush3.bf16.xpose.msra.mxu0 %v2953_v36  ;;  %v2883_v36 = vor.u32 %v2882_v55, %v2879_v17  ;;  %v7058_v17 = vcombine.low %v2389_v14, %v2392_v27  ;;  %v9772_v55 = vld [vmem:[%s8678_s30 + $0x68] sm:$0x3]  ;;  %v7051_v5 = vrot.slane %v7043_v37, 10  ;;  %v9779_v43 = vshll.u32 %v7086_v18, 16  ;;  %v4935_v37 = vld [vmem:[%s8678_s30 + $0xc] sm:$0xe] }
 0x138   : > { %7915 = vmatprep.subr.bf16.mxu0 %v11419_v0  ;;  %v2397_v1 = vrot.slane %v2395_v25, 4  ;;  %v2398_v13 = vrot.slane %v9481_v4, 6  ;;  %v9789_v34 = vshrl.u32 %v7086_v18, 16  ;;  %v2898_v63 = vsel %vm8706_vm7, %v2889_v29, %v2897_v26  ;;  %v9841_v26 = vld [vmem:[%s8678_s30 + $0x10] sm:$0xf] }
 0x139   : > { %7896 = vmatpush3.bf16.xpose.msra.mxu1 %v9646_v61  ;;  %v7056_v61 = vcombine.low %v9689_v32, %v9701_v51  ;;  %v2865_v32 = vsel %vm8706_vm7, %v2861_v49, %v2864_v38  ;;  %v2884_v51 = vrot.slane %v2883_v36, 4  ;;  %v2902_v49 = vrot.slane %v2900_v44, 5  ;;  %v7064_v36 = vld [vmem:[%s8678_s30 + $0xc] sm:$0xf] }
 0x13a   : > { %7897 = vmatprep.subr.bf16.mxu1 %v11419_v0  ;;  %v7110_v54 = vcombine.low %v2865_v32, %v2875_v48  ;;  %v2905_v24 = vrot.slane %v2903_v16, 6  ;;  %v2914_v58 = vshrl.u32 %v9772_v55, 16  ;;  %v9807_v56 = vsel %vm601_vm1, %v7057_v7, 0  ;;  %v4934_v48 = vld [vmem:[%s8678_s30 + $0x8] sm:$0x3] }
 0x13b   : > { %v2440_v38 = vsel %vm601_vm1, %v7056_v61, 0  ;;  %v2888_v3 = vsel %vm8706_vm7, %v2884_v51, %v9738_v46  ;;  %v9804_v46 = vsel %vm601_vm1, %v7109_v11, 0  ;;  %v9810_v53 = vsel %vm601_vm1, %v7058_v17, 0 }
 0x13c   : > { %v4950_v9 = vshrl.u32 %v4933_v62, 16  ;;  %v9813_v60 = vsel %vm601_vm1, %v7110_v54, 0  ;;  %v9817_v8 = vsel %vm8851_vm10, %v7051_v5, %v2395_v25  ;;  %v2909_v57 = vrot.slane %v9779_v43, 6 }
 0x13d   : > { %v4953_v40 = vshll.u32 %v4933_v62, 16  ;;  %v9826_v14 = vcombine.low %v2888_v3, %v2898_v63  ;;  %v9830_v27 = vsel %vm8851_vm10, %v2397_v1, %v2398_v13  ;;  %v2908_v32 = vrot.slane %v9789_v34, 5 }
 0x13e   : > { %v2906_v20 = vor.u32 %v2905_v24, %v2902_v49  ;;  %v9836_v25 = vrot.slane %v2914_v58, 5  ;;  %v2917_v18 = vshll.u32 %v9772_v55, 16  ;;  %v4952_v50 = vrot.slane %v4950_v9, 5  ;;  %v4936_v24 = vld [vmem:[%s8678_s30 + $0x14] sm:$0x3] }
 0x13f   : > { %7916 = vmatpush3.bf16.xpose.msra.mxu0 %v9681_v33  ;;  %v9782_v33 = vld [vmem:[%s8678_s30 + $0x4] sm:$0xf]  ;;  %v2529_v16 = vshrl.u32 %v7064_v36, 16  ;;  %v2532_v11 = vshll.u32 %v7064_v36, 16  ;;  %v4955_v17 = vrot.slane %v4953_v40, 6  ;;  %v4969_v59 = vshrl.u32 %v4934_v48, 16 }
 0x140   : > { %7917 = vmatprep.subr.bf16.mxu0 %v11419_v0  ;;  %v4959_v51 = vshrl.u32 %v9782_v33, 16  ;;  %v4962_v29 = vshll.u32 %v9782_v33, 16  ;;  %v4978_v54 = vshrl.u32 %v4935_v37, 16  ;;  %v4981_v5 = vshll.u32 %v4935_v37, 16 }
 0x141   : > { %7898 = vmatpush3.bf16.xpose.msra.mxu1 %v2437_v45  ;;  %v9791_v12 = vpop.f32.mrb[0].mxu0  ;;  %v9799_v45 = vpop.permute.xlu1 %6568  ;;  %v4987_v62 = vshrl.u32 %v9841_v26, 16  ;;  %v4990_v3 = vshll.u32 %v9841_v26, 16  ;;  %v4972_v13 = vshll.u32 %v4934_v48, 16  ;;  %v2540_v63 = vrot.slane %v9536_v23, 5 }
 0x142   : > { %11430 = vst [vmem:[#allocation6_spill] sm:$0xff] %v9791_v12  ;;  %7899 = vmatprep.subr.bf16.mxu1 %v11419_v0  ;;  %11431 = vst [vmem:[#allocation7_spill] sm:$0xff] %v9799_v45  ;;  %v9801_v4 = vpop.f32.mrb[1].mxu0  ;;  %v4961_v55 = vrot.slane %v4959_v51, 5  ;;  %v4964_v1 = vrot.slane %v4962_v29, 6  ;;  %v2544_v49 = vrot.slane %v9538_v47, 4  ;;  %v9850_v58 = vor.u32 %v2909_v57, %v2908_v32 }
 0x143   : > { %11432 = vst [vmem:[#allocation8_spill] sm:$0xff] %v9801_v4  ;;  %v7750_v61 = vpop.f32.mrb[2].mxu0  ;;  %v2531_v36 = vrot.slane %v2529_v16, 4  ;;  %v2534_v9 = vrot.slane %v2532_v11, 5  ;;  %v4956_v40 = vor.u32 %v4955_v17, %v4952_v50  ;;  %v7066_v51 = vld [vmem:[%s8678_s30 + $0x14] sm:$0x1] }
 0x144   : > { %v9824_v30 = vpop.f32.mrb[3].mxu0  ;;  %v4980_v48 = vrot.slane %v4978_v54, 5  ;;  %v4983_v37 = vrot.slane %v4981_v5, 6  ;;  %v4989_v29 = vrot.slane %v4987_v62, 5  ;;  %v7067_v57 = vld [vmem:[%s8678_s30 + $0x18] sm:$0xf]  ;;  %v9860_v32 = vor.u32 %v4964_v1, %v4961_v55 }
 0x145   : > { %11433 = vst [vmem:[#allocation9_spill] sm:$0xff] %v9824_v30  ;;  %v6574_v44 = vpop.permute.xlu1 %6573  ;;  %v4974_v16 = vrot.slane %v4972_v13, 6  ;;  %v2545_v11 = vor.u32 %v2544_v49, %v2540_v63  ;;  %v2535_v17 = vor.u32 %v2534_v9, %v2531_v36  ;;  %v2548_v54 = vshll.u32 %v7066_v51, 16  ;;  %v4937_v5 = vld [vmem:[%s8678_s30 + $0x18] sm:$0xe] }
 0x146   : > { %v6579_v7 = vadd.f32 %v7750_v61, %v6574_v44  ;;  %v9856_v61 = vrot.slane %v2906_v20, 4  ;;  %v4992_v44 = vrot.slane %v4990_v3, 6  ;;  %v2912_v20 = vrot.slane %v9850_v58, 4  ;;  %v9873_v9 = vld [vmem:[%s8678_s30 + $0x1c] sm:$0xf] }
 0x147   : > { %7918 = vmatpush3.bf16.xpose.msra.mxu0 %v2959_v6  ;;  %v11434_v62 = vmov 0.0   ;;  %v2553_v55 = vshrl.u32 %v7067_v57, 16  ;;  %v4984_v3 = vor.u32 %v4983_v37, %v4980_v48  ;;  %v4957_v13 = vrot.slane %v4956_v40, 4  ;;  %v7076_v45 = vld [vmem:[%s8678_s30 + $0x3c] sm:$0xf] }
 0x148   : > { %7919 = vmatprep.subr.bf16.mxu0 %v11419_v0  ;;  %v6583_v6 = vmax.f32 %v6579_v7, 0.0  ;;  %v4997_v7 = vshrl.u32 %v4936_v24, 16  ;;  %v2550_v36 = vrot.slane %v2548_v54, 5  ;;  %v5006_v51 = vshrl.u32 %v4937_v5, 16 }
 0x149   : > { %7900 = vmatpush3.bf16.xpose.msra.mxu1 %v2440_v38  ;;  %v2919_v38 = vrot.slane %v2917_v18, 6  ;;  %v4971_v18 = vrot.slane %v4969_v59, 5  ;;  %v2556_v59 = vshll.u32 %v7067_v57, 16  ;;  %v5009_v57 = vshll.u32 %v4937_v5, 16 }
 0x14a   : > { %7901 = vmatprep.subr.bf16.mxu1 %v11419_v0  ;;  %6587 = vst [vmem:[%s9853_s14 + $0x18] sm:$0xff] %v6583_v6  ;;  %v5000_v0 = vshll.u32 %v4936_v24, 16  ;;  %v4993_v6 = vor.u32 %v4992_v44, %v4989_v29  ;;  %v4999_v1 = vrot.slane %v4997_v7, 5  ;;  %v2546_v24 = vrot.slane %v2545_v11, 4 }
 0x14b   : > { %v2920_v50 = vor.u32 %v2919_v38, %v9836_v25  ;;  %v4967_v25 = vrot.slane %v9860_v32, 4  ;;  %v4975_v49 = vor.u32 %v4974_v16, %v4971_v18  ;;  %v2536_v38 = vrot.slane %v2535_v17, 4  ;;  %v7069_v16 = vld [vmem:[%s8678_s30 + $0x20] sm:$0x1] }
 0x14c   : > { %v2558_v48 = vrot.slane %v2556_v59, 5  ;;  %v2564_v40 = vrot.slane %v9570_v15, 5  ;;  %v2568_v37 = vrot.slane %v9574_v19, 4  ;;  %v2911_v29 = vsel %vm8706_vm7, %v9856_v61, %v9850_v58 }
 0x14d   : > { %v4985_v44 = vrot.slane %v4984_v3, 4  ;;  %v4995_v7 = vrot.slane %v4993_v6, 4  ;;  %v2921_v11 = vsel %vm8706_vm7, %v2912_v20, %v2920_v50  ;;  %v4966_v17 = vsel %vm8706_vm7, %v4957_v13, %v9860_v32 }
 0x14e   : > { %v5015_v54 = vshrl.u32 %v9873_v9, 16  ;;  %v5018_v5 = vshll.u32 %v9873_v9, 16  ;;  %v4976_v58 = vsel %vm8706_vm7, %v4967_v25, %v4975_v49  ;;  %v2551_v61 = vsel %vm9877_vm13, %v2546_v24, %v2550_v36 }
 0x14f   : > { %7920 = vmatpush3.bf16.xpose.msra.mxu0 %v9804_v46  ;;  %v5002_v46 = vrot.slane %v5000_v0, 6  ;;  %v2555_v0 = vrot.slane %v2553_v55, 4  ;;  %v5008_v55 = vrot.slane %v5006_v51, 5  ;;  %v5011_v59 = vrot.slane %v5009_v57, 6 }
 0x150   : > { %7921 = vmatprep.subr.bf16.mxu0 %v11434_v62  ;;  %v2541_v32 = vsel %vm9877_vm13, %v2536_v38, %v2540_v63  ;;  %v2569_v50 = vor.u32 %v2568_v37, %v2564_v40  ;;  %v2572_v3 = vshll.u32 %v7069_v16, 16  ;;  %v4994_v13 = vsel %vm8706_vm7, %v4985_v44, %v4993_v6 }
 0x151   : > { %7902 = vmatpush3.bf16.xpose.msra.mxu1 %v9807_v56  ;;  %v5003_v18 = vor.u32 %v5002_v46, %v4999_v1  ;;  %v2559_v20 = vor.u32 %v2558_v48, %v2555_v0  ;;  %v2968_v1 = vsel %vm601_vm1, %v9826_v14, 0  ;;  %v7059_v46 = vcombine.low %v9817_v8, %v9830_v27  ;;  %v7251_v56 = vld [vmem:[%s8678_s30 + $0x5c] sm:$0x3] }
 0x152   : > { %7903 = vmatprep.subr.bf16.mxu1 %v11434_v62  ;;  %v7112_v63 = vcombine.low %v2911_v29, %v2921_v11  ;;  %v7301_v49 = vcombine.low %v4966_v17, %v4976_v58  ;;  %v5017_v24 = vrot.slane %v5015_v54, 5  ;;  %v5020_v38 = vrot.slane %v5018_v5, 6  ;;  %v4939_v5 = vld [vmem:[%s8678_s30 + $0x24] sm:$0xe] }
 0x153   : > { %v5004_v25 = vsel %vm8706_vm7, %v4995_v7, %v5003_v18  ;;  %v7114_v36 = vcombine.low %v2541_v32, %v2551_v61  ;;  %v5012_v51 = vor.u32 %v5011_v59, %v5008_v55  ;;  %v2560_v27 = vrot.slane %v2559_v20, 4  ;;  %v9922_v18 = vld [vmem:[%s8678_s30 + $0x28] sm:$0xf]  ;;  %v7072_v32 = vld [vmem:[%s8678_s30 + $0x2c] sm:$0x1] }
 0x154   : > { %v7302_v8 = vcombine.low %v4994_v13, %v5004_v25  ;;  %v2570_v0 = vrot.slane %v2569_v50, 4  ;;  %v2574_v6 = vrot.slane %v2572_v3, 5  ;;  %v2449_v44 = vsel %vm601_vm1, %v7059_v46, 0  ;;  %v7073_v20 = vld [vmem:[%s8678_s30 + $0x30] sm:$0xf] }
 0x155   : > { %v2971_v29 = vsel %vm601_vm1, %v7112_v63, 0  ;;  %v9919_v7 = vor.u32 %v5020_v38, %v5017_v24  ;;  %v5201_v16 = vsel %vm601_vm1, %v7301_v49, 0  ;;  %v9925_v11 = vrot.slane %v5012_v51, 4  ;;  %v4941_v46 = vld [vmem:[%s8678_s30 + $0x30] sm:$0xe] }
 0x156   : > { %v9930_v58 = vsel %vm601_vm1, %v7114_v36, 0  ;;  %v9933_v61 = vsel %vm601_vm1, %v7302_v8, 0  ;;  %v9937_v55 = vsel %vm9877_vm13, %v2560_v27, %v2564_v40  ;;  %v9941_v59 = vsel %vm9877_vm13, %v2570_v0, %v2574_v6  ;;  %v9952_v49 = vld [vmem:[%s8678_s30 + $0x34] sm:$0xf]  ;;  %v7035_v0 = vld [vmem:[%s11414_s1 + $0x1c] sm:$0xf] }
 0x157   : > { %7922 = vmatpush3.bf16.xpose.msra.mxu0 %v9813_v60  ;;  %v4938_v60 = vld [vmem:[%s8678_s30 + $0x20] sm:$0x3]  ;;  %v5023_v40 = vrot.slane %v9919_v7, 4  ;;  %v5034_v13 = vshrl.u32 %v4939_v5, 16  ;;  %v5037_v25 = vshll.u32 %v4939_v5, 16  ;;  %v5043_v63 = vshrl.u32 %v9922_v18, 16 }
 0x158   : > { %7923 = vmatprep.subr.bf16.mxu0 %v11434_v62  ;;  %v5025_v14 = vshrl.u32 %v4938_v60, 16  ;;  %v5028_v57 = vshll.u32 %v4938_v60, 16  ;;  %v11421_v60 = vrot.slane %v9579_v10, 5  ;;  %v5022_v24 = vsel %vm8706_vm7, %v9925_v11, %v9919_v7  ;;  %v4942_v5 = vld [vmem:[%s8678_s30 + $0x38] sm:$0x3] }
 0x159   : > { %7904 = vmatpush3.bf16.xpose.msra.mxu1 %v9810_v53  ;;  %v7070_v53 = vld [vmem:[%s8678_s30 + $0x24] sm:$0xf]  ;;  %v5046_v36 = vshll.u32 %v9922_v18, 16  ;;  %v2601_v51 = vshrl.u32 %v7073_v20, 16  ;;  %v5062_v8 = vshrl.u32 %v4941_v46, 16  ;;  %v5065_v27 = vshll.u32 %v4941_v46, 16 }
 0x15a   : > { %7905 = vmatprep.subr.bf16.mxu1 %v11434_v62  ;;  %v2577_v48 = vshrl.u32 %v7070_v53, 16  ;;  %v2580_v37 = vshll.u32 %v7070_v53, 16  ;;  %v5027_v17 = vrot.slane %v5025_v14, 5  ;;  %v5030_v54 = vrot.slane %v5028_v57, 6  ;;  %v4940_v53 = vld [vmem:[%s8678_s30 + $0x2c] sm:$0x3] }
 0x15b   : > { %v2596_v14 = vshll.u32 %v7072_v32, 16  ;;  %v2604_v57 = vshll.u32 %v7073_v20, 16  ;;  %v5036_v7 = vrot.slane %v5034_v13, 5  ;;  %v5039_v11 = vrot.slane %v5037_v25, 6  ;;  %v7075_v25 = vld [vmem:[%s8678_s30 + $0x38] sm:$0x1] }
 0x15c   : > { %v2579_v50 = vrot.slane %v2577_v48, 4  ;;  %v2582_v3 = vrot.slane %v2580_v37, 5  ;;  %v5031_v38 = vor.u32 %v5030_v54, %v5027_v17  ;;  %v5071_v37 = vshrl.u32 %v9952_v49, 16 }
 0x15d   : > { %v5045_v17 = vrot.slane %v5043_v63, 5  ;;  %v5053_v54 = vshrl.u32 %v4940_v53, 16  ;;  %v5048_v32 = vrot.slane %v5046_v36, 6  ;;  %v5056_v20 = vshll.u32 %v4940_v53, 16 }
 0x15e   : > { %v2583_v6 = vor.u32 %v2582_v3, %v2579_v50  ;;  %v2603_v46 = vrot.slane %v2601_v51, 4  ;;  %v2606_v50 = vrot.slane %v2604_v57, 5  ;;  %v2616_v3 = vrot.slane %v9618_v52, 4 }
 0x15f   : > { %7924 = vmatpush3.bf16.xpose.msra.mxu0 %v2968_v1  ;;  %v2592_v1 = vrot.slane %v9582_v22, 4  ;;  %v5067_v13 = vrot.slane %v5065_v27, 6  ;;  %v5073_v63 = vrot.slane %v5071_v37, 5  ;;  %v5084_v36 = vshll.u32 %v4942_v5, 16 }
 0x160   : > { %7925 = vmatprep.subr.bf16.mxu0 %v11434_v62  ;;  %v5032_v53 = vsel %vm8706_vm7, %v5023_v40, %v5031_v38  ;;  %v2584_v51 = vrot.slane %v2583_v6, 4  ;;  %v9982_v27 = vor.u32 %v5048_v32, %v5045_v17  ;;  %v5055_v37 = vrot.slane %v5053_v54, 5 }
 0x161   : > { %7906 = vmatpush3.bf16.xpose.msra.mxu1 %v2449_v44  ;;  %v2593_v48 = vor.u32 %v2592_v1, %v11421_v60  ;;  %v5074_v44 = vshll.u32 %v9952_v49, 16  ;;  %v5064_v1 = vrot.slane %v5062_v8, 5  ;;  %v5040_v8 = vor.u32 %v5039_v11, %v5036_v7 }
 0x162   : > { %8071 = vmatprep.subr.bf16.mxu1 %v11434_v62  ;;  %v11437_v12 = vrot.slane %v9615_v31, 5  ;;  %v2620_v4 = vshll.u32 %v7075_v25, 16  ;;  %v5086_v6 = vrot.slane %v5084_v36, 6  ;;  %v7115_v7 = vcombine.low %v9937_v55, %v9941_v59 }
 0x163   : > { %v5076_v60 = vrot.slane %v5074_v44, 6  ;;  %v2594_v57 = vrot.slane %v2593_v48, 4  ;;  %v5058_v44 = vrot.slane %v5056_v20, 6  ;;  %v5068_v40 = vor.u32 %v5067_v13, %v5064_v1 }
 0x164   : > { %v2617_v30 = vor.u32 %v2616_v3, %v11437_v12  ;;  %v2625_v48 = vshrl.u32 %v7076_v45, 16  ;;  %v7303_v11 = vcombine.low %v5022_v24, %v5032_v53  ;;  %v2628_v54 = vshll.u32 %v7076_v45, 16  ;;  %v10004_v24 = vld [vmem:[%s8678_s30 + $0x40] sm:$0xf] }
 0x165   : > { %v9986_v38 = vor.u32 %v5076_v60, %v5073_v63  ;;  %v11438_v12 = vrot.slane %v9579_v10, 5  ;;  %v5041_v32 = vrot.slane %v5040_v8, 4  ;;  %v5051_v20 = vrot.slane %v9982_v27, 4  ;;  %v7078_v63 = vld [vmem:[%s8678_s30 + $0x44] sm:$0x1] }
 0x166   : > { %v2618_v45 = vrot.slane %v2617_v30, 4  ;;  %v2622_v59 = vrot.slane %v2620_v4, 5  ;;  %v2627_v13 = vrot.slane %v2625_v48, 4  ;;  %v2636_v25 = vrot.slane %v9670_v41, 5  ;;  %v7079_v48 = vld [vmem:[%s8678_s30 + $0x48] sm:$0xf] }
 0x167   : > { %7926 = vmatpush3.bf16.xpose.msra.mxu0 %v2971_v29  ;;  %v5081_v29 = vshrl.u32 %v4942_v5, 16  ;;  %v2607_v5 = vor.u32 %v2606_v50, %v2603_v46  ;;  %v2589_v60 = vsel %vm9877_vm13, %v2584_v51, %v11438_v12  ;;  %v5059_v46 = vor.u32 %v5058_v44, %v5055_v37  ;;  %v4943_v50 = vld [vmem:[%s8678_s30 + $0x3c] sm:$0xe]  ;;  %v4944_v44 = vld [vmem:[%s8678_s30 + $0x44] sm:$0x3] }
 0x168   : > { %7908 = vmatmul.mubr.msk.bf16.vlgmr.msra.gmra.mrb[0].mxu1 %vm601_vm1, %v7035_v0  ;;  %7931 = vmatprep.subr.bf16.mxu0 %v11434_v62  ;;  %v2598_v0 = vrot.slane %v2596_v14, 5  ;;  %v5079_v3 = vrot.slane %v9986_v38, 4  ;;  %v2640_v36 = vrot.slane %v9672_v28, 4  ;;  %v5090_v4 = vshrl.u32 %v4943_v50, 16 }
 0x169   : > { %8072 = vmatpush3.bf16.xpose.msra.mxu1 %v5201_v16  ;;  %8087 = vmatprep.mubr.msk.bf16.mxu1 %vm8555_vm0, %v11434_v62  ;;  %v7088_v16 = vld [vmem:[%s11414_s1 + $0x24] sm:$0xf]  ;;  %v5083_v14 = vrot.slane %v5081_v29, 5  ;;  %v2608_v55 = vrot.slane %v2607_v5, 4  ;;  %v2630_v29 = vrot.slane %v2628_v54, 5  ;;  %v5093_v30 = vshll.u32 %v4943_v50, 16 }
 0x16a   : > { %8073 = vmatprep.subr.bf16.mxu1 %v11434_v62  ;;  %v2599_v17 = vsel %vm9877_vm13, %v2594_v57, %v2598_v0  ;;  %v3044_v53 = vsel %vm601_vm1, %v7115_v7, 0  ;;  %v5099_v51 = vshrl.u32 %v10004_v24, 16  ;;  %v5102_v57 = vshll.u32 %v10004_v24, 16 }
 0x16b   : > { %v5087_v1 = vor.u32 %v5086_v6, %v5083_v14  ;;  %v7116_v0 = vcombine.low %v2589_v60, %v2599_v17  ;;  %v5060_v8 = vsel %vm8706_vm7, %v5051_v20, %v5059_v46  ;;  %v2623_v37 = vsel %vm9877_vm13, %v2618_v45, %v2622_v59  ;;  %v10037_v59 = vld [vmem:[%s8678_s30 + $0x4c] sm:$0xf] }
 0x16c   : > { %v11439_v5 = vrot.slane %v9615_v31, 5  ;;  %v2631_v7 = vor.u32 %v2630_v29, %v2627_v13  ;;  %v5092_v17 = vrot.slane %v5090_v4, 5  ;;  %v5095_v54 = vrot.slane %v5093_v30, 6 }
 0x16d   : > { %v5088_v6 = vsel %vm8706_vm7, %v5079_v3, %v5087_v1  ;;  %v5101_v12 = vrot.slane %v5099_v51, 5  ;;  %v5104_v60 = vrot.slane %v5102_v57, 6  ;;  %v5112_v20 = vshll.u32 %v4944_v44, 16 }
 0x16e   : > { %7928 = vmatmul.mubr.msk.bf16.vlgmr.msra.gmra.mrb[8].mxu0 %vm601_vm1, %v7088_v16  ;;  %v5050_v16 = vsel %vm8706_vm7, %v5041_v32, %v9982_v27  ;;  %v2644_v27 = vshll.u32 %v7078_v63, 16  ;;  %v5109_v32 = vshrl.u32 %v4944_v44, 16  ;;  %v2649_v46 = vshrl.u32 %v7079_v48, 16  ;;  %v4945_v63 = vld [vmem:[%s8678_s30 + $0x48] sm:$0xe] }
 0x16f   : > { %7932 = vmatpush3.bf16.xpose.msra.mxu0 %v9930_v58  ;;  %7947 = vmatprep.mubr.msk.bf16.mxu0 %vm8555_vm0, %v11434_v62  ;;  %v5069_v58 = vrot.slane %v5068_v40, 4  ;;  %v2613_v40 = vsel %vm9877_vm13, %v2608_v55, %v11439_v5  ;;  %v3047_v50 = vsel %vm601_vm1, %v7116_v0, 0  ;;  %v7304_v55 = vcombine.low %v5050_v16, %v5060_v8  ;;  %v7081_v0 = vld [vmem:[%s8678_s30 + $0x50] sm:$0x1] }
 0x170   : > { %7933 = vmatprep.subr.bf16.mxu0 %v11434_v62  ;;  %v7117_v45 = vcombine.low %v2613_v40, %v2623_v37  ;;  %v2632_v3 = vrot.slane %v2631_v7, 4  ;;  %v2646_v13 = vrot.slane %v2644_v27, 5  ;;  %v5096_v29 = vor.u32 %v5095_v54, %v5092_v17  ;;  %v7082_v17 = vld [vmem:[%s8678_s30 + $0x54] sm:$0xf] }
 0x171   : > { %8074 = vmatpush3.bf16.xpose.msra.mxu1 %v9933_v61  ;;  %v5207_v61 = vsel %vm601_vm1, %v7303_v11, 0  ;;  %v5078_v14 = vsel %vm8706_vm7, %v5069_v58, %v9986_v38  ;;  %v2641_v11 = vor.u32 %v2640_v36, %v2636_v25  ;;  %v2652_v38 = vshll.u32 %v7079_v48, 16 }
 0x172   : > { %8075 = vmatprep.subr.bf16.mxu1 %v11434_v62  ;;  %v7305_v58 = vcombine.low %v5078_v14, %v5088_v6  ;;  %v10041_v36 = vor.u32 %v5104_v60, %v5101_v12  ;;  %v5111_v4 = vrot.slane %v5109_v32, 5  ;;  %v5114_v30 = vrot.slane %v5112_v20, 6  ;;  %v4947_v20 = vld [vmem:[%s8678_s30 + $0x54] sm:$0xe] }
 0x173   : > { %v2642_v1 = vrot.slane %v2641_v11, 4  ;;  %v2660_v51 = vrot.slane %v9691_v39, 5  ;;  %v2664_v57 = vrot.slane %v9684_v42, 4  ;;  %v5118_v16 = vshrl.u32 %v4945_v63, 16  ;;  %v4946_v11 = vld [vmem:[%s8678_s30 + $0x50] sm:$0x3] }
 0x174   : > { %v5121_v8 = vshll.u32 %v4945_v63, 16  ;;  %v5127_v37 = vshrl.u32 %v10037_v59, 16  ;;  %v5130_v44 = vshll.u32 %v10037_v59, 16  ;;  %v5210_v5 = vsel %vm601_vm1, %v7304_v55, 0  ;;  %v10065_v55 = vld [vmem:[%s8678_s30 + $0x58] sm:$0xf] }
 0x175   : > { %v3050_v40 = vsel %vm601_vm1, %v7117_v45, 0  ;;  %v5213_v14 = vsel %vm601_vm1, %v7305_v58, 0  ;;  %v10053_v6 = vsel %vm9877_vm13, %v2632_v3, %v2636_v25  ;;  %v2647_v27 = vsel %vm9877_vm13, %v2642_v1, %v2646_v13 }
 0x176   : > { %v5097_v48 = vrot.slane %v5096_v29, 4  ;;  %v5107_v7 = vrot.slane %v10041_v36, 4  ;;  %v5115_v54 = vor.u32 %v5114_v30, %v5111_v4  ;;  %v2665_v60 = vor.u32 %v2664_v57, %v2660_v51 }
 0x177   : > { %7934 = vmatpush3.bf16.xpose.msra.mxu0 %v3044_v53  ;;  %v2651_v53 = vrot.slane %v2649_v46, 4  ;;  %v2668_v32 = vshll.u32 %v7081_v0, 16  ;;  %v5120_v25 = vrot.slane %v5118_v16, 5  ;;  %v5123_v46 = vrot.slane %v5121_v8, 6 }
 0x178   : > { %7935 = vmatprep.subr.bf16.mxu0 %v11434_v62  ;;  %v5137_v45 = vshrl.u32 %v4946_v11, 16  ;;  %v5140_v58 = vshll.u32 %v4946_v11, 16  ;;  %v2673_v3 = vshrl.u32 %v7082_v17, 16  ;;  %v2676_v1 = vshll.u32 %v7082_v17, 16 }
 0x179   : > { %8076 = vmatpush3.bf16.xpose.msra.mxu1 %v5207_v61  ;;  %v2654_v61 = vrot.slane %v2652_v38, 5  ;;  %v5129_v38 = vrot.slane %v5127_v37, 5  ;;  %v7118_v13 = vcombine.low %v10053_v6, %v2647_v27  ;;  %v5106_v63 = vsel %vm8706_vm7, %v5097_v48, %v10041_v36  ;;  %v7084_v48 = vld [vmem:[%s8678_s30 + $0x5c] sm:$0x1] }
 0x17a   : > { %8077 = vmatprep.subr.bf16.mxu1 %v11434_v62  ;;  %v5146_v29 = vshrl.u32 %v4947_v20, 16  ;;  %v5149_v4 = vshll.u32 %v4947_v20, 16  ;;  %v5116_v30 = vsel %vm8706_vm7, %v5107_v7, %v5115_v54  ;;  %v5158_v57 = vshll.u32 %v10065_v55, 16 }
 0x17b   : > { %v2655_v12 = vor.u32 %v2654_v61, %v2651_v53  ;;  %v5155_v61 = vshrl.u32 %v10065_v55, 16  ;;  %v2666_v0 = vrot.slane %v2665_v60, 4  ;;  %v2670_v16 = vrot.slane %v2668_v32, 5 }
 0x17c   : > { %v5124_v8 = vor.u32 %v5123_v46, %v5120_v25  ;;  %v5142_v6 = vrot.slane %v5140_v58, 6  ;;  %v2675_v36 = vrot.slane %v2673_v3, 4  ;;  %v2678_v27 = vrot.slane %v2676_v1, 5  ;;  %v7085_v25 = vld [vmem:[%s8678_s30 + $0x60] sm:$0xf] }
 0x17d   : > { %v2656_v53 = vrot.slane %v2655_v12, 4  ;;  %v2684_v11 = vrot.slane %v9718_v21, 5  ;;  %v2688_v7 = vrot.slane %v9720_v2, 4  ;;  %v5148_v17 = vrot.slane %v5146_v29, 5 }
 0x17e   : > { %v5151_v54 = vrot.slane %v5149_v4, 6  ;;  %v5157_v12 = vrot.slane %v5155_v61, 5  ;;  %v5160_v60 = vrot.slane %v5158_v57, 6  ;;  %v7306_v46 = vcombine.low %v5106_v63, %v5116_v30 }
 0x17f   : > { %7936 = vmatpush3.bf16.xpose.msra.mxu0 %v3047_v50  ;;  %v5132_v50 = vrot.slane %v5130_v44, 6  ;;  %v4948_v44 = vld [vmem:[%s8678_s30 + $0x5c] sm:$0x3]  ;;  %v2679_v3 = vor.u32 %v2678_v27, %v2675_v36  ;;  %v2692_v1 = vshll.u32 %v7084_v48, 16  ;;  %v3053_v29 = vsel %vm601_vm1, %v7118_v13, 0 }
 0x180   : > { %7937 = vmatprep.subr.bf16.mxu0 %v11434_v62  ;;  %v5165_v32 = vshrl.u32 %v4948_v44, 16  ;;  %v5168_v20 = vshll.u32 %v4948_v44, 16  ;;  %v2689_v4 = vor.u32 %v2688_v7, %v2684_v11  ;;  %v2697_v63 = vshrl.u32 %v7085_v25, 16 }
 0x181   : > { %8078 = vmatpush3.bf16.xpose.msra.mxu1 %v5210_v5  ;;  %v5133_v37 = vor.u32 %v5132_v50, %v5129_v38  ;;  %v5139_v5 = vrot.slane %v5137_v45, 5  ;;  %v2671_v38 = vsel %vm9877_vm13, %v2666_v0, %v2670_v16  ;;  %v5125_v50 = vrot.slane %v5124_v8, 4 }
 0x182   : > { %8079 = vmatprep.subr.bf16.mxu1 %v11434_v62  ;;  %v5161_v30 = vor.u32 %v5160_v60, %v5157_v12  ;;  %v5167_v61 = vrot.slane %v5165_v32, 5  ;;  %v5170_v57 = vrot.slane %v5168_v20, 6  ;;  %v2680_v44 = vrot.slane %v2679_v3, 4  ;;  %v7124_v60 = vld [vmem:[%s8678_s30 + $0xc] sm:$0xc] }
 0x183   : > { %v5135_v45 = vrot.slane %v5133_v37, 4  ;;  %v5143_v58 = vor.u32 %v5142_v6, %v5139_v5  ;;  %v5134_v16 = vsel %vm8706_vm7, %v5125_v50, %v5133_v37  ;;  %v2694_v13 = vrot.slane %v2692_v1, 5 }
 0x184   : > { %v2690_v5 = vrot.slane %v2689_v4, 4  ;;  %v2708_v36 = vrot.slane %v9779_v43, 5  ;;  %v2712_v27 = vrot.slane %v9789_v34, 4  ;;  %v5163_v48 = vrot.slane %v5161_v30, 4  ;;  %v7126_v4 = vld [vmem:[%s8678_s30 + $0x18] sm:$0xc] }
 0x185   : > { %v5144_v8 = vsel %vm8706_vm7, %v5135_v45, %v5143_v58  ;;  %v5171_v7 = vor.u32 %v5170_v57, %v5167_v61  ;;  %v2699_v37 = vrot.slane %v2697_v63, 4  ;;  %v2685_v20 = vsel %vm9877_vm13, %v2680_v44, %v2684_v11  ;;  %v7125_v58 = vld [vmem:[%s8678_s30 + $0x14] sm:$0x7] }
 0x186   : > { %v7307_v12 = vcombine.low %v5134_v16, %v5144_v8  ;;  %v3126_v3 = vshrl.u32 %v7124_v60, 16  ;;  %v3129_v1 = vshll.u32 %v7124_v60, 16  ;;  %v3143_v8 = vshll.u32 %v7125_v58, 16 }
 0x187   : > { %7938 = vmatpush3.bf16.xpose.msra.mxu0 %v3050_v40  ;;  %v2661_v40 = vsel %vm9877_vm13, %v2656_v53, %v2660_v51  ;;  %v2700_v51 = vshll.u32 %v7085_v25, 16  ;;  %v5216_v53 = vsel %vm601_vm1, %v7306_v46, 0  ;;  %v2713_v25 = vor.u32 %v2712_v27, %v2708_v36  ;;  %v7127_v27 = vld [vmem:[%s8678_s30 + $0x20] sm:$0x7] }
 0x188   : > { %7939 = vmatprep.subr.bf16.mxu0 %v11434_v62  ;;  %v7119_v0 = vcombine.low %v2661_v40, %v2671_v38  ;;  %v2695_v40 = vsel %vm9877_vm13, %v2690_v5, %v2694_v13  ;;  %v5172_v50 = vsel %vm8706_vm7, %v5163_v48, %v5171_v7  ;;  %v3131_v16 = vrot.slane %v3129_v1, 7 }
 0x189   : > { %8080 = vmatpush3.bf16.xpose.msra.mxu1 %v5213_v14  ;;  %v5152_v14 = vor.u32 %v5151_v54, %v5148_v17  ;;  %v7087_v17 = vld [vmem:[%s8678_s30 + $0x68] sm:$0x1]  ;;  %v2702_v54 = vrot.slane %v2700_v51, 5  ;;  %v7120_v11 = vcombine.low %v2685_v20, %v2695_v40  ;;  %v2714_v63 = vrot.slane %v2713_v25, 4  ;;  %v7128_v40 = vld [vmem:[%s8678_s30 + $0x24] sm:$0xc] }
 0x18a   : > { %8081 = vmatprep.subr.bf16.mxu1 %v11434_v62  ;;  %v3056_v32 = vsel %vm601_vm1, %v7119_v0, 0  ;;  %v2716_v46 = vshll.u32 %v7087_v17, 16  ;;  %v3135_v51 = vrot.slane %v9536_v23, 7  ;;  %v3128_v0 = vrot.slane %v3126_v3, 6  ;;  %v4915_v17 = vld [vmem:[%s8678_s30] sm:$0xf] }
 0x18b   : > { %v5153_v6 = vrot.slane %v5152_v14, 4  ;;  %v2703_v45 = vor.u32 %v2702_v54, %v2699_v37  ;;  %v3149_v44 = vshrl.u32 %v7126_v4, 16  ;;  %v3152_v13 = vshll.u32 %v7126_v4, 16 }
 0x18c   : > { %v2718_v61 = vrot.slane %v2716_v46, 5  ;;  %v3059_v5 = vsel %vm601_vm1, %v7120_v11, 0  ;;  %v3132_v37 = vor.u32 %v3131_v16, %v3128_v0  ;;  %v3145_v54 = vrot.slane %v3143_v8, 7 }
 0x18d   : > { %v5162_v38 = vsel %vm8706_vm7, %v5153_v6, %v5161_v30  ;;  %v2704_v57 = vrot.slane %v2703_v45, 4  ;;  %v3134_v30 = vrot.slane %v9538_v47, 6  ;;  %v3157_v60 = vrot.slane %v9574_v19, 6 }
 0x18e   : > { %v7308_v14 = vcombine.low %v5162_v38, %v5172_v50  ;;  %v2719_v23 = vsel %vm9877_vm13, %v2714_v63, %v2718_v61  ;;  %v3158_v20 = vrot.slane %v9570_v15, 7  ;;  %v3163_v25 = vshrl.u32 %v7127_v27, 16  ;;  %v7300_v63 = vld [vmem:[%s11414_s1 + $0x44] sm:$0xf] }
 0x18f   : > { %7940 = vmatpush3.bf16.xpose.msra.mxu0 %v3053_v29  ;;  %v5219_v29 = vsel %vm601_vm1, %v7307_v12, 0  ;;  %v2709_v47 = vsel %vm9877_vm13, %v2704_v57, %v2708_v36  ;;  %v3136_v48 = vor.u32 %v3135_v51, %v3134_v30  ;;  %v3151_v12 = vrot.slane %v3149_v44, 6 }
 0x190   : > { %7941 = vmatprep.subr.bf16.mxu0 %v11434_v62  ;;  %v5222_v6 = vsel %vm601_vm1, %v7308_v14, 0  ;;  %v3166_v46 = vshll.u32 %v7127_v27, 16  ;;  %v7121_v36 = vcombine.low %v2709_v47, %v2719_v23  ;;  %v7310_v38 = vcombine.low %v4915_v17, %v9782_v33  ;;  %v7129_v33 = vld [vmem:[%s8678_s30 + $0x2c] sm:$0x7]  ;;  %v7130_v47 = vld [vmem:[%s8678_s30 + $0x30] sm:$0xc] }
 0x191   : > { %8082 = vmatpush3.bf16.xpose.msra.mxu1 %v5216_v53  ;;  %v3140_v53 = vshrl.u32 %v7125_v58, 16  ;;  %v3133_v50 = vrot.slane %v3132_v37, 4  ;;  %v3138_v45 = vrot.slane %v3136_v48, 4  ;;  %v3172_v19 = vshrl.u32 %v7128_v40, 16  ;;  %v7061_v17 = vld [vmem:[%s11414_s1 + $0x20] sm:$0xf] }
 0x192   : > { %8083 = vmatprep.subr.bf16.mxu1 %v11434_v62  ;;  %v3159_v1 = vor.u32 %v3158_v20, %v3157_v60  ;;  %v3168_v4 = vrot.slane %v3166_v46, 7  ;;  %v3175_v11 = vshll.u32 %v7128_v40, 16  ;;  %v3062_v14 = vsel %vm601_vm1, %v7121_v36, 0  ;;  %v4919_v40 = vld [vmem:[%s8678_s30 + $0x18] sm:$0xf] }
 0x193   : > { %v3142_v7 = vrot.slane %v3140_v53, 6  ;;  %v5308_v61 = vsel %vm601_vm1, %v7310_v38, 0  ;;  %v3137_v57 = vsel %vm10131_vm2, %v3133_v50, %v3136_v48  ;;  %v3174_v51 = vrot.slane %v3172_v19, 6  ;;  %v4917_v53 = vld [vmem:[%s8678_s30 + $0xc] sm:$0xf] }
 0x194   : > { %v3161_v16 = vrot.slane %v3159_v1, 4  ;;  %v3180_v44 = vrot.slane %v9582_v22, 6  ;;  %v3189_v27 = vshll.u32 %v7129_v33, 16  ;;  %v7311_v22 = vcombine.low %v4917_v53, %v9841_v26  ;;  %v7131_v26 = vld [vmem:[%s8678_s30 + $0x38] sm:$0x7] }
 0x195   : > { %v3146_v58 = vor.u32 %v3145_v54, %v3142_v7  ;;  %v3195_v7 = vshrl.u32 %v7130_v47, 16  ;;  %v3198_v20 = vshll.u32 %v7130_v47, 16  ;;  %v7132_v38 = vld [vmem:[%s8678_s30 + $0x3c] sm:$0xc]  ;;  %v3203_v19 = vrot.slane %v9618_v52, 6 }
 0x196   : > { %v3191_v60 = vrot.slane %v3189_v27, 7 }
 0x197   : > { %7942 = vmatpush3.bf16.xpose.msra.mxu0 %v3056_v32  ;;  %v3154_v32 = vrot.slane %v3152_v13, 7  ;;  %v3147_v30 = vsel %vm10131_vm2, %v3138_v45, %v3146_v58  ;;  %v3177_v13 = vrot.slane %v3175_v11, 7  ;;  %v3197_v36 = vrot.slane %v3195_v7, 6 }
 0x198   : > { %7943 = vmatprep.subr.bf16.mxu0 %v11434_v62  ;;  %v7140_v23 = vcombine.low %v3137_v57, %v3147_v30  ;;  %v7312_v11 = vcombine.low %v4919_v40, %v9873_v9  ;;  %v7133_v57 = vld [vmem:[%s8678_s30 + $0x44] sm:$0x7] }
 0x199   : > { %8084 = vmatpush3.bf16.xpose.msra.mxu1 %v5219_v29  ;;  %v3155_v3 = vor.u32 %v3154_v32, %v3151_v12  ;;  %v3165_v29 = vrot.slane %v3163_v25, 6  ;;  %v3178_v37 = vor.u32 %v3177_v13, %v3174_v51  ;;  %v5311_v25 = vsel %vm601_vm1, %v7311_v22, 0 }
 0x19a   : > { %8085 = vmatprep.subr.bf16.mxu1 %v11434_v62  ;;  %v3337_v32 = vsel %vm601_vm1, %v7140_v23, 0  ;;  %v5314_v9 = vsel %vm601_vm1, %v7312_v11, 0  ;;  %v3226_v13 = vrot.slane %v9672_v28, 6  ;;  %v3235_v27 = vshll.u32 %v7133_v57, 16 }
 0x19b   : > { %v3156_v0 = vrot.slane %v3155_v3, 4  ;;  %v3169_v8 = vor.u32 %v3168_v4, %v3165_v29  ;;  %v3179_v50 = vrot.slane %v3178_v37, 4  ;;  %v3200_v3 = vrot.slane %v3198_v20, 7 }
 0x19c   : > { %v3209_v29 = vshrl.u32 %v7131_v26, 16  ;;  %v3212_v4 = vshll.u32 %v7131_v26, 16 }
 0x19d   : > { %v3170_v48 = vsel %vm10131_vm2, %v3161_v16, %v3169_v8  ;;  %v3201_v30 = vor.u32 %v3200_v3, %v3197_v36  ;;  %v3249_v36 = vrot.slane %v9684_v42, 6  ;;  %v7136_v3 = vld [vmem:[%s8678_s30 + $0x54] sm:$0xc] }
 0x19e   : > { %v3211_v53 = vrot.slane %v3209_v29, 6  ;;  %v3264_v11 = vshrl.u32 %v7136_v3, 16 }
 0x19f   : > { %7944 = vmatpush3.bf16.xpose.msra.mxu0 %v3059_v5  ;;  %v3181_v5 = vrot.slane %v9579_v10, 7  ;;  %v3160_v10 = vsel %vm10131_vm2, %v3156_v0, %v3159_v1  ;;  %v3204_v1 = vrot.slane %v9615_v31, 7  ;;  %v4921_v31 = vld [vmem:[%s8678_s30 + $0x24] sm:$0xf]  ;;  %v3214_v0 = vrot.slane %v3212_v4, 7 }
 0x1a0   : > { %7945 = vmatprep.subr.bf16.mxu0 %v11434_v62  ;;  %v7141_v46 = vcombine.low %v3160_v10, %v3170_v48  ;;  %v7313_v23 = vcombine.low %v4921_v31, %v9922_v18  ;;  %v3202_v22 = vrot.slane %v3201_v30, 4  ;;  %v7138_v31 = vld [vmem:[%s8678_s30 + $0x60] sm:$0xc] }
 0x1a1   : > { %8086 = vmatpush3.bf16.xpose.msra.mxu1 %v5222_v6  ;;  %v3186_v6 = vshrl.u32 %v7129_v33, 16  ;;  %v3182_v54 = vor.u32 %v3181_v5, %v3180_v44  ;;  %v3221_v33 = vshll.u32 %v7132_v38, 16  ;;  %v3205_v51 = vor.u32 %v3204_v1, %v3203_v19  ;;  %v7134_v44 = vld [vmem:[%s8678_s30 + $0x48] sm:$0xc] }
 0x1a2   : > { %8091 = vmatprep.subr.bf16.mxu1 %v11434_v62  ;;  %v3340_v52 = vsel %vm601_vm1, %v7141_v46, 0  ;;  %v3227_v5 = vrot.slane %v9670_v41, 7  ;;  %v3215_v48 = vor.u32 %v3214_v0, %v3211_v53  ;;  %v3241_v7 = vshrl.u32 %v7134_v44, 16 }
 0x1a3   : > { %v3188_v12 = vrot.slane %v3186_v6, 6  ;;  %v3184_v45 = vrot.slane %v3182_v54, 4  ;;  %v3223_v8 = vrot.slane %v3221_v33, 7  ;;  %v3232_v6 = vshrl.u32 %v7133_v57, 16  ;;  %v7137_v57 = vld [vmem:[%s8678_s30 + $0x5c] sm:$0x7] }
 0x1a4   : > { %v3207_v10 = vrot.slane %v3205_v51, 4  ;;  %v3244_v37 = vshll.u32 %v7134_v44, 16  ;;  %v3228_v41 = vor.u32 %v3227_v5, %v3226_v13  ;;  %v3243_v26 = vrot.slane %v3241_v7, 6 }
 0x1a5   : > { %v3192_v58 = vor.u32 %v3191_v60, %v3188_v12  ;;  %v3234_v28 = vrot.slane %v3232_v6, 6  ;;  %v5317_v12 = vsel %vm601_vm1, %v7313_v23, 0  ;;  %v7135_v60 = vld [vmem:[%s8678_s30 + $0x50] sm:$0x7]  ;;  %v3266_v0 = vrot.slane %v3264_v11, 6 }
 0x1a6   : > { %v3216_v20 = vsel %vm10131_vm2, %v3207_v10, %v3215_v48  ;;  %v3246_v40 = vrot.slane %v3244_v37, 7  ;;  %v3258_v19 = vshll.u32 %v7135_v60, 16  ;;  %v3272_v44 = vrot.slane %v9720_v2, 6  ;;  %v7139_v10 = vld [vmem:[%s8678_s30 + $0x68] sm:$0x7] }
 0x1a7   : > { %7946 = vmatpush3.bf16.xpose.msra.mxu0 %v3062_v14  ;;  %v3218_v14 = vshrl.u32 %v7132_v38, 16  ;;  %v3250_v38 = vrot.slane %v9691_v39, 7  ;;  %v3273_v13 = vrot.slane %v9718_v21, 7  ;;  %v3278_v5 = vshrl.u32 %v7137_v57, 16 }
 0x1a8   : > { %8088 = vmatmul.mubr.msk.bf16.vlgmr.msra.gmra.mrb[4].mxu1 %vm601_vm1, %v7300_v63  ;;  %7951 = vmatprep.subr.bf16.mxu0 %v11434_v62  ;;  %v3183_v63 = vsel %vm10131_vm2, %v3179_v50, %v3182_v54  ;;  %v3237_v54 = vrot.slane %v3235_v27, 7  ;;  %v3230_v50 = vrot.slane %v3228_v41, 4  ;;  %v3247_v42 = vor.u32 %v3246_v40, %v3243_v26  ;;  %v7151_v40 = vld [vmem:[%s8678_s30 + $0x28] sm:$0xf] }
 0x1a9   : > { %8092 = vmatpush3.bf16.xpose.msra.mxu1 %v5308_v61  ;;  %8107 = vmatprep.mubr.msk.bf16.mxu1 %vm8555_vm0, %v11434_v62  ;;  %v3193_v61 = vsel %vm10131_vm2, %v3184_v45, %v3192_v58  ;;  %v3220_v16 = vrot.slane %v3218_v14, 6  ;;  %v3255_v58 = vshrl.u32 %v7135_v60, 16  ;;  %v3251_v39 = vor.u32 %v3250_v38, %v3249_v36 }
 0x1aa   : > { %8093 = vmatprep.subr.bf16.mxu1 %v11434_v62  ;;  %v7142_v47 = vcombine.low %v3183_v63, %v3193_v61  ;;  %v3238_v45 = vor.u32 %v3237_v54, %v3234_v28  ;;  %v3267_v63 = vshll.u32 %v7136_v3, 16  ;;  %v3281_v6 = vshll.u32 %v7137_v57, 16  ;;  %v8450_v57 = vld [vmem:[%s8678_s30 + $0x4] sm:$0xf] }
 0x1ab   : > { %v3257_v33 = vrot.slane %v3255_v58, 6  ;;  %v3253_v53 = vrot.slane %v3251_v39, 4  ;;  %v3287_v27 = vshrl.u32 %v7138_v31, 16  ;;  %v3274_v7 = vor.u32 %v3273_v13, %v3272_v44 }
 0x1ac   : > { %v3343_v18 = vsel %vm601_vm1, %v7142_v47, 0  ;;  %v3239_v14 = vsel %vm10131_vm2, %v3230_v50, %v3238_v45  ;;  %v3290_v47 = vshll.u32 %v7138_v31, 16  ;;  %v3280_v37 = vrot.slane %v3278_v5, 6  ;;  %v4929_v50 = vld [vmem:[%s8678_s30 + $0x54] sm:$0xf] }
 0x1ad   : > { %v3289_v28 = vrot.slane %v3287_v27, 6  ;;  %v3301_v60 = vshrl.u32 %v7139_v10, 16  ;;  %v3276_v36 = vrot.slane %v3274_v7, 4  ;;  %v5410_v31 = vrot.slane %v8450_v57, 7 }
 0x1ae   : > { %7948 = vmatmul.mubr.msk.bf16.vlgmr.msra.gmra.mrb[8].mxu0 %vm601_vm1, %v7061_v17  ;;  %v3224_v17 = vor.u32 %v3223_v8, %v3220_v16  ;;  %v3269_v8 = vrot.slane %v3267_v63, 7  ;;  %v3292_v54 = vrot.slane %v3290_v47, 7  ;;  %v7153_v47 = vld [vmem:[%s8678_s30 + $0x30] sm:$0xf] }
 0x1af   : > { %7952 = vmatpush3.bf16.xpose.msra.mxu0 %v3337_v32  ;;  %7967 = vmatprep.mubr.msk.bf16.mxu0 %vm8555_vm0, %v11434_v62  ;;  %v3206_v32 = vsel %vm10131_vm2, %v3202_v22, %v3205_v51  ;;  %v3248_v51 = vrot.slane %v3247_v42, 4 }
 0x1b0   : > { %7953 = vmatprep.subr.bf16.mxu0 %v11434_v62  ;;  %v3225_v46 = vrot.slane %v3224_v17, 4  ;;  %v7143_v1 = vcombine.low %v3206_v32, %v3216_v20  ;;  %v3270_v48 = vor.u32 %v3269_v8, %v3266_v0  ;;  %v4927_v17 = vld [vmem:[%s8678_s30 + $0x48] sm:$0xf] }
 0x1b1   : > { %8094 = vmatpush3.bf16.xpose.msra.mxu1 %v5311_v25  ;;  %v4923_v25 = vld [vmem:[%s8678_s30 + $0x30] sm:$0xf]  ;;  %v3252_v2 = vsel %vm10131_vm2, %v3248_v51, %v3251_v39  ;;  %v7316_v26 = vcombine.low %v4927_v17, %v10037_v59  ;;  %v3437_v59 = vshll.u32 %v7151_v40, 16  ;;  %v7317_v39 = vcombine.low %v4929_v50, %v10065_v55  ;;  %v5374_v51 = vld [vmem:[%s8678_s30 + $0x8] sm:$0x7] }
 0x1b2   : > { %8095 = vmatprep.subr.bf16.mxu1 %v11434_v62  ;;  %v7314_v29 = vcombine.low %v4923_v25, %v9952_v49  ;;  %v3229_v4 = vsel %vm10131_vm2, %v3225_v46, %v3228_v41  ;;  %v3346_v61 = vsel %vm601_vm1, %v7143_v1, 0  ;;  %v3283_v41 = vrot.slane %v3281_v6, 7  ;;  %v7150_v46 = vld [vmem:[%s8678_s30 + $0x24] sm:$0xf] }
 0x1b3   : > { %v7144_v30 = vcombine.low %v3229_v4, %v3239_v14  ;;  %v3271_v25 = vrot.slane %v3270_v48, 4  ;;  %v3431_v3 = vshll.u32 %v7150_v46, 16  ;;  %v3441_v1 = vshrl.u32 %v7151_v40, 16  ;;  %v10243_v14 = vld [vmem:[%s8678_s30 + $0x34] sm:$0xf] }
 0x1b4   : > { %v5320_v49 = vsel %vm601_vm1, %v7314_v29, 0  ;;  %v3284_v38 = vor.u32 %v3283_v41, %v3280_v37  ;;  %v5326_v4 = vsel %vm601_vm1, %v7316_v26, 0  ;;  %v3461_v44 = vshll.u32 %v10243_v14, 16 }
 0x1b5   : > { %v3349_v23 = vsel %vm601_vm1, %v7144_v30, 0  ;;  %v3275_v42 = vsel %vm10131_vm2, %v3271_v25, %v3274_v7  ;;  %v3443_v8 = vrot.slane %v3441_v1, 4  ;;  %v3465_v13 = vshrl.u32 %v10243_v14, 16 }
 0x1b6   : > { %v3285_v11 = vsel %vm10131_vm2, %v3276_v36, %v3284_v38  ;;  %v5329_v6 = vsel %vm601_vm1, %v7317_v39, 0  ;;  %v3455_v26 = vshll.u32 %v7153_v47, 16  ;;  %v10291_v39 = vrot.slane %v3461_v44, 5 }
 0x1b7   : > { %7954 = vmatpush3.bf16.xpose.msra.mxu0 %v3340_v52  ;;  %v3260_v52 = vrot.slane %v3258_v19, 7  ;;  %v3428_v19 = vshrl.u32 %v7150_v46, 16  ;;  %v7146_v5 = vcombine.low %v3275_v42, %v3285_v11 }
 0x1b8   : > { %7955 = vmatprep.subr.bf16.mxu0 %v11434_v62  ;;  %v3457_v42 = vrot.slane %v3455_v26, 5 }
 0x1b9   : > { %8096 = vmatpush3.bf16.xpose.msra.mxu1 %v5314_v9  ;;  %v4925_v9 = vld [vmem:[%s8678_s30 + $0x3c] sm:$0xf]  ;;  %v3261_v16 = vor.u32 %v3260_v52, %v3257_v33  ;;  %v3738_v33 = vrot.slane %v3441_v1, 6  ;;  %v3739_v52 = vrot.slane %v3437_v59, 7  ;;  %v3430_v55 = vrot.slane %v3428_v19, 4 }
 0x1ba   : > { %8097 = vmatprep.subr.bf16.mxu1 %v11434_v62  ;;  %v7315_v22 = vcombine.low %v4925_v9, %v10004_v24  ;;  %v3295_v24 = vrot.slane %v9789_v34, 6  ;;  %v3293_v34 = vor.u32 %v3292_v54, %v3289_v28  ;;  %v7152_v9 = vld [vmem:[%s8678_s30 + $0x2c] sm:$0x1]  ;;  %v5375_v28 = vld [vmem:[%s8678_s30 + $0xc] sm:$0x8] }
 0x1bb   : > { %v3262_v21 = vsel %vm10131_vm2, %v3253_v53, %v3261_v16  ;;  %v3433_v53 = vrot.slane %v3431_v3, 5  ;;  %v10249_v0 = vor.u32 %v3739_v52, %v3738_v33  ;;  %v10252_v16 = vrot.slane %v3437_v59, 5  ;;  %v5376_v54 = vld [vmem:[%s8678_s30 + $0x14] sm:$0x7]  ;;  %v7155_v33 = vld [vmem:[%s8678_s30 + $0x38] sm:$0x1] }
 0x1bc   : > { %v5323_v32 = vsel %vm601_vm1, %v7315_v22, 0  ;;  %v7145_v20 = vcombine.low %v3252_v2, %v3262_v21  ;;  %v3294_v63 = vrot.slane %v3293_v34, 4  ;;  %v5413_v22 = vrot.slane %v5374_v51, 7  ;;  %v10288_v34 = vld [vmem:[%s8678_s30 + $0x4c] sm:$0xf] }
 0x1bd   : > { %v3761_v2 = vrot.slane %v3465_v13, 6  ;;  %v3762_v21 = vrot.slane %v3461_v44, 7  ;;  %v3434_v37 = vor.u32 %v3433_v53, %v3430_v55  ;;  %v3447_v41 = vshll.u32 %v7152_v9, 16  ;;  %v10311_v9 = vld [vmem:[%s8678_s30 + $0x58] sm:$0xf] }
 0x1be   : > { %v3352_v29 = vsel %vm601_vm1, %v7145_v20, 0  ;;  %v3355_v20 = vsel %vm601_vm1, %v7146_v5, 0  ;;  %v7321_v50 = vrot.slane %v5375_v28, 11  ;;  %v3513_v11 = vshrl.u32 %v10288_v34, 16 }
 0x1bf   : > { %7956 = vmatpush3.bf16.xpose.msra.mxu0 %v3343_v18  ;;  %v3304_v18 = vshll.u32 %v7139_v10, 16  ;;  %v10260_v10 = vld [vmem:[%s8678_s30 + $0x40] sm:$0xf]  ;;  %v3435_v59 = vrot.slane %v3434_v37, 4  ;;  %v3467_v52 = vrot.slane %v3465_v13, 4  ;;  %v3471_v5 = vshll.u32 %v7155_v33, 16 }
 0x1c0   : > { %7957 = vmatprep.subr.bf16.mxu0 %v11434_v62  ;;  %v3485_v25 = vshll.u32 %v10260_v10, 16  ;;  %v3489_v46 = vshrl.u32 %v10260_v10, 16  ;;  %v3537_v28 = vshrl.u32 %v10311_v9, 16 }
 0x1c1   : > { %8098 = vmatpush3.bf16.xpose.msra.mxu1 %v5317_v12  ;;  %v3296_v12 = vrot.slane %v9779_v43, 7  ;;  %v3303_v43 = vrot.slane %v3301_v60, 6  ;;  %v3306_v58 = vrot.slane %v3304_v18, 7  ;;  %v3452_v18 = vshrl.u32 %v7153_v47, 16  ;;  %v7297_v47 = vld [vmem:[%s11414_s1 + $0x40] sm:$0xf] }
 0x1c2   : > { %8099 = vmatprep.subr.bf16.mxu1 %v11434_v62  ;;  %v3784_v19 = vrot.slane %v3489_v46, 6  ;;  %v3785_v3 = vrot.slane %v3485_v25, 7  ;;  %v3440_v51 = vsel %vm9877_vm13, %v3435_v59, %v10252_v16  ;;  %v3491_v37 = vrot.slane %v3489_v46, 4  ;;  %v7123_v59 = vld [vmem:[%s11414_s1 + $0x28] sm:$0xf] }
 0x1c3   : > { %v10232_v45 = vor.u32 %v3296_v12, %v3295_v24  ;;  %v3307_v30 = vor.u32 %v3306_v58, %v3303_v43  ;;  %v3444_v24 = vor.u32 %v3443_v8, %v10252_v16  ;;  %v8451_v12 = vld [vmem:[%s8678_s30 + $0x10] sm:$0xf]  ;;  %v5420_v43 = vrot.slane %v5376_v54, 7  ;;  %v7156_v58 = vld [vmem:[%s8678_s30 + $0x3c] sm:$0xf] }
 0x1c4   : > { %v5417_v60 = vrot.slane %v8451_v12, 7  ;;  %v10294_v14 = vor.u32 %v3785_v3, %v3784_v19 }
 0x1c5   : > { %v3298_v48 = vsel %vm10131_vm2, %v3294_v63, %v10232_v45  ;;  %v3445_v1 = vrot.slane %v3444_v24, 4  ;;  %v3476_v63 = vshrl.u32 %v7156_v58, 16 }
 0x1c6   : > { %v5418_v55 = vsel %vm10269_vm5, %v7321_v50, %v5417_v60 }
 0x1c7   : > { %7958 = vmatpush3.bf16.xpose.msra.mxu0 %v3346_v61  ;;  %v3299_v61 = vrot.slane %v10232_v45, 4  ;;  %v3449_v45 = vrot.slane %v3447_v41, 5  ;;  %v3478_v10 = vrot.slane %v3476_v63, 4  ;;  %v3533_v41 = vshll.u32 %v10311_v9, 16  ;;  %v10358_v63 = vld [vmem:[%s8678_s30 + $0x70] sm:$0xf] }
 0x1c8   : > { %7959 = vmatprep.subr.bf16.mxu0 %v11434_v62 }
 0x1c9   : > { %8100 = vmatpush3.bf16.xpose.msra.mxu1 %v5320_v49  ;;  %v5373_v49 = vld [vmem:[%s8678_s30] sm:$0x8]  ;;  %v3308_v7 = vsel %vm10131_vm2, %v3299_v61, %v3307_v30  ;;  %v3479_v61 = vshll.u32 %v7156_v58, 16  ;;  %v3807_v30 = vrot.slane %v3513_v11, 6  ;;  %v3450_v44 = vsel %vm9877_vm13, %v3445_v1, %v3449_v45 }
 0x1ca   : > { %8101 = vmatprep.subr.bf16.mxu1 %v11434_v62  ;;  %v7320_v27 = vrot.slane %v5373_v49, 11  ;;  %v7147_v40 = vcombine.low %v3298_v48, %v3308_v7  ;;  %v3509_v49 = vshll.u32 %v10288_v34, 16  ;;  %v7158_v48 = vld [vmem:[%s8678_s30 + $0x44] sm:$0x1]  ;;  %v10327_v7 = vrot.slane %v3485_v25, 5 }
 0x1cb   : > { %v7174_v54 = vcombine.low %v3440_v51, %v3450_v44  ;;  %v3830_v25 = vrot.slane %v3537_v28, 6  ;;  %v3831_v46 = vrot.slane %v3533_v41, 7  ;;  %v3495_v45 = vshll.u32 %v7158_v48, 16  ;;  %v5379_v44 = vld [vmem:[%s8678_s30 + $0x24] sm:$0x8] }
 0x1cc   : > { %v5411_v36 = vsel %vm10269_vm5, %v7320_v27, %v5410_v31  ;;  %v3358_v57 = vsel %vm601_vm1, %v7147_v40, 0  ;;  %v3808_v8 = vrot.slane %v3509_v49, 7  ;;  %v8452_v27 = vld [vmem:[%s8678_s30 + $0x1c] sm:$0xf]  ;;  %v7159_v40 = vld [vmem:[%s8678_s30 + $0x48] sm:$0xf]  ;;  %v3492_v58 = vor.u32 %v3491_v37, %v10327_v7 }
 0x1cd   : > { %v5424_v16 = vrot.slane %v8452_v27, 7  ;;  %v10346_v3 = vor.u32 %v3831_v46, %v3830_v25  ;;  %v3500_v1 = vshrl.u32 %v7159_v40, 16 }
 0x1cf   : > { %7960 = vmatpush3.bf16.xpose.msra.mxu0 %v3349_v23  ;;  %v5412_v23 = vrot.slane %v5410_v31, 4  ;;  %v5426_v50 = vrot.slane %v5424_v16, 4 }
 0x1d0   : > { %7961 = vmatprep.subr.bf16.mxu0 %v11434_v62 }
 0x1d1   : > { %8102 = vmatpush3.bf16.xpose.msra.mxu1 %v5323_v32  ;;  %v10278_v32 = vor.u32 %v3762_v21, %v3761_v2  ;;  %v5414_v38 = vsel %vm10269_vm5, %v5412_v23, %v5413_v22  ;;  %v3468_v23 = vor.u32 %v3467_v52, %v10291_v39  ;;  %v5378_v22 = vld [vmem:[%s8678_s30 + $0x20] sm:$0x7]  ;;  %v3481_v2 = vrot.slane %v3479_v61, 5 }
 0x1d2   : > { %8103 = vmatprep.subr.bf16.mxu1 %v11434_v62  ;;  %v7328_v31 = vcombine.low %v5411_v36, %v5414_v38  ;;  %v10324_v21 = vor.u32 %v3808_v8, %v3807_v30  ;;  %v5427_v26 = vrot.slane %v5378_v22, 7  ;;  %v3497_v8 = vrot.slane %v3495_v45, 5 }
 0x1d3   : > { %v3469_v38 = vrot.slane %v3468_v23, 4  ;;  %v7161_v23 = vld [vmem:[%s8678_s30 + $0x50] sm:$0x1]  ;;  %v10381_v22 = vrot.slane %v3509_v49, 5  ;;  %v7323_v49 = vrot.slane %v5379_v44, 11  ;;  %v10424_v44 = vrot.slane %v3533_v41, 5 }
 0x1d4   : > { %v5492_v24 = vsel %vm601_vm1, %v7328_v31, 0  ;;  %v5428_v30 = vsel %vm10269_vm5, %v5426_v50, %v5427_v26  ;;  %v3519_v25 = vshll.u32 %v7161_v23, 16 }
 0x1d7   : > { %7962 = vmatpush3.bf16.xpose.msra.mxu0 %v3352_v29  ;;  %v5419_v29 = vrot.slane %v5417_v60, 4 }
 0x1d8   : > { %7963 = vmatprep.subr.bf16.mxu0 %v11434_v62 }
 0x1d9   : > { %8104 = vmatpush3.bf16.xpose.msra.mxu1 %v5326_v4  ;;  %v3454_v4 = vrot.slane %v3452_v18, 4  ;;  %v5421_v53 = vsel %vm10269_vm5, %v5419_v29, %v5420_v43  ;;  %v10333_v18 = vld [vmem:[%s8678_s30 + $0x64] sm:$0xf]  ;;  %v3482_v43 = vor.u32 %v3481_v2, %v3478_v10  ;;  %v3503_v29 = vshll.u32 %v7159_v40, 16 }
 0x1da   : > { %8105 = vmatprep.subr.bf16.mxu1 %v11434_v62  ;;  %v7329_v12 = vcombine.low %v5418_v55, %v5421_v53  ;;  %v3561_v19 = vshrl.u32 %v10333_v18, 16  ;;  %v3493_v53 = vrot.slane %v3492_v58, 4  ;;  %v3515_v10 = vrot.slane %v3513_v11, 4 }
 0x1db   : > { %v3458_v13 = vor.u32 %v3457_v42, %v3454_v4  ;;  %v3557_v4 = vshll.u32 %v10333_v18, 16  ;;  %v3647_v42 = vsel %vm601_vm1, %v7174_v54, 0  ;;  %v3483_v55 = vrot.slane %v3482_v43, 4  ;;  %v10391_v54 = vld [vmem:[%s8678_s30 + $0x7c] sm:$0xf] }
 0x1dc   : > { %v5495_v33 = vsel %vm601_vm1, %v7329_v12, 0  ;;  %v3853_v61 = vrot.slane %v3561_v19, 6  ;;  %v3505_v27 = vrot.slane %v3503_v29, 5  ;;  %v3581_v2 = vshll.u32 %v10358_v63, 16 }
 0x1dd   : > { %v3459_v36 = vrot.slane %v3458_v13, 4  ;;  %v3854_v51 = vrot.slane %v3557_v4, 7  ;;  %v8453_v13 = vld [vmem:[%s8678_s30 + $0x28] sm:$0xf]  ;;  %v3498_v26 = vsel %vm9877_vm13, %v3493_v53, %v3497_v8  ;;  %v3516_v46 = vor.u32 %v3515_v10, %v10381_v22 }
 0x1de   : > { %v3877_v11 = vrot.slane %v3581_v2, 7 }
 0x1df   : > { %7964 = vmatpush3.bf16.xpose.msra.mxu0 %v3355_v20  ;;  %v3473_v20 = vrot.slane %v3471_v5, 5  ;;  %v5431_v5 = vrot.slane %v8453_v13, 7  ;;  %v3539_v13 = vrot.slane %v3537_v28, 4 }
 0x1e0   : > { %7965 = vmatprep.subr.bf16.mxu0 %v11434_v62 }
 0x1e1   : > { %8106 = vmatpush3.bf16.xpose.msra.mxu1 %v5329_v6  ;;  %v5377_v6 = vld [vmem:[%s8678_s30 + $0x18] sm:$0x8]  ;;  %v3474_v31 = vsel %vm9877_vm13, %v3469_v38, %v3473_v20  ;;  %v3488_v20 = vsel %vm9877_vm13, %v3483_v55, %v10327_v7  ;;  %v3609_v38 = vshrl.u32 %v10391_v54, 16  ;;  %v3605_v7 = vshll.u32 %v10391_v54, 16  ;;  %v5382_v55 = vld [vmem:[%s8678_s30 + $0x38] sm:$0x7] }
 0x1e2   : > { %8111 = vmatprep.subr.bf16.mxu1 %v11434_v62  ;;  %v7322_v60 = vrot.slane %v5377_v6, 11  ;;  %v3502_v6 = vrot.slane %v3500_v1, 4  ;;  %v7176_v29 = vcombine.low %v3488_v20, %v3498_v26  ;;  %v5383_v26 = vld [vmem:[%s8678_s30 + $0x3c] sm:$0x8] }
 0x1e3   : > { %v3899_v1 = vrot.slane %v3609_v38, 6 }
 0x1e4   : > { %v5425_v52 = vsel %vm10269_vm5, %v7322_v60, %v5424_v16  ;;  %v3585_v16 = vshrl.u32 %v10358_v63, 16  ;;  %v5433_v60 = vrot.slane %v5431_v5, 4  ;;  %v3506_v40 = vor.u32 %v3505_v27, %v3502_v6  ;;  %v7164_v27 = vld [vmem:[%s8678_s30 + $0x5c] sm:$0x1] }
 0x1e5   : > { %v7330_v37 = vcombine.low %v5425_v52, %v5428_v30  ;;  %v8454_v52 = vld [vmem:[%s8678_s30 + $0x34] sm:$0xf]  ;;  %v3517_v30 = vrot.slane %v3516_v46, 4  ;;  %v5384_v46 = vld [vmem:[%s8678_s30 + $0x44] sm:$0x7] }
 0x1e6   : > { %v3876_v12 = vrot.slane %v3585_v16, 6  ;;  %v5448_v18 = vrot.slane %v5384_v46, 7 }
 0x1e7   : > { %7966 = vmatpush3.bf16.xpose.msra.mxu0 %v3358_v57  ;;  %v3464_v57 = vsel %vm9877_vm13, %v3459_v36, %v10291_v39  ;;  %v5380_v39 = vld [vmem:[%s8678_s30 + $0x2c] sm:$0x7]  ;;  %v5498_v58 = vsel %vm601_vm1, %v7330_v37, 0 }
 0x1e8   : > { %8108 = vmatmul.mubr.msk.bf16.vlgmr.msra.gmra.mrb[4].mxu1 %vm601_vm1, %v7297_v47  ;;  %7971 = vmatprep.subr.bf16.mxu0 %v11434_v62  ;;  %v10376_v47 = vor.u32 %v3854_v51, %v3853_v61  ;;  %v7175_v48 = vcombine.low %v3464_v57, %v3474_v31  ;;  %v5434_v34 = vrot.slane %v5380_v39, 7  ;;  %v10405_v50 = vor.u32 %v3877_v11, %v3876_v12 }
 0x1e9   : > { %8112 = vmatpush3.bf16.xpose.msra.mxu1 %v5492_v24  ;;  %8127 = vmatprep.mubr.msk.bf16.mxu1 %vm8555_vm0, %v11434_v62  ;;  %v7162_v24 = vld [vmem:[%s8678_s30 + $0x54] sm:$0xf]  ;;  %v5438_v61 = vrot.slane %v8454_v52, 7  ;;  %v3900_v57 = vrot.slane %v3605_v7, 7  ;;  %v3507_v31 = vrot.slane %v3506_v40, 4  ;;  %v3521_v51 = vrot.slane %v3519_v25, 5 }
 0x1ea   : > { %8113 = vmatprep.subr.bf16.mxu1 %v11434_v62  ;;  %v3524_v36 = vshrl.u32 %v7162_v24, 16  ;;  %v3650_v45 = vsel %vm601_vm1, %v7175_v48, 0  ;;  %v3527_v43 = vshll.u32 %v7162_v24, 16  ;;  %v5441_v48 = vrot.slane %v5382_v55, 7  ;;  %v8455_v40 = vld [vmem:[%s8678_s30 + $0x40] sm:$0xf] }
 0x1eb   : > { %v10429_v39 = vor.u32 %v3900_v57, %v3899_v1  ;;  %v5440_v10 = vrot.slane %v5438_v61, 4  ;;  %v3512_v41 = vsel %vm9877_vm13, %v3507_v31, %v10381_v22  ;;  %v3522_v9 = vsel %vm9877_vm13, %v3517_v30, %v3521_v51  ;;  %v7168_v52 = vld [vmem:[%s8678_s30 + $0x6c] sm:$0xf] }
 0x1ec   : > { %v3526_v53 = vrot.slane %v3524_v36, 4  ;;  %v3529_v8 = vrot.slane %v3527_v43, 5  ;;  %v3653_v24 = vsel %vm601_vm1, %v7176_v29, 0  ;;  %v7177_v11 = vcombine.low %v3512_v41, %v3522_v9  ;;  %v5385_v41 = vld [vmem:[%s8678_s30 + $0x48] sm:$0x8] }
 0x1ed   : > { %v5442_v22 = vsel %vm10269_vm5, %v5440_v10, %v5441_v48  ;;  %v5445_v25 = vrot.slane %v8455_v40, 7  ;;  %v10450_v43 = vrot.slane %v3557_v4, 5  ;;  %v7325_v31 = vrot.slane %v5383_v26, 11  ;;  %v5386_v9 = vld [vmem:[%s8678_s30 + $0x50] sm:$0x7] }
 0x1ee   : > { %7968 = vmatmul.mubr.msk.bf16.vlgmr.msra.gmra.mrb[8].mxu0 %vm601_vm1, %v7123_v59  ;;  %v5432_v59 = vsel %vm10269_vm5, %v7323_v49, %v5431_v5  ;;  %v7165_v5 = vld [vmem:[%s8678_s30 + $0x60] sm:$0xf]  ;;  %v3530_v12 = vor.u32 %v3529_v8, %v3526_v53  ;;  %v3540_v49 = vor.u32 %v3539_v13, %v10424_v44  ;;  %v3656_v30 = vsel %vm601_vm1, %v7177_v11, 0  ;;  %v7171_v26 = vld [vmem:[%s8678_s30 + $0x78] sm:$0xf] }
 0x1ef   : > { %7972 = vmatpush3.bf16.xpose.msra.mxu0 %v3647_v42  ;;  %7987 = vmatprep.mubr.msk.bf16.mxu0 %vm8555_vm0, %v11434_v62  ;;  %v5435_v42 = vsel %vm10269_vm5, %v5433_v60, %v5434_v34  ;;  %v3548_v28 = vshrl.u32 %v7165_v5, 16  ;;  %v3551_v37 = vshll.u32 %v7165_v5, 16  ;;  %v3543_v60 = vshll.u32 %v7164_v27, 16 }
 0x1f0   : > { %7973 = vmatprep.subr.bf16.mxu0 %v11434_v62  ;;  %v7331_v6 = vcombine.low %v5432_v59, %v5435_v42  ;;  %v3531_v59 = vrot.slane %v3530_v12, 4  ;;  %v3541_v1 = vrot.slane %v3540_v49, 4  ;;  %v7167_v42 = vld [vmem:[%s8678_s30 + $0x68] sm:$0x1]  ;;  %v5447_v4 = vrot.slane %v5445_v25, 4 }
 0x1f1   : > { %8114 = vmatpush3.bf16.xpose.msra.mxu1 %v5495_v33  ;;  %v5381_v33 = vld [vmem:[%s8678_s30 + $0x30] sm:$0x8]  ;;  %v3550_v36 = vrot.slane %v3548_v28, 4  ;;  %v3545_v29 = vrot.slane %v3543_v60, 5  ;;  %v3567_v53 = vshll.u32 %v7167_v42, 16  ;;  %v3575_v27 = vshll.u32 %v7168_v52, 16 }
 0x1f2   : > { %8115 = vmatprep.subr.bf16.mxu1 %v11434_v62  ;;  %v7324_v23 = vrot.slane %v5381_v33, 11  ;;  %v5501_v34 = vsel %vm601_vm1, %v7331_v6, 0  ;;  %v3536_v13 = vsel %vm9877_vm13, %v3531_v59, %v10424_v44  ;;  %v3572_v6 = vshrl.u32 %v7168_v52, 16  ;;  %v8456_v28 = vld [vmem:[%s8678_s30 + $0x4c] sm:$0xf] }
 0x1f3   : > { %v3546_v5 = vsel %vm9877_vm13, %v3541_v1, %v3545_v29  ;;  %v5446_v10 = vsel %vm10269_vm5, %v7325_v31, %v5445_v25  ;;  %v5449_v48 = vsel %vm10269_vm5, %v5447_v4, %v5448_v18  ;;  %v3569_v49 = vrot.slane %v3567_v53, 5  ;;  %v7170_v60 = vld [vmem:[%s8678_s30 + $0x74] sm:$0x1]  ;;  %v5388_v31 = vld [vmem:[%s8678_s30 + $0x5c] sm:$0x7] }
 0x1f4   : > { %v5439_v20 = vsel %vm10269_vm5, %v7324_v23, %v5438_v61  ;;  %v7178_v44 = vcombine.low %v3536_v13, %v3546_v5  ;;  %v3577_v11 = vrot.slane %v3575_v27, 5  ;;  %v7333_v40 = vcombine.low %v5446_v10, %v5449_v48  ;;  %v8457_v4 = vld [vmem:[%s8678_s30 + $0x58] sm:$0xf] }
 0x1f5   : > { %v7332_v57 = vcombine.low %v5439_v20, %v5442_v22  ;;  %v3583_v20 = vrot.slane %v3581_v2, 5  ;;  %v3587_v22 = vrot.slane %v3585_v16, 4  ;;  %v7326_v25 = vrot.slane %v5385_v41, 11 }
 0x1f6   : > { %v3596_v59 = vshrl.u32 %v7171_v26, 16  ;;  %v3599_v2 = vshll.u32 %v7171_v26, 16  ;;  %v5507_v42 = vsel %vm601_vm1, %v7333_v40, 0  ;;  %v5459_v18 = vrot.slane %v8457_v4, 7 }
 0x1f7   : > { %7974 = vmatpush3.bf16.xpose.msra.mxu0 %v3650_v45  ;;  %v3553_v45 = vrot.slane %v3551_v37, 5  ;;  %v5504_v23 = vsel %vm601_vm1, %v7332_v57, 0  ;;  %v5452_v37 = vrot.slane %v8456_v28, 7  ;;  %v3588_v29 = vor.u32 %v3587_v22, %v3583_v20  ;;  %v5387_v57 = vld [vmem:[%s8678_s30 + $0x54] sm:$0x8] }
 0x1f8   : > { %7975 = vmatprep.subr.bf16.mxu0 %v11434_v62  ;;  %v3607_v13 = vrot.slane %v3605_v7, 5  ;;  %v3611_v5 = vrot.slane %v3609_v38, 4  ;;  %v5461_v10 = vrot.slane %v5459_v18, 4  ;;  %v5462_v48 = vrot.slane %v5388_v31, 7 }
 0x1f9   : > { %8116 = vmatpush3.bf16.xpose.msra.mxu1 %v5498_v58  ;;  %v3563_v58 = vrot.slane %v3561_v19, 4  ;;  %v3554_v51 = vor.u32 %v3553_v45, %v3550_v36  ;;  %v5454_v46 = vrot.slane %v5452_v37, 4  ;;  %v5455_v36 = vrot.slane %v5386_v9, 7 }
 0x1fa   : > { %8117 = vmatprep.subr.bf16.mxu1 %v11434_v62  ;;  %v3659_v45 = vsel %vm601_vm1, %v7178_v44, 0  ;;  %v5453_v52 = vsel %vm10269_vm5, %v7326_v25, %v5452_v37  ;;  %v3612_v38 = vor.u32 %v3611_v5, %v3607_v13  ;;  %v3742_v31 = vrot.slane %v10249_v0, 4 }
 0x1fb   : > { %v3564_v55 = vor.u32 %v3563_v58, %v10450_v43  ;;  %v3591_v58 = vshll.u32 %v7170_v60, 16  ;;  %v5463_v60 = vsel %vm10269_vm5, %v5461_v10, %v5462_v48 }
 0x1fc   : > { %v3613_v26 = vrot.slane %v3612_v38, 4 }
 0x1fd   : > { %v3565_v12 = vrot.slane %v3564_v55, 4  ;;  %v3601_v55 = vrot.slane %v3599_v2, 5 }
 0x1ff   : > { %7976 = vmatpush3.bf16.xpose.msra.mxu0 %v3653_v24  ;;  %v3555_v24 = vrot.slane %v3554_v51, 4  ;;  %v3570_v16 = vsel %vm9877_vm13, %v3565_v12, %v3569_v49  ;;  %v3598_v51 = vrot.slane %v3596_v59, 4 }
 0x200   : > { %7977 = vmatprep.subr.bf16.mxu0 %v11434_v62 }
 0x201   : > { %v10456_v33 = vpop.f32.mrb[4].mxu0  ;;  %8118 = vmatpush3.bf16.xpose.msra.mxu1 %v5501_v34  ;;  %v3574_v34 = vrot.slane %v3572_v6, 4  ;;  %v3560_v63 = vsel %vm9877_vm13, %v3555_v24, %v10450_v43  ;;  %v7184_v6 = vld [vmem:[%s8678_s30 + $0x24] sm:$0xc]  ;;  %v3602_v9 = vor.u32 %v3601_v55, %v3598_v51  ;;  %v7185_v24 = vld [vmem:[%s8678_s30 + $0x2c] sm:$0x7] }
 0x202   : > { %v7809_v61 = vpop.f32.mrb[5].mxu0  ;;  %8119 = vmatprep.subr.bf16.mxu1 %v11434_v62  ;;  %v7179_v43 = vcombine.low %v3560_v63, %v3570_v16  ;;  %v3730_v37 = vshrl.u32 %v7184_v6, 16  ;;  %v3733_v44 = vshll.u32 %v7184_v6, 16  ;;  %v3744_v25 = vshrl.u32 %v7185_v24, 16  ;;  %v7188_v55 = vld [vmem:[%s8678_s30 + $0x3c] sm:$0xc] }
 0x203   : > { %v1406_v19 = vpop.f32.mrb[6].mxu0  ;;  %v3578_v1 = vor.u32 %v3577_v11, %v3574_v34  ;;  %v5456_v61 = vsel %vm10269_vm5, %v5454_v46, %v5455_v36  ;;  %v3603_v11 = vrot.slane %v3602_v9, 4  ;;  %v3747_v46 = vshll.u32 %v7185_v24, 16  ;;  %v7186_v36 = vld [vmem:[%s8678_s30 + $0x30] sm:$0xc] }
 0x204   : > { %v7810_v8 = vpop.f32.mrb[7].mxu0  ;;  %v3593_v19 = vrot.slane %v3591_v58, 5  ;;  %v7334_v27 = vcombine.low %v5453_v52, %v5456_v61  ;;  %v3662_v41 = vsel %vm601_vm1, %v7179_v43, 0  ;;  %v3735_v40 = vrot.slane %v3733_v44, 7  ;;  %v7187_v52 = vld [vmem:[%s8678_s30 + $0x38] sm:$0x7] }
 0x205   : > { %v3579_v53 = vrot.slane %v3578_v1, 4  ;;  %v3589_v8 = vrot.slane %v3588_v29, 4  ;;  %v3608_v59 = vsel %vm9877_vm13, %v3603_v11, %v3607_v13  ;;  %v3753_v2 = vshrl.u32 %v7186_v36, 16  ;;  %v7189_v9 = vld [vmem:[%s8678_s30 + $0x44] sm:$0x7] }
 0x206   : > { %v5510_v12 = vsel %vm601_vm1, %v7334_v27, 0  ;;  %v3756_v63 = vshll.u32 %v7186_v36, 16  ;;  %v3746_v29 = vrot.slane %v3744_v25, 6  ;;  %v3770_v51 = vshll.u32 %v7187_v52, 16 }
 0x207   : > { %7978 = vmatpush3.bf16.xpose.msra.mxu0 %v3656_v30  ;;  %v7173_v30 = vld [vmem:[%s8678_s30 + $0x80] sm:$0x1]  ;;  %v3584_v7 = vsel %vm9877_vm13, %v3579_v53, %v3583_v20  ;;  %v3594_v54 = vsel %vm9877_vm13, %v3589_v8, %v3593_v19  ;;  %v3732_v20 = vrot.slane %v3730_v37, 6  ;;  %v3755_v4 = vrot.slane %v3753_v2, 6  ;;  %v8412_v53 = vld [vmem:[%s8678_s30 + $0x24] sm:$0xff]  }
 0x208   : > { %7979 = vmatprep.subr.bf16.mxu0 %v11434_v62  ;;  %v3615_v28 = vshll.u32 %v7173_v30, 16  ;;  %v7180_v34 = vcombine.low %v3584_v7, %v3594_v54  ;;  %v3767_v30 = vshrl.u32 %v7187_v52, 16  ;;  %v3776_v5 = vshrl.u32 %v7188_v55, 16  ;;  %v7192_v52 = vld [vmem:[%s8678_s30 + $0x54] sm:$0xc] }
 0x209   : > { %8120 = vmatpush3.bf16.xpose.msra.mxu1 %v5504_v23  ;;  %v7327_v23 = vrot.slane %v5387_v57, 11  ;;  %v3736_v1 = vor.u32 %v3735_v40, %v3732_v20  ;;  %v3779_v6 = vshll.u32 %v7188_v55, 16  ;;  %v3772_v48 = vrot.slane %v3770_v51, 7  ;;  %v7193_v55 = vld [vmem:[%s8678_s30 + $0x5c] sm:$0x7] }
 0x20a   : > { %8121 = vmatprep.subr.bf16.mxu1 %v11434_v62  ;;  %v3617_v22 = vrot.slane %v3615_v28, 5  ;;  %v3665_v58 = vsel %vm601_vm1, %v7180_v34, 0  ;;  %v3769_v10 = vrot.slane %v3767_v30, 6  ;;  %v5618_v28 = vsel %vm601_vm1, %v8412_v53, 0  ;;  %v7149_v34 = vld [vmem:[%s11414_s1 + $0x2c] sm:$0xf] }
 0x20b   : > { %v5460_v49 = vsel %vm10269_vm5, %v7327_v23, %v5459_v18  ;;  %v3758_v18 = vrot.slane %v3756_v63, 7  ;;  %v3737_v43 = vrot.slane %v3736_v1, 4  ;;  %v3778_v54 = vrot.slane %v3776_v5, 6 }
 0x20c   : > { %v3618_v16 = vsel %vm9877_vm13, %v3613_v26, %v3617_v22  ;;  %v3781_v38 = vrot.slane %v3779_v6, 7  ;;  %v3773_v44 = vor.u32 %v3772_v48, %v3769_v10  ;;  %v3790_v24 = vshrl.u32 %v7189_v9, 16 }
 0x20d   : > { %v7181_v57 = vcombine.low %v3608_v59, %v3618_v16  ;;  %v3759_v13 = vor.u32 %v3758_v18, %v3755_v4  ;;  %v3741_v27 = vsel %vm10131_vm2, %v3737_v43, %v10249_v0  ;;  %v3765_v0 = vrot.slane %v10278_v32, 4 }
 0x20e   : > { %v3782_v22 = vor.u32 %v3781_v38, %v3778_v54  ;;  %v3822_v18 = vshrl.u32 %v7192_v52, 16  ;;  %v3825_v51 = vshll.u32 %v7192_v52, 16  ;;  %v3811_v6 = vrot.slane %v10324_v21, 4 }
 0x20f   : > { %7980 = vmatpush3.bf16.xpose.msra.mxu0 %v3659_v45  ;;  %v7335_v45 = vcombine.low %v5460_v49, %v5463_v60  ;;  %v3668_v8 = vsel %vm601_vm1, %v7181_v57, 0  ;;  %v3760_v7 = vrot.slane %v3759_v13, 4  ;;  %v7190_v49 = vld [vmem:[%s8678_s30 + $0x48] sm:$0xc]  ;;  %v8413_v60 = vld [vmem:[%s8678_s30 + $0x30] sm:$0xff]   ;;  %v3774_v25 = vsel %vm10131_vm2, %v3765_v0, %v3773_v44 }
 0x210   : > { %7981 = vmatprep.subr.bf16.mxu0 %v11434_v62  ;;  %v3799_v20 = vshrl.u32 %v7190_v49, 16  ;;  %v3802_v26 = vshll.u32 %v7190_v49, 16  ;;  %v3783_v2 = vrot.slane %v3782_v22, 4  ;;  %v3836_v10 = vshrl.u32 %v7193_v55, 16 }
 0x211   : > { %8122 = vmatpush3.bf16.xpose.msra.mxu1 %v5507_v42  ;;  %v3749_v42 = vrot.slane %v3747_v46, 7  ;;  %v5513_v61 = vsel %vm601_vm1, %v7335_v45, 0  ;;  %v3764_v40 = vsel %vm10131_vm2, %v3760_v7, %v10278_v32  ;;  %v3792_v46 = vrot.slane %v3790_v24, 6  ;;  %v7191_v45 = vld [vmem:[%s8678_s30 + $0x50] sm:$0x7] }
 0x212   : > { %8123 = vmatprep.subr.bf16.mxu1 %v11434_v62  ;;  %v7201_v59 = vcombine.low %v3764_v40, %v3774_v25  ;;  %v3801_v63 = vrot.slane %v3799_v20, 6  ;;  %v3804_v16 = vrot.slane %v3802_v26, 7  ;;  %v3788_v32 = vrot.slane %v10294_v14, 4  ;;  %v11444_v25 = vld [vmem:[#allocation8_spill] sm:$0xff] }
 0x213   : > { %v3750_v19 = vor.u32 %v3749_v42, %v3746_v29  ;;  %v3813_v29 = vshrl.u32 %v7191_v45, 16  ;;  %v3816_v42 = vshll.u32 %v7191_v45, 16  ;;  %v3839_v48 = vshll.u32 %v7193_v55, 16 }
 0x214   : > { %v3944_v57 = vsel %vm601_vm1, %v7201_v59, 0  ;;  %v3805_v4 = vor.u32 %v3804_v16, %v3801_v63  ;;  %v3838_v49 = vrot.slane %v3836_v10, 6  ;;  %v3834_v59 = vrot.slane %v10346_v3, 4 }
 0x215   : > { %v3751_v23 = vsel %vm10131_vm2, %v3742_v31, %v3750_v19  ;;  %v3787_v31 = vsel %vm10131_vm2, %v3783_v2, %v10294_v14  ;;  %v3815_v19 = vrot.slane %v3813_v29, 6  ;;  %v3818_v30 = vrot.slane %v3816_v42, 7  ;;  %v8416_v2 = vld [vmem:[%s8678_s30 + $0x54] sm:$0xff]  }
 0x216   : > { %v7200_v37 = vcombine.low %v3741_v27, %v3751_v23  ;;  %v3806_v5 = vrot.slane %v3805_v4, 4  ;;  %v3824_v27 = vrot.slane %v3822_v18, 6  ;;  %v3827_v23 = vrot.slane %v3825_v51, 7 }
 0x217   : > { %7982 = vmatpush3.bf16.xpose.msra.mxu0 %v3662_v41  ;;  %v7319_v41 = vld [vmem:[%s11414_s1 + $0x48] sm:$0xf]  ;;  %v3819_v14 = vor.u32 %v3818_v30, %v3815_v19  ;;  %v5630_v4 = vsel %vm601_vm1, %v8416_v2, 0  ;;  %v3857_v19 = vrot.slane %v10376_v47, 4 }
 0x218   : > { %7983 = vmatprep.subr.bf16.mxu0 %v11434_v62  ;;  %v3941_v11 = vsel %vm601_vm1, %v7200_v37, 0  ;;  %v7195_v37 = vld [vmem:[%s8678_s30 + $0x68] sm:$0x7]  ;;  %v3810_v38 = vsel %vm10131_vm2, %v3806_v5, %v10324_v21 }
 0x219   : > { %8124 = vmatpush3.bf16.xpose.msra.mxu1 %v5510_v12  ;;  %v3793_v12 = vshll.u32 %v7189_v9, 16  ;;  %v3820_v24 = vsel %vm10131_vm2, %v3811_v6, %v3819_v14  ;;  %v3859_v26 = vshrl.u32 %v7195_v37, 16  ;;  %v7198_v6 = vld [vmem:[%s8678_s30 + $0x78] sm:$0xc]  ;;  %v7215_v2 = vld [vmem:[%s8678_s30 + $0x48] sm:$0xf] }
 0x21a   : > { %8125 = vmatprep.subr.bf16.mxu1 %v11434_v62 }
 0x21b   : > { %v3795_v36 = vrot.slane %v3793_v12, 7  ;;  %v3828_v12 = vor.u32 %v3827_v23, %v3824_v27 }
 0x21d   : > { %v3796_v1 = vor.u32 %v3795_v36, %v3792_v46  ;;  %v7196_v36 = vld [vmem:[%s8678_s30 + $0x6c] sm:$0xc]  ;;  %v3829_v63 = vrot.slane %v3828_v12, 4 }
 0x21e   : > { %v3868_v52 = vshrl.u32 %v7196_v36, 16 }
 0x21f   : > { %7984 = vmatpush3.bf16.xpose.msra.mxu0 %v3665_v58  ;;  %v5621_v58 = vsel %vm601_vm1, %v8413_v60, 0  ;;  %v3797_v43 = vsel %vm10131_vm2, %v3788_v32, %v3796_v1  ;;  %v3861_v1 = vrot.slane %v3859_v26, 6  ;;  %v3833_v18 = vsel %vm10131_vm2, %v3829_v63, %v10346_v3  ;;  %v8417_v3 = vld [vmem:[%s8678_s30 + $0x60] sm:$0xff]  }
 0x220   : > { %7985 = vmatprep.subr.bf16.mxu0 %v11434_v62  ;;  %v7202_v13 = vcombine.low %v3787_v31, %v3797_v43  ;;  %v7197_v31 = vld [vmem:[%s8678_s30 + $0x74] sm:$0x7]  ;;  %v3870_v55 = vrot.slane %v3868_v52, 6  ;;  %v3903_v63 = vrot.slane %v10429_v39, 4  ;;  %v7366_v52 = vld [vmem:[%s8678_s30 + $0x2c] sm:$0x7] }
 0x221   : > { %8126 = vmatpush3.bf16.xpose.msra.mxu1 %v5513_v61  ;;  %v8414_v61 = vld [vmem:[%s8678_s30 + $0x3c] sm:$0xff]  }
 0x222   : > { %8131 = vmatprep.subr.bf16.mxu1 %v11434_v62  ;;  %v5624_v53 = vsel %vm601_vm1, %v8414_v61, 0  ;;  %v3947_v54 = vsel %vm601_vm1, %v7202_v13, 0  ;;  %v3871_v61 = vshll.u32 %v7196_v36, 16  ;;  %v3885_v13 = vshll.u32 %v7197_v31, 16 }
 0x227   : > { %7986 = vmatpush3.bf16.xpose.msra.mxu0 %v3668_v8  ;;  %v7194_v8 = vld [vmem:[%s8678_s30 + $0x60] sm:$0xc] }
 0x228   : > { %8128 = vmatmul.mubr.msk.bf16.vlgmr.msra.gmra.mrb[4].mxu1 %vm601_vm1, %v7319_v41  ;;  %7991 = vmatprep.subr.bf16.mxu0 %v11434_v62  ;;  %v3845_v41 = vshrl.u32 %v7194_v8, 16  ;;  %v3848_v9 = vshll.u32 %v7194_v8, 16  ;;  %v3882_v8 = vshrl.u32 %v7197_v31, 16  ;;  %v7214_v31 = vld [vmem:[%s8678_s30 + $0x44] sm:$0x1] }
 0x229   : > { %8132 = vmatpush3.bf16.xpose.msra.mxu1 %v5618_v28  ;;  %8147 = vmatprep.mubr.msk.bf16.mxu1 %vm8555_vm0, %v11434_v62  ;;  %v8415_v28 = vld [vmem:[%s8678_s30 + $0x48] sm:$0xff]  }
 0x22a   : > { %8133 = vmatprep.subr.bf16.mxu1 %v11434_v62  ;;  %v3847_v22 = vrot.slane %v3845_v41, 6  ;;  %v3850_v20 = vrot.slane %v3848_v9, 7  ;;  %v5627_v21 = vsel %vm601_vm1, %v8415_v28, 0  ;;  %v3884_v10 = vrot.slane %v3882_v8, 6 }
 0x22b   : > { %v3891_v41 = vshrl.u32 %v7198_v6, 16  ;;  %v3894_v9 = vshll.u32 %v7198_v6, 16  ;;  %v5737_v6 = vrot.slane %v7366_v52, 7  ;;  %v7370_v52 = vld [vmem:[%s8678_s30 + $0x3c] sm:$0x8] }
 0x22c   : > { %v3851_v32 = vor.u32 %v3850_v20, %v3847_v22 }
 0x22e   : > { %7988 = vmatmul.mubr.msk.bf16.vlgmr.msra.gmra.mrb[8].mxu0 %vm601_vm1, %v7149_v34  ;;  %v6559_v34 = vpop.permute.xlu0 %6558  ;;  %v3852_v30 = vrot.slane %v3851_v32, 4 }
 0x22f   : > { %7992 = vmatpush3.bf16.xpose.msra.mxu0 %v3941_v11  ;;  %8007 = vmatprep.mubr.msk.bf16.mxu0 %vm8555_vm0, %v11434_v62  ;;  %v3841_v11 = vrot.slane %v3839_v48, 7  ;;  %v3887_v48 = vrot.slane %v3885_v13, 7 }
 0x230   : > { %7993 = vmatprep.subr.bf16.mxu0 %v11434_v62  ;;  %v3856_v14 = vsel %vm10131_vm2, %v3852_v30, %v10376_v47  ;;  %v8419_v30 = vld [vmem:[%s8678_s30 + $0x78] sm:$0xff]  }
 0x231   : > { %8134 = vmatpush3.bf16.xpose.msra.mxu1 %v5621_v58  ;;  %v7203_v58 = vcombine.low %v3810_v38, %v3820_v24  ;;  %v3842_v16 = vor.u32 %v3841_v11, %v3838_v49  ;;  %v3880_v38 = vrot.slane %v10405_v50, 4  ;;  %v3896_v24 = vrot.slane %v3894_v9, 7  ;;  %v7213_v11 = vld [vmem:[%s8678_s30 + $0x40] sm:$0xf] }
 0x232   : > { %8135 = vmatprep.subr.bf16.mxu1 %v11434_v62 }
 0x233   : > { %v3843_v43 = vsel %vm10131_vm2, %v3834_v59, %v3842_v16  ;;  %v7364_v16 = vld [vmem:[%s8678_s30 + $0x24] sm:$0x8] }
 0x234   : > { %v7204_v5 = vcombine.low %v3833_v18, %v3843_v43  ;;  %v4060_v43 = vshrl.u32 %v7215_v2, 16  ;;  %v7388_v13 = vrot.slane %v7364_v16, 11 }
 0x236   : > { %v3953_v28 = vsel %vm601_vm1, %v7204_v5, 0  ;;  %v4062_v9 = vrot.slane %v4060_v43, 4 }
 0x237   : > { %7994 = vmatpush3.bf16.xpose.msra.mxu0 %v3944_v57  ;;  %v3950_v57 = vsel %vm601_vm1, %v7203_v58, 0  ;;  %v10634_v58 = vshrl.u32 %v7213_v11, 16 }
 0x238   : > { %7995 = vmatprep.subr.bf16.mxu0 %v11434_v62 }
 0x239   : > { %8136 = vmatpush3.bf16.xpose.msra.mxu1 %v5624_v53  ;;  %v3873_v53 = vrot.slane %v3871_v61, 7  ;;  %v4051_v18 = vrot.slane %v10634_v58, 4 }
 0x23a   : > { %8137 = vmatprep.subr.bf16.mxu1 %v11434_v62 }
 0x23b   : > { %v2485_v7 = vpop.f32.mrb[0].mxu1  ;;  %v3874_v23 = vor.u32 %v3873_v53, %v3870_v55 }
 0x23c   : > { %v8231_v0 = vadd.f32 %v2485_v7, %v10456_v33  ;;  %v7909_v44 = vpop.f32.mrb[1].mxu1  ;;  %v3862_v33 = vshll.u32 %v7195_v37, 16  ;;  %v7199_v37 = vld [vmem:[%s8678_s30 + $0x80] sm:$0x7]  ;;  %v5633_v7 = vsel %vm601_vm1, %v8417_v3, 0 }
 0x23d   : > { %v2488_v60 = vpop.f32.mrb[2].mxu1  ;;  %v3875_v47 = vrot.slane %v3874_v23, 4  ;;  %v3893_v44 = vrot.slane %v3891_v41, 6  ;;  %v3905_v12 = vshrl.u32 %v7199_v37, 16  ;;  %v3908_v49 = vshll.u32 %v7199_v37, 16 }
 0x23e   : > { %v7910_v40 = vpop.f32.mrb[3].mxu1  ;;  %v2493_v46 = vadd.f32 %v8231_v0, %v11444_v25  ;;  %v3864_v42 = vrot.slane %v3862_v33, 7  ;;  %v3888_v0 = vor.u32 %v3887_v48, %v3884_v10  ;;  %v7212_v60 = vld [vmem:[%s8678_s30 + $0x3c] sm:$0xf]  ;;  %v4055_v23 = vshll.u32 %v7214_v31, 16 }
 0x23f   : > { %7996 = vmatpush3.bf16.xpose.msra.mxu0 %v3947_v54  ;;  %v3879_v20 = vsel %vm10131_vm2, %v3875_v47, %v10405_v50  ;;  %v3897_v40 = vor.u32 %v3896_v24, %v3893_v44  ;;  %v3907_v25 = vrot.slane %v3905_v12, 6  ;;  %v4036_v33 = vshrl.u32 %v7212_v60, 16  ;;  %v7367_v48 = vld [vmem:[%s8678_s30 + $0x30] sm:$0x8]  ;;  %v7218_v44 = vld [vmem:[%s8678_s30 + $0x54] sm:$0xf] }
 0x240   : > { %v6576_v45 = vadd.f32 %v6559_v34, %v2493_v46  ;;  %7997 = vmatprep.subr.bf16.mxu0 %v11434_v62  ;;  %v3865_v51 = vor.u32 %v3864_v42, %v3861_v1  ;;  %v8418_v34 = vld [vmem:[%s8678_s30 + $0x6c] sm:$0xff]   ;;  %v3889_v26 = vsel %vm10131_vm2, %v3880_v38, %v3888_v0  ;;  %v3910_v46 = vrot.slane %v3908_v49, 7 }
 0x241   : > { %8138 = vmatpush3.bf16.xpose.msra.mxu1 %v5627_v21  ;;  %v7365_v21 = vld [vmem:[%s8678_s30 + $0x28] sm:$0xf]  ;;  %v4039_v36 = vshll.u32 %v7212_v60, 16  ;;  %v5636_v59 = vsel %vm601_vm1, %v8418_v34, 0  ;;  %v7206_v50 = vcombine.low %v3879_v20, %v3889_v26  ;;  %v7216_v1 = vld [vmem:[%s8678_s30 + $0x4c] sm:$0xf] }
 0x242   : > { %v6580_v29 = vmax.f32 %v6576_v45, 0.0  ;;  %8139 = vmatprep.subr.bf16.mxu1 %v11434_v62  ;;  %v3866_v27 = vsel %vm10131_vm2, %v3857_v19, %v3865_v51  ;;  %v10632_v45 = vshll.u32 %v7213_v11, 16  ;;  %v5734_v32 = vrot.slane %v7365_v21, 7  ;;  %v7368_v51 = vld [vmem:[%s8678_s30 + $0x34] sm:$0xf] }
 0x243   : > { %v7205_v54 = vcombine.low %v3856_v14, %v3866_v27  ;;  %v3911_v42 = vor.u32 %v3910_v46, %v3907_v25  ;;  %v4038_v61 = vrot.slane %v4036_v33, 4  ;;  %v4063_v19 = vshll.u32 %v7215_v2, 16  ;;  %v7217_v0 = vld [vmem:[%s8678_s30 + $0x50] sm:$0x1]  ;;  %v7219_v34 = vld [vmem:[%s8678_s30 + $0x58] sm:$0xf] }
 0x244   : > { %6584 = vst [vmem:[%s9853_s14] sm:$0xff] %v6580_v29  ;;  %v3898_v29 = vrot.slane %v3897_v40, 4  ;;  %v10649_v55 = vshll.u32 %v7216_v1, 16  ;;  %v10651_v53 = vshrl.u32 %v7216_v1, 16  ;;  %v3959_v8 = vsel %vm601_vm1, %v7206_v50, 0  ;;  %v7371_v21 = vld [vmem:[%s8678_s30 + $0x40] sm:$0xf] }
 0x245   : > { %v3956_v22 = vsel %vm601_vm1, %v7205_v54, 0  ;;  %v5736_v5 = vrot.slane %v5734_v32, 4  ;;  %v3912_v14 = vsel %vm10131_vm2, %v3903_v63, %v3911_v42  ;;  %v5741_v41 = vrot.slane %v7368_v51, 7  ;;  %v7337_v63 = vld [vmem:[%s11414_s1 + $0x4c] sm:$0xf] }
 0x246   : > { %v3902_v3 = vsel %vm10131_vm2, %v3898_v29, %v10429_v39  ;;  %v5639_v37 = vsel %vm601_vm1, %v8419_v30, 0  ;;  %v4071_v54 = vrot.slane %v10649_v55, 5  ;;  %v4075_v39 = vrot.slane %v10651_v53, 4 }
 0x247   : > { %7998 = vmatpush3.bf16.xpose.msra.mxu0 %v3950_v57  ;;  %v4041_v57 = vrot.slane %v4039_v36, 5  ;;  %v5735_v38 = vsel %vm10269_vm5, %v7388_v13, %v5734_v32  ;;  %v5738_v47 = vsel %vm10269_vm5, %v5736_v5, %v5737_v6  ;;  %v7207_v24 = vcombine.low %v3902_v3, %v3912_v14  ;;  %v7221_v13 = vld [vmem:[%s8678_s30 + $0x60] sm:$0xf]  ;;  %v7222_v3 = vld [vmem:[%s8678_s30 + $0x64] sm:$0xf] }
 0x248   : > { %7999 = vmatprep.subr.bf16.mxu0 %v11434_v62  ;;  %v4057_v49 = vrot.slane %v4055_v23, 5  ;;  %v7389_v60 = vrot.slane %v7367_v48, 11  ;;  %v7396_v40 = vcombine.low %v5735_v38, %v5738_v47  ;;  %v4076_v25 = vor.u32 %v4075_v39, %v4071_v54  ;;  %v7374_v39 = vld [vmem:[%s8678_s30 + $0x4c] sm:$0xf] }
 0x249   : > { %8140 = vmatpush3.bf16.xpose.msra.mxu1 %v5630_v4  ;;  %v4047_v4 = vrot.slane %v10632_v45, 5  ;;  %v4042_v27 = vor.u32 %v4041_v57, %v4038_v61  ;;  %v4079_v46 = vshll.u32 %v7217_v0, 16  ;;  %v4084_v33 = vshrl.u32 %v7218_v44, 16  ;;  %v7372_v61 = vld [vmem:[%s8678_s30 + $0x44] sm:$0x7] }
 0x24a   : > { %8141 = vmatprep.subr.bf16.mxu1 %v11434_v62  ;;  %v4087_v36 = vshll.u32 %v7218_v44, 16  ;;  %v10676_v2 = vshrl.u32 %v7219_v34, 16  ;;  %v3962_v50 = vsel %vm601_vm1, %v7207_v24, 0  ;;  %v5742_v32 = vsel %vm10269_vm5, %v7389_v60, %v5741_v41 }
 0x24b   : > { %v4052_v10 = vor.u32 %v4051_v18, %v4047_v4  ;;  %v4043_v12 = vrot.slane %v4042_v27, 4  ;;  %v5748_v57 = vrot.slane %v7371_v21, 7  ;;  %v5816_v31 = vsel %vm601_vm1, %v7396_v40, 0 }
 0x24c   : > { %v4077_v18 = vrot.slane %v4076_v25, 4  ;;  %v4081_v43 = vrot.slane %v4079_v46, 5  ;;  %v4089_v30 = vrot.slane %v4087_v36, 5  ;;  %v7390_v27 = vrot.slane %v7370_v52, 11  ;;  %v7375_v25 = vld [vmem:[%s8678_s30 + $0x50] sm:$0x7] }
 0x24d   : > { %v4053_v11 = vrot.slane %v4052_v10, 4  ;;  %v4048_v16 = vsel %vm9877_vm13, %v4043_v12, %v4047_v4  ;;  %v7220_v4 = vld [vmem:[%s8678_s30 + $0x5c] sm:$0x1]  ;;  %v5750_v23 = vrot.slane %v5748_v57, 4  ;;  %v5751_v10 = vrot.slane %v7372_v61, 7 }
 0x24e   : > { %v4082_v48 = vsel %vm9877_vm13, %v4077_v18, %v4081_v43  ;;  %v10711_v38 = vshll.u32 %v7222_v3, 16  ;;  %v10713_v47 = vshrl.u32 %v7222_v3, 16  ;;  %v5749_v12 = vsel %vm10269_vm5, %v7390_v27, %v5748_v57  ;;  %v7377_v18 = vld [vmem:[%s8678_s30 + $0x58] sm:$0xf]  ;;  %v7376_v3 = vld [vmem:[%s8678_s30 + $0x54] sm:$0x8] }
 0x24f   : > { %8000 = vmatpush3.bf16.xpose.msra.mxu0 %v3953_v28  ;;  %v4065_v28 = vrot.slane %v4063_v19, 5  ;;  %v4058_v1 = vsel %vm9877_vm13, %v4053_v11, %v4057_v49  ;;  %v4086_v19 = vrot.slane %v4084_v33, 4  ;;  %v5752_v49 = vsel %vm10269_vm5, %v5750_v23, %v5751_v10  ;;  %v7223_v33 = vld [vmem:[%s8678_s30 + $0x68] sm:$0x1]  ;;  %v7378_v10 = vld [vmem:[%s8678_s30 + $0x5c] sm:$0x7] }
 0x250   : > { %8001 = vmatprep.subr.bf16.mxu0 %v11434_v62  ;;  %v7236_v5 = vcombine.low %v4048_v16, %v4058_v1  ;;  %v5755_v11 = vrot.slane %v7374_v39, 7  ;;  %v4119_v46 = vrot.slane %v10711_v38, 5  ;;  %v4123_v21 = vrot.slane %v10713_v47, 4  ;;  %v7225_v16 = vld [vmem:[%s8678_s30 + $0x70] sm:$0xf] }
 0x251   : > { %8142 = vmatpush3.bf16.xpose.msra.mxu1 %v5633_v7  ;;  %v7369_v7 = vld [vmem:[%s8678_s30 + $0x38] sm:$0x7]  ;;  %v4066_v26 = vor.u32 %v4065_v28, %v4062_v9  ;;  %v4108_v9 = vshrl.u32 %v7221_v13, 16  ;;  %v4111_v28 = vshll.u32 %v7221_v13, 16  ;;  %v7398_v36 = vcombine.low %v5749_v12, %v5752_v49 }
 0x252   : > { %8143 = vmatprep.subr.bf16.mxu1 %v11434_v62  ;;  %v5744_v20 = vrot.slane %v7369_v7, 7  ;;  %v4090_v7 = vor.u32 %v4089_v30, %v4086_v19  ;;  %v4255_v0 = vsel %vm601_vm1, %v7236_v5, 0  ;;  %v5757_v1 = vrot.slane %v5755_v11, 4 }
 0x253   : > { %v4067_v42 = vrot.slane %v4066_v26, 4  ;;  %v4124_v57 = vor.u32 %v4123_v21, %v4119_v46  ;;  %v10739_v19 = vshll.u32 %v7225_v16, 16  ;;  %v10741_v30 = vshrl.u32 %v7225_v16, 16  ;;  %v7230_v16 = vld [vmem:[%s8678_s30 + $0x84] sm:$0xf] }
 0x254   : > { %v4091_v26 = vrot.slane %v4090_v7, 4  ;;  %v7227_v7 = vld [vmem:[%s8678_s30 + $0x78] sm:$0xf]  ;;  %v7392_v39 = vrot.slane %v7376_v3, 11  ;;  %v5765_v49 = vrot.slane %v7378_v10, 7 }
 0x255   : > { %v4072_v14 = vsel %vm9877_vm13, %v4067_v42, %v4071_v54  ;;  %v4125_v27 = vrot.slane %v4124_v57, 4 }
 0x256   : > { %v7237_v24 = vcombine.low %v4072_v14, %v4082_v48  ;;  %v5762_v14 = vrot.slane %v7377_v18, 7  ;;  %v7226_v48 = vld [vmem:[%s8678_s30 + $0x74] sm:$0x1]  ;;  %v7229_v18 = vld [vmem:[%s8678_s30 + $0x80] sm:$0x1] }
 0x257   : > { %8002 = vmatpush3.bf16.xpose.msra.mxu0 %v3956_v22  ;;  %v5743_v22 = vrot.slane %v5741_v41, 4  ;;  %v4103_v41 = vshll.u32 %v7220_v4, 16 }
 0x258   : > { %8003 = vmatprep.subr.bf16.mxu0 %v11434_v62  ;;  %v5764_v12 = vrot.slane %v5762_v14, 4 }
 0x259   : > { %8144 = vmatpush3.bf16.xpose.msra.mxu1 %v5636_v59  ;;  %v10674_v59 = vshll.u32 %v7219_v34, 16  ;;  %v5745_v29 = vsel %vm10269_vm5, %v5743_v22, %v5744_v20  ;;  %v4105_v60 = vrot.slane %v4103_v41, 5  ;;  %v7373_v34 = vld [vmem:[%s8678_s30 + $0x48] sm:$0x8]  ;;  %v4110_v22 = vrot.slane %v4108_v9, 4 }
 0x25a   : > { %8145 = vmatprep.subr.bf16.mxu1 %v11434_v62  ;;  %v7397_v6 = vcombine.low %v5742_v32, %v5745_v29  ;;  %v4113_v20 = vrot.slane %v4111_v28, 5  ;;  %v4258_v32 = vsel %vm601_vm1, %v7237_v24, 0  ;;  %v5758_v29 = vrot.slane %v7375_v25, 7 }
 0x25b   : > { %v4095_v51 = vrot.slane %v10674_v59, 5  ;;  %v4143_v28 = vrot.slane %v10739_v19, 5 }
 0x25c   : > { %v5819_v44 = vsel %vm601_vm1, %v7397_v6, 0  ;;  %v4114_v42 = vor.u32 %v4113_v20, %v4110_v22  ;;  %v5759_v5 = vsel %vm10269_vm5, %v5757_v1, %v5758_v29  ;;  %v4156_v22 = vshrl.u32 %v7227_v7, 16 }
 0x25d   : > { %v4096_v52 = vsel %vm9877_vm13, %v4091_v26, %v4095_v51  ;;  %v4159_v20 = vshll.u32 %v7227_v7, 16 }
 0x25e   : > { %v4115_v6 = vrot.slane %v4114_v42, 4  ;;  %v7381_v42 = vld [vmem:[%s8678_s30 + $0x68] sm:$0x7] }
 0x25f   : > { %8004 = vmatpush3.bf16.xpose.msra.mxu0 %v3959_v8  ;;  %v4099_v8 = vrot.slane %v10676_v2, 4 }
 0x260   : > { %8005 = vmatprep.subr.bf16.mxu0 %v11434_v62  ;;  %v4120_v24 = vsel %vm9877_vm13, %v4115_v6, %v4119_v46 }
 0x261   : > { %8146 = vmatpush3.bf16.xpose.msra.mxu1 %v5639_v37  ;;  %v7183_v37 = vld [vmem:[%s11414_s1 + $0x30] sm:$0xf]  ;;  %v4100_v54 = vor.u32 %v4099_v8, %v4095_v51  ;;  %v5822_v8 = vsel %vm601_vm1, %v7398_v36, 0  ;;  %v5763_v36 = vsel %vm10269_vm5, %v7392_v39, %v5762_v14  ;;  %v7384_v39 = vld [vmem:[%s8678_s30 + $0x74] sm:$0x7] }
 0x262   : > { %8151 = vmatprep.subr.bf16.mxu1 %v11434_v62 }
 0x263   : > { %v4101_v40 = vrot.slane %v4100_v54, 4 }
 0x265   : > { %v4106_v61 = vsel %vm9877_vm13, %v4101_v40, %v4105_v60 }
 0x266   : > { %v7238_v51 = vcombine.low %v4096_v52, %v4106_v61  ;;  %v4158_v52 = vrot.slane %v4156_v22, 4  ;;  %v4161_v61 = vrot.slane %v4159_v20, 5  ;;  %v7233_v22 = vld [vmem:[%s8678_s30 + $0x90] sm:$0xf] }
 0x267   : > { %8006 = vmatpush3.bf16.xpose.msra.mxu0 %v3962_v50  ;;  %v7391_v50 = vrot.slane %v7373_v34, 11  ;;  %v4151_v34 = vshll.u32 %v7226_v48, 16 }
 0x268   : > { %8148 = vmatmul.mubr.msk.bf16.vlgmr.msra.gmra.mrb[4].mxu1 %vm601_vm1, %v7337_v63  ;;  %8011 = vmatprep.subr.bf16.mxu0 %v11434_v62  ;;  %v7224_v63 = vld [vmem:[%s8678_s30 + $0x6c] sm:$0xf]  ;;  %v4162_v48 = vor.u32 %v4161_v61, %v4158_v52  ;;  %v4207_v52 = vshll.u32 %v7233_v22, 16 }
 0x269   : > { %8152 = vmatpush3.bf16.xpose.msra.mxu1 %v5816_v31  ;;  %8167 = vmatprep.mubr.msk.bf16.mxu1 %vm8555_vm0, %v11434_v62  ;;  %v4127_v31 = vshll.u32 %v7223_v33, 16  ;;  %v4132_v43 = vshrl.u32 %v7224_v63, 16  ;;  %v4135_v4 = vshll.u32 %v7224_v63, 16  ;;  %v5756_v13 = vsel %vm10269_vm5, %v7391_v50, %v5755_v11  ;;  %v7380_v11 = vld [vmem:[%s8678_s30 + $0x64] sm:$0xf] }
 0x26a   : > { %8153 = vmatprep.subr.bf16.mxu1 %v11434_v62  ;;  %v7399_v54 = vcombine.low %v5756_v13, %v5759_v5  ;;  %v7379_v33 = vld [vmem:[%s8678_s30 + $0x60] sm:$0x8]  ;;  %v5766_v50 = vsel %vm10269_vm5, %v5764_v12, %v5765_v49  ;;  %v5769_v63 = vrot.slane %v7380_v11, 7  ;;  %v4153_v29 = vrot.slane %v4151_v34, 5 }
 0x26b   : > { %v4129_v23 = vrot.slane %v4127_v31, 5  ;;  %v4134_v41 = vrot.slane %v4132_v43, 4  ;;  %v4137_v9 = vrot.slane %v4135_v4, 5  ;;  %v4180_v13 = vshrl.u32 %v7230_v16, 16 }
 0x26c   : > { %v5825_v46 = vsel %vm601_vm1, %v7399_v54, 0  ;;  %v7400_v3 = vcombine.low %v5763_v36, %v5766_v50  ;;  %v7393_v14 = vrot.slane %v7379_v33, 11  ;;  %v7382_v54 = vld [vmem:[%s8678_s30 + $0x6c] sm:$0x8] }
 0x26d   : > { %v4130_v60 = vsel %vm9877_vm13, %v4125_v27, %v4129_v23  ;;  %v4138_v26 = vor.u32 %v4137_v9, %v4134_v41  ;;  %v5771_v27 = vrot.slane %v5769_v63, 4  ;;  %v5772_v23 = vrot.slane %v7381_v42, 7 }
 0x26e   : > { %8008 = vmatmul.mubr.msk.bf16.vlgmr.msra.gmra.mrb[8].mxu0 %vm601_vm1, %v7183_v37  ;;  %v4147_v37 = vrot.slane %v10741_v30, 4  ;;  %v7239_v1 = vcombine.low %v4120_v24, %v4130_v60  ;;  %v4175_v41 = vshll.u32 %v7229_v18, 16  ;;  %v4182_v24 = vrot.slane %v4180_v13, 4 }
 0x26f   : > { %8012 = vmatpush3.bf16.xpose.msra.mxu0 %v4255_v0  ;;  %8027 = vmatprep.mubr.msk.bf16.mxu0 %vm8555_vm0, %v11434_v62  ;;  %v7228_v0 = vld [vmem:[%s8678_s30 + $0x7c] sm:$0xf]  ;;  %v4139_v57 = vrot.slane %v4138_v26, 4  ;;  %v5828_v34 = vsel %vm601_vm1, %v7400_v3, 0  ;;  %v5773_v11 = vsel %vm10269_vm5, %v5771_v27, %v5772_v23  ;;  %v4163_v26 = vrot.slane %v4162_v48, 4 }
 0x270   : > { %8013 = vmatprep.subr.bf16.mxu0 %v11434_v62  ;;  %v4148_v40 = vor.u32 %v4147_v37, %v4143_v28  ;;  %v10763_v25 = vshll.u32 %v7228_v0, 16  ;;  %v10765_v21 = vshrl.u32 %v7228_v0, 16  ;;  %v4264_v10 = vsel %vm601_vm1, %v7239_v1, 0  ;;  %v7387_v27 = vld [vmem:[%s8678_s30 + $0x80] sm:$0x7] }
 0x271   : > { %8154 = vmatpush3.bf16.xpose.msra.mxu1 %v5819_v44  ;;  %v4261_v44 = vsel %vm601_vm1, %v7238_v51, 0  ;;  %v4183_v51 = vshll.u32 %v7230_v16, 16  ;;  %v4144_v9 = vsel %vm9877_vm13, %v4139_v57, %v4143_v28  ;;  %v5770_v28 = vsel %vm10269_vm5, %v7393_v14, %v5769_v63  ;;  %v7385_v14 = vld [vmem:[%s8678_s30 + $0x78] sm:$0x8] }
 0x272   : > { %8155 = vmatprep.subr.bf16.mxu1 %v11434_v62  ;;  %v4149_v31 = vrot.slane %v4148_v40, 4  ;;  %v4167_v43 = vrot.slane %v10763_v25, 5  ;;  %v4171_v4 = vrot.slane %v10765_v21, 4  ;;  %v4177_v40 = vrot.slane %v4175_v41, 5  ;;  %v7235_v41 = vld [vmem:[%s8678_s30 + $0x98] sm:$0x1] }
 0x273   : > { %v4185_v12 = vrot.slane %v4183_v51, 5  ;;  %v7394_v33 = vrot.slane %v7382_v54, 11  ;;  %v5779_v16 = vrot.slane %v7384_v39, 7  ;;  %v4204_v42 = vshrl.u32 %v7233_v22, 16  ;;  %v7246_v39 = vld [vmem:[%s8678_s30 + $0x3c] sm:$0xe] }
 0x274   : > { %v4154_v37 = vsel %vm9877_vm13, %v4149_v31, %v4153_v29  ;;  %v4172_v7 = vor.u32 %v4171_v4, %v4167_v43  ;;  %v7386_v29 = vld [vmem:[%s8678_s30 + $0x7c] sm:$0xf]  ;;  %v7401_v61 = vcombine.low %v5770_v28, %v5773_v11  ;;  %v4168_v4 = vsel %vm9877_vm13, %v4163_v26, %v4167_v43 }
 0x275   : > { %v7240_v20 = vcombine.low %v4144_v9, %v4154_v37  ;;  %v4186_v63 = vor.u32 %v4185_v12, %v4182_v24  ;;  %v5783_v23 = vrot.slane %v7386_v29, 7  ;;  %v4206_v9 = vrot.slane %v4204_v42, 4 }
 0x276   : > { %v4173_v36 = vrot.slane %v4172_v7, 4  ;;  %v4209_v37 = vrot.slane %v4207_v52, 5  ;;  %v5831_v43 = vsel %vm601_vm1, %v7401_v61, 0  ;;  %v7395_v24 = vrot.slane %v7385_v14, 11 }
 0x277   : > { %8014 = vmatpush3.bf16.xpose.msra.mxu0 %v4258_v32  ;;  %v7231_v32 = vld [vmem:[%s8678_s30 + $0x88] sm:$0xf]  ;;  %v4267_v18 = vsel %vm601_vm1, %v7240_v20, 0  ;;  %v5785_v12 = vrot.slane %v5783_v23, 4  ;;  %v4338_v20 = vshrl.u32 %v7246_v39, 16  ;;  %v4346_v42 = vrot.slane %v10634_v58, 5 }
 0x278   : > { %8015 = vmatprep.subr.bf16.mxu0 %v11434_v62  ;;  %v10781_v5 = vshll.u32 %v7231_v32, 16  ;;  %v10783_v6 = vshrl.u32 %v7231_v32, 16  ;;  %v4178_v13 = vsel %vm9877_vm13, %v4173_v36, %v4177_v40  ;;  %v4210_v22 = vor.u32 %v4209_v37, %v4206_v9  ;;  %v7247_v36 = vld [vmem:[%s8678_s30 + $0x44] sm:$0x3] }
 0x279   : > { %8156 = vmatpush3.bf16.xpose.msra.mxu1 %v5822_v8  ;;  %v7383_v8 = vld [vmem:[%s8678_s30 + $0x70] sm:$0xf]  ;;  %v4341_v40 = vshll.u32 %v7246_v39, 16  ;;  %v4340_v29 = vrot.slane %v4338_v20, 5  ;;  %v4347_v52 = vrot.slane %v10632_v45, 6 }
 0x27a   : > { %8157 = vmatprep.subr.bf16.mxu1 %v11434_v62  ;;  %v5776_v0 = vrot.slane %v7383_v8, 7  ;;  %v4191_v49 = vrot.slane %v10781_v5, 5  ;;  %v4195_v60 = vrot.slane %v10783_v6, 4 }
 0x27c   : > { %v5778_v50 = vrot.slane %v5776_v0, 4  ;;  %v4196_v1 = vor.u32 %v4195_v60, %v4191_v49  ;;  %v5777_v8 = vsel %vm10269_vm5, %v7394_v33, %v5776_v0  ;;  %v7241_v0 = vcombine.low %v4168_v4, %v4178_v13 }
 0x27d   : > { %v5786_v60 = vrot.slane %v7387_v27, 7  ;;  %v4352_v4 = vshrl.u32 %v7247_v36, 16 }
 0x27e   : > { %v5780_v51 = vsel %vm10269_vm5, %v5778_v50, %v5779_v16  ;;  %v4197_v48 = vrot.slane %v4196_v1, 4  ;;  %v4270_v33 = vsel %vm601_vm1, %v7241_v0, 0  ;;  %v5784_v16 = vsel %vm10269_vm5, %v7395_v24, %v5783_v23 }
 0x27f   : > { %8016 = vmatpush3.bf16.xpose.msra.mxu0 %v4261_v44  ;;  %v7232_v44 = vld [vmem:[%s8678_s30 + $0x8c] sm:$0x1]  ;;  %v4211_v1 = vrot.slane %v4210_v22, 4  ;;  %v4348_v23 = vor.u32 %v4347_v52, %v4346_v42  ;;  %v4354_v37 = vrot.slane %v4352_v4, 5  ;;  %v4369_v0 = vrot.slane %v10651_v53, 5 }
 0x280   : > { %8017 = vmatprep.subr.bf16.mxu0 %v11434_v62  ;;  %v4199_v32 = vshll.u32 %v7232_v44, 16  ;;  %v7402_v44 = vcombine.low %v5777_v8, %v5780_v51  ;;  %v4355_v8 = vshll.u32 %v7247_v36, 16 }
 0x281   : > { %8158 = vmatpush3.bf16.xpose.msra.mxu1 %v5825_v46  ;;  %v7234_v46 = vld [vmem:[%s8678_s30 + $0x94] sm:$0xf] }
 0x282   : > { %8159 = vmatprep.subr.bf16.mxu1 %v11434_v62  ;;  %v10806_v57 = vshll.u32 %v7234_v46, 16  ;;  %v10808_v31 = vshrl.u32 %v7234_v46, 16  ;;  %v4201_v3 = vrot.slane %v4199_v32, 5  ;;  %v5834_v46 = vsel %vm601_vm1, %v7402_v44, 0 }
 0x283   : > { %v4370_v44 = vrot.slane %v10649_v55, 6 }
 0x284   : > { %v4215_v7 = vrot.slane %v10806_v57, 5  ;;  %v4219_v54 = vrot.slane %v10808_v31, 4  ;;  %v4202_v11 = vsel %vm9877_vm13, %v4197_v48, %v4201_v3  ;;  %v7250_v48 = vld [vmem:[%s8678_s30 + $0x54] sm:$0xe] }
 0x286   : > { %v4220_v26 = vor.u32 %v4219_v54, %v4215_v7  ;;  %v4216_v27 = vsel %vm9877_vm13, %v4211_v1, %v4215_v7  ;;  %v8420_v1 = vld [vmem:[%s8678_s30 + $0x48] sm:$0xff]  }
 0x287   : > { %8018 = vmatpush3.bf16.xpose.msra.mxu0 %v4264_v10  ;;  %v4187_v10 = vrot.slane %v4186_v63, 4  ;;  %v7248_v63 = vld [vmem:[%s8678_s30 + $0x48] sm:$0xe] }
 0x288   : > { %8019 = vmatprep.subr.bf16.mxu0 %v11434_v62  ;;  %v4221_v61 = vrot.slane %v4220_v26, 4  ;;  %v4361_v13 = vshrl.u32 %v7248_v63, 16  ;;  %v4364_v51 = vshll.u32 %v7248_v63, 16  ;;  %v4401_v63 = vshll.u32 %v7251_v56, 16 }
 0x289   : > { %8160 = vmatpush3.bf16.xpose.msra.mxu1 %v5828_v34  ;;  %v4223_v34 = vshll.u32 %v7235_v41, 16  ;;  %v4192_v28 = vsel %vm9877_vm13, %v4187_v10, %v4191_v49  ;;  %v5787_v49 = vsel %vm10269_vm5, %v5785_v12, %v5786_v60  ;;  %v7249_v10 = vld [vmem:[%s8678_s30 + $0x50] sm:$0x3]  ;;  %v4384_v12 = vshrl.u32 %v7250_v48, 16 }
 0x28a   : > { %8161 = vmatprep.subr.bf16.mxu1 %v11434_v62  ;;  %v7242_v50 = vcombine.low %v4192_v28, %v4202_v11  ;;  %v7403_v14 = vcombine.low %v5784_v16, %v5787_v49  ;;  %v4363_v54 = vrot.slane %v4361_v13, 5  ;;  %v4366_v39 = vrot.slane %v4364_v51, 6  ;;  %v7363_v51 = vld [vmem:[%s11414_s1 + $0x50] sm:$0xf] }
 0x28b   : > { %v4225_v32 = vrot.slane %v4223_v34, 5  ;;  %v4375_v24 = vshrl.u32 %v7249_v10, 16  ;;  %v4378_v7 = vshll.u32 %v7249_v10, 16  ;;  %v4387_v60 = vshll.u32 %v7250_v48, 16 }
 0x28c   : > { %v4273_v3 = vsel %vm601_vm1, %v7242_v50, 0  ;;  %v5837_v34 = vsel %vm601_vm1, %v7403_v14, 0  ;;  %v4350_v11 = vrot.slane %v4348_v23, 4  ;;  %v4367_v26 = vor.u32 %v4366_v39, %v4363_v54  ;;  %v7254_v39 = vld [vmem:[%s8678_s30 + $0x6c] sm:$0xe] }
 0x28d   : > { %v4226_v41 = vsel %vm9877_vm13, %v4221_v61, %v4225_v32  ;;  %v4386_v36 = vrot.slane %v4384_v12, 5  ;;  %v4389_v50 = vrot.slane %v4387_v60, 6  ;;  %v4392_v16 = vrot.slane %v10676_v2, 5  ;;  %v7256_v60 = vld [vmem:[%s8678_s30 + $0x78] sm:$0xe] }
 0x28e   : > { %v7243_v28 = vcombine.low %v4216_v27, %v4226_v41  ;;  %v4393_v49 = vrot.slane %v10674_v59, 6  ;;  %v4398_v32 = vshrl.u32 %v7251_v56, 16  ;;  %v4403_v27 = vrot.slane %v4401_v63, 6  ;;  %v7253_v41 = vld [vmem:[%s8678_s30 + $0x68] sm:$0x3]  ;;  %v8422_v63 = vld [vmem:[%s8678_s30 + $0x60] sm:$0xff]  }
 0x28f   : > { %8020 = vmatpush3.bf16.xpose.msra.mxu0 %v4267_v18  ;;  %v4343_v18 = vrot.slane %v4341_v40, 6  ;;  %v4371_v40 = vor.u32 %v4370_v44, %v4369_v0  ;;  %v4390_v13 = vor.u32 %v4389_v50, %v4386_v36  ;;  %v8421_v0 = vld [vmem:[%s8678_s30 + $0x54] sm:$0xff]   ;;  %v4415_v12 = vrot.slane %v10713_v47, 5 }
 0x290   : > { %8021 = vmatprep.subr.bf16.mxu0 %v11434_v62  ;;  %v4276_v42 = vsel %vm601_vm1, %v7243_v28, 0  ;;  %v4400_v14 = vrot.slane %v4398_v32, 5  ;;  %v4416_v28 = vrot.slane %v10711_v38, 6  ;;  %v4424_v56 = vshll.u32 %v7253_v41, 16  ;;  %v7255_v32 = vld [vmem:[%s8678_s30 + $0x74] sm:$0x3] }
 0x291   : > { %8162 = vmatpush3.bf16.xpose.msra.mxu1 %v5831_v43  ;;  %v4344_v9 = vor.u32 %v4343_v18, %v4340_v29  ;;  %v4357_v43 = vrot.slane %v4355_v8, 6  ;;  %v7252_v29 = vld [vmem:[%s8678_s30 + $0x60] sm:$0xe]  ;;  %v4368_v18 = vrot.slane %v4367_v26, 4  ;;  %v4373_v4 = vrot.slane %v4371_v40, 4 }
 0x292   : > { %8163 = vmatprep.subr.bf16.mxu1 %v11434_v62  ;;  %v4407_v10 = vshrl.u32 %v7252_v29, 16  ;;  %v4410_v48 = vshll.u32 %v7252_v29, 16  ;;  %v4391_v54 = vrot.slane %v4390_v13, 4  ;;  %v4433_v26 = vshll.u32 %v7254_v39, 16 }
 0x293   : > { %v4345_v22 = vrot.slane %v4344_v9, 4  ;;  %v4358_v20 = vor.u32 %v4357_v43, %v4354_v37  ;;  %v4372_v37 = vsel %vm8706_vm7, %v4368_v18, %v4371_v40  ;;  %v5949_v36 = vsel %vm601_vm1, %v8421_v0, 0 }
 0x294   : > { %v10901_v29 = vor.u32 %v4416_v28, %v4415_v12  ;;  %v4439_v13 = vrot.slane %v10739_v19, 6 }
 0x295   : > { %v4349_v52 = vsel %vm8706_vm7, %v4345_v22, %v4348_v23  ;;  %v4359_v61 = vsel %vm8706_vm7, %v4350_v11, %v4358_v20  ;;  %v5946_v23 = vsel %vm601_vm1, %v8420_v1, 0  ;;  %v4421_v11 = vshrl.u32 %v7253_v41, 16  ;;  %v7209_v22 = vld [vmem:[%s11414_s1 + $0x34] sm:$0xf] }
 0x296   : > { %v7262_v9 = vcombine.low %v4349_v52, %v4359_v61  ;;  %v4430_v20 = vshrl.u32 %v7254_v39, 16  ;;  %v4426_v52 = vrot.slane %v4424_v56, 6  ;;  %v7257_v61 = vld [vmem:[%s8678_s30 + $0x80] sm:$0x3]  ;;  %v7260_v56 = vld [vmem:[%s8678_s30 + $0x90] sm:$0xe] }
 0x297   : > { %8022 = vmatpush3.bf16.xpose.msra.mxu0 %v4270_v33  ;;  %v4377_v33 = vrot.slane %v4375_v24, 5  ;;  %v4404_v24 = vor.u32 %v4403_v27, %v4400_v14  ;;  %v4447_v14 = vshll.u32 %v7255_v32, 16  ;;  %v4467_v41 = vshrl.u32 %v7257_v61, 16 }
 0x298   : > { %8023 = vmatprep.subr.bf16.mxu0 %v11434_v62  ;;  %v4549_v40 = vsel %vm601_vm1, %v7262_v9, 0  ;;  %v4432_v18 = vrot.slane %v4430_v20, 5  ;;  %v4470_v9 = vshll.u32 %v7257_v61, 16  ;;  %v8423_v61 = vld [vmem:[%s8678_s30 + $0x6c] sm:$0xff]  }
 0x299   : > { %8164 = vmatpush3.bf16.xpose.msra.mxu1 %v5834_v46  ;;  %v4380_v46 = vrot.slane %v4378_v7, 6  ;;  %v4409_v7 = vrot.slane %v4407_v10, 5  ;;  %v4449_v28 = vrot.slane %v4447_v14, 6 }
 0x29a   : > { %8165 = vmatprep.subr.bf16.mxu1 %v11434_v62 }
 0x29b   : > { %v4381_v8 = vor.u32 %v4380_v46, %v4377_v33  ;;  %v4453_v33 = vshrl.u32 %v7256_v60, 16  ;;  %v4456_v46 = vshll.u32 %v7256_v60, 16 }
 0x29d   : > { %v4382_v43 = vsel %vm8706_vm7, %v4373_v4, %v4381_v8  ;;  %v4435_v4 = vrot.slane %v4433_v26, 6  ;;  %v4438_v8 = vrot.slane %v10741_v30, 5  ;;  %v4455_v27 = vrot.slane %v4453_v33, 5 }
 0x29e   : > { %v7263_v50 = vcombine.low %v4372_v37, %v4382_v43  ;;  %v4458_v10 = vrot.slane %v4456_v46, 6  ;;  %v5952_v43 = vsel %vm601_vm1, %v8422_v63, 0  ;;  %v4469_v26 = vrot.slane %v4467_v41, 5 }
 0x29f   : > { %8024 = vmatpush3.bf16.xpose.msra.mxu0 %v4273_v3  ;;  %v10869_v3 = vor.u32 %v4393_v49, %v4392_v16  ;;  %v4436_v12 = vor.u32 %v4435_v4, %v4432_v18  ;;  %v10916_v60 = vor.u32 %v4439_v13, %v4438_v8  ;;  %v4502_v63 = vshll.u32 %v7260_v56, 16 }
 0x2a0   : > { %8025 = vmatprep.subr.bf16.mxu0 %v11434_v62  ;;  %v4552_v37 = vsel %vm601_vm1, %v7263_v50, 0  ;;  %v4485_v50 = vrot.slane %v10781_v5, 6 }
 0x2a1   : > { %8166 = vmatpush3.bf16.xpose.msra.mxu1 %v5837_v34  ;;  %v4396_v44 = vrot.slane %v10869_v3, 4  ;;  %v4412_v34 = vrot.slane %v4410_v48, 6  ;;  %v4395_v16 = vsel %vm8706_vm7, %v4391_v54, %v10869_v3  ;;  %v4444_v3 = vshrl.u32 %v7255_v32, 16 }
 0x2a2   : > { %8171 = vmatprep.subr.bf16.mxu1 %v11434_v62  ;;  %v4462_v48 = vrot.slane %v10763_v25, 6  ;;  %v4499_v32 = vshrl.u32 %v7260_v56, 16  ;;  %v4437_v18 = vrot.slane %v4436_v12, 4  ;;  %v4442_v4 = vrot.slane %v10916_v60, 4  ;;  %v10951_v56 = vld [vmem:[%s8678_s30 + $0x4c] sm:$0xf] }
 0x2a3   : > { %v4405_v49 = vsel %vm8706_vm7, %v4396_v44, %v4404_v24  ;;  %v4413_v1 = vor.u32 %v4412_v34, %v4409_v7  ;;  %v4419_v24 = vrot.slane %v10901_v29, 4  ;;  %v4446_v34 = vrot.slane %v4444_v3, 5 }
 0x2a4   : > { %v7264_v0 = vcombine.low %v4395_v16, %v4405_v49  ;;  %v4504_v41 = vrot.slane %v4502_v63, 6 }
 0x2a5   : > { %v4414_v44 = vrot.slane %v4413_v1, 4  ;;  %v4450_v8 = vor.u32 %v4449_v28, %v4446_v34 }
 0x2a6   : > { %v4555_v1 = vsel %vm601_vm1, %v7264_v0, 0  ;;  %v5955_v0 = vsel %vm601_vm1, %v8423_v61, 0 }
 0x2a7   : > { %8026 = vmatpush3.bf16.xpose.msra.mxu0 %v4276_v42  ;;  %v4423_v42 = vrot.slane %v4421_v11, 5  ;;  %v7259_v11 = vld [vmem:[%s8678_s30 + $0x8c] sm:$0x3] }
 0x2a8   : > { %8168 = vmatmul.mubr.msk.bf16.vlgmr.msra.gmra.mrb[4].mxu1 %vm601_vm1, %v7363_v51  ;;  %8031 = vmatprep.subr.bf16.mxu0 %v11434_v62  ;;  %v7258_v51 = vld [vmem:[%s8678_s30 + $0x84] sm:$0xe]  ;;  %v4490_v16 = vshrl.u32 %v7259_v11, 16  ;;  %v4493_v49 = vshll.u32 %v7259_v11, 16 }
 0x2a9   : > { %8172 = vmatpush3.bf16.xpose.msra.mxu1 %v5946_v23  ;;  %8187 = vmatprep.mubr.msk.bf16.mxu1 %vm8555_vm0, %v11434_v62  ;;  %v4461_v23 = vrot.slane %v10765_v21, 5  ;;  %v4476_v54 = vshrl.u32 %v7258_v51, 16  ;;  %v4479_v39 = vshll.u32 %v7258_v51, 16  ;;  %v4427_v7 = vor.u32 %v4426_v52, %v4423_v42  ;;  %v7261_v51 = vld [vmem:[%s8678_s30 + $0x98] sm:$0x3] }
 0x2aa   : > { %8173 = vmatprep.subr.bf16.mxu1 %v11434_v62  ;;  %v4418_v42 = vsel %vm8706_vm7, %v4414_v44, %v10901_v29  ;;  %v4492_v29 = vrot.slane %v4490_v16, 5  ;;  %v6049_v16 = vshll.u32 %v10951_v56, 16 }
 0x2ab   : > { %v10920_v20 = vor.u32 %v4462_v48, %v4461_v23  ;;  %v4478_v33 = vrot.slane %v4476_v54, 5  ;;  %v4481_v46 = vrot.slane %v4479_v39, 6  ;;  %v4428_v52 = vsel %vm8706_vm7, %v4419_v24, %v4427_v7  ;;  %v7434_v39 = vld [vmem:[%s8678_s30 + $0x48] sm:$0xe] }
 0x2ac   : > { %v4495_v23 = vrot.slane %v4493_v49, 6  ;;  %v4501_v48 = vrot.slane %v4499_v32, 5  ;;  %v4516_v54 = vshll.u32 %v7261_v51, 16  ;;  %v7265_v44 = vcombine.low %v4418_v42, %v4428_v52  ;;  %v8424_v32 = vld [vmem:[%s8678_s30 + $0x78] sm:$0xff]  }
 0x2ad   : > { %v4465_v3 = vrot.slane %v10920_v20, 4  ;;  %v4441_v24 = vsel %vm8706_vm7, %v4437_v18, %v10916_v60  ;;  %v4451_v7 = vsel %vm8706_vm7, %v4442_v4, %v4450_v8 }
 0x2ae   : > { %8028 = vmatmul.mubr.msk.bf16.vlgmr.msra.gmra.mrb[8].mxu0 %vm601_vm1, %v7209_v22  ;;  %v4459_v22 = vor.u32 %v4458_v10, %v4455_v27  ;;  %v4482_v27 = vor.u32 %v4481_v46, %v4478_v33  ;;  %v4505_v60 = vor.u32 %v4504_v41, %v4501_v48  ;;  %v4558_v49 = vsel %vm601_vm1, %v7265_v44, 0 }
 0x2af   : > { %8032 = vmatpush3.bf16.xpose.msra.mxu0 %v4549_v40  ;;  %8047 = vmatprep.mubr.msk.bf16.mxu0 %vm8555_vm0, %v11434_v62  ;;  %v4472_v40 = vrot.slane %v4470_v9, 6  ;;  %v4507_v9 = vrot.slane %v10808_v31, 5  ;;  %v7266_v63 = vcombine.low %v4441_v24, %v4451_v7  ;;  %v6051_v48 = vrot.slane %v6049_v16, 6  ;;  %v10976_v7 = vld [vmem:[%s8678_s30 + $0x58] sm:$0xf] }
 0x2b0   : > { %8033 = vmatprep.subr.bf16.mxu0 %v11434_v62  ;;  %v4460_v13 = vrot.slane %v4459_v22, 4  ;;  %v4483_v28 = vrot.slane %v4482_v27, 4  ;;  %v4496_v22 = vor.u32 %v4495_v23, %v4492_v29  ;;  %v4506_v18 = vrot.slane %v4505_v60, 4  ;;  %v7272_v27 = vld [vmem:[%s8678_s30 + $0x3c] sm:$0xc]  ;;  %v8426_v29 = vld [vmem:[%s8678_s30 + $0x90] sm:$0xff]  }
 0x2b1   : > { %8174 = vmatpush3.bf16.xpose.msra.mxu1 %v5949_v36  ;;  %v4484_v36 = vrot.slane %v10783_v6, 5  ;;  %v4473_v14 = vor.u32 %v4472_v40, %v4469_v26  ;;  %v6037_v26 = vshrl.u32 %v7434_v39, 16  ;;  %v6040_v40 = vshll.u32 %v7434_v39, 16 }
 0x2b2   : > { %8175 = vmatprep.subr.bf16.mxu1 %v11434_v62  ;;  %v4464_v12 = vsel %vm8706_vm7, %v4460_v13, %v10920_v20  ;;  %v7436_v20 = vld [vmem:[%s8678_s30 + $0x50] sm:$0x3]  ;;  %v5958_v41 = vsel %vm601_vm1, %v8424_v32, 0  ;;  %v4632_v44 = vshrl.u32 %v7272_v27, 16  ;;  %v4635_v24 = vshll.u32 %v7272_v27, 16 }
 0x2b3   : > { %v4486_v10 = vor.u32 %v4485_v50, %v4484_v36  ;;  %v4474_v34 = vsel %vm8706_vm7, %v4465_v3, %v4473_v14  ;;  %v4518_v36 = vrot.slane %v4516_v54, 6  ;;  %v6046_v50 = vshrl.u32 %v10951_v56, 16  ;;  %v7437_v54 = vld [vmem:[%s8678_s30 + $0x54] sm:$0xe] }
 0x2b4   : > { %v7267_v42 = vcombine.low %v4464_v12, %v4474_v34  ;;  %v6039_v4 = vrot.slane %v6037_v26, 5  ;;  %v6042_v8 = vrot.slane %v6040_v40, 6  ;;  %v6056_v3 = vshrl.u32 %v7436_v20, 16  ;;  %v7273_v26 = vld [vmem:[%s8678_s30 + $0x44] sm:$0x7] }
 0x2b5   : > { %v4488_v11 = vrot.slane %v4486_v10, 4  ;;  %v4487_v52 = vsel %vm8706_vm7, %v4483_v28, %v4486_v10  ;;  %v6059_v14 = vshll.u32 %v7436_v20, 16  ;;  %v6048_v23 = vrot.slane %v6046_v50, 5 }
 0x2b6   : > { %v4561_v10 = vsel %vm601_vm1, %v7266_v63, 0  ;;  %v10973_v39 = vsel %vm601_vm1, %v7267_v42, 0  ;;  %v6058_v28 = vrot.slane %v6056_v3, 5  ;;  %v6065_v40 = vshrl.u32 %v7437_v54, 16 }
 0x2b7   : > { %8034 = vmatpush3.bf16.xpose.msra.mxu0 %v4552_v37  ;;  %v4508_v37 = vrot.slane %v10806_v57, 6  ;;  %v4497_v61 = vsel %vm8706_vm7, %v4488_v11, %v4496_v22  ;;  %v6061_v11 = vrot.slane %v6059_v14, 6  ;;  %v10984_v22 = vsel %vm601_vm1, %v8426_v29, 0  ;;  %v7440_v14 = vld [vmem:[%s8678_s30 + $0x60] sm:$0xe] }
 0x2b8   : > { %8035 = vmatprep.subr.bf16.mxu0 %v11434_v62  ;;  %v10986_v60 = vor.u32 %v6051_v48, %v6048_v23  ;;  %v6074_v20 = vshrl.u32 %v10976_v7, 16  ;;  %v6077_v50 = vshll.u32 %v10976_v7, 16  ;;  %v4634_v32 = vrot.slane %v4632_v44, 6 }
 0x2b9   : > { %8176 = vmatpush3.bf16.xpose.msra.mxu1 %v5952_v43  ;;  %v4513_v43 = vshrl.u32 %v7261_v51, 16  ;;  %v4509_v33 = vor.u32 %v4508_v37, %v4507_v9  ;;  %v7268_v37 = vcombine.low %v4487_v52, %v4497_v61  ;;  %v4637_v63 = vrot.slane %v4635_v24, 7 }
 0x2ba   : > { %8177 = vmatprep.subr.bf16.mxu1 %v11434_v62  ;;  %v6062_v42 = vor.u32 %v6061_v11, %v6058_v28  ;;  %v4640_v52 = vrot.slane %v10634_v58, 6  ;;  %v4641_v61 = vrot.slane %v10632_v45, 7  ;;  %v6076_v27 = vrot.slane %v6074_v20, 5  ;;  %v7442_v20 = vld [vmem:[%s8678_s30 + $0x68] sm:$0x3] }
 0x2bb   : > { %v4515_v46 = vrot.slane %v4513_v43, 5  ;;  %v4511_v13 = vrot.slane %v4509_v33, 4  ;;  %v8427_v43 = vld [vmem:[%s8678_s30 + $0x9c] sm:$0xff]   ;;  %v4510_v12 = vsel %vm8706_vm7, %v4506_v18, %v4509_v33  ;;  %v10991_v33 = vsel %vm601_vm1, %v7268_v37, 0 }
 0x2bc   : > { %v4646_v18 = vshrl.u32 %v7273_v26, 16  ;;  %v6079_v29 = vrot.slane %v6077_v50, 6  ;;  %v4638_v58 = vor.u32 %v4637_v63, %v4634_v32  ;;  %v6093_v44 = vshrl.u32 %v7440_v14, 16  ;;  %v7276_v63 = vld [vmem:[%s8678_s30 + $0x54] sm:$0xc] }
 0x2bd   : > { %v4519_v51 = vor.u32 %v4518_v36, %v4515_v46  ;;  %v6068_v46 = vshll.u32 %v7437_v54, 16  ;;  %v10994_v36 = vsel %vm601_vm1, %v8427_v43, 0  ;;  %v11016_v54 = vor.u32 %v4641_v61, %v4640_v52 }
 0x2be   : > { %v6096_v24 = vshll.u32 %v7440_v14, 16  ;;  %v4664_v32 = vrot.slane %v10649_v55, 7  ;;  %v6095_v52 = vrot.slane %v6093_v44, 5  ;;  %v4678_v14 = vshrl.u32 %v7276_v63, 16 }
 0x2bf   : > { %8036 = vmatpush3.bf16.xpose.msra.mxu0 %v4555_v1  ;;  %v8425_v1 = vld [vmem:[%s8678_s30 + $0x84] sm:$0xff]   ;;  %v4520_v34 = vsel %vm8706_vm7, %v4511_v13, %v4519_v51  ;;  %v4649_v13 = vshll.u32 %v7273_v26, 16  ;;  %v6067_v51 = vrot.slane %v6065_v40, 5  ;;  %v6070_v3 = vrot.slane %v6068_v46, 6 }
 0x2c0   : > { %8037 = vmatprep.subr.bf16.mxu0 %v11434_v62  ;;  %v5961_v9 = vsel %vm601_vm1, %v8425_v1, 0  ;;  %v10998_v16 = vcombine.low %v4510_v12, %v4520_v34  ;;  %v7439_v1 = vld [vmem:[%s8678_s30 + $0x5c] sm:$0x3]  ;;  %v7275_v34 = vld [vmem:[%s8678_s30 + $0x50] sm:$0x7]  ;;  %v11024_v26 = vor.u32 %v6079_v29, %v6076_v27  ;;  %v6098_v61 = vrot.slane %v6096_v24, 6 }
 0x2c1   : > { %8178 = vmatpush3.bf16.xpose.msra.mxu1 %v5955_v0  ;;  %v6043_v0 = vor.u32 %v6042_v8, %v6039_v4  ;;  %v7274_v4 = vld [vmem:[%s8678_s30 + $0x48] sm:$0xc]  ;;  %v6054_v8 = vrot.slane %v10986_v60, 4  ;;  %v6084_v23 = vshrl.u32 %v7439_v1, 16  ;;  %v6087_v48 = vshll.u32 %v7439_v1, 16 }
 0x2c2   : > { %8179 = vmatprep.subr.bf16.mxu1 %v11434_v62  ;;  %v4655_v37 = vshrl.u32 %v7274_v4, 16  ;;  %v4658_v43 = vshll.u32 %v7274_v4, 16  ;;  %v4651_v12 = vrot.slane %v4649_v13, 7  ;;  %v4669_v1 = vshrl.u32 %v7275_v34, 16 }
 0x2c3   : > { %v6086_v40 = vrot.slane %v6084_v23, 5  ;;  %v6089_v46 = vrot.slane %v6087_v48, 6  ;;  %v6115_v13 = vshll.u32 %v7442_v20, 16  ;;  %v4681_v27 = vshll.u32 %v7276_v63, 16 }
 0x2c4   : > { %v4657_v50 = vrot.slane %v4655_v37, 6  ;;  %v6082_v55 = vrot.slane %v11024_v26, 4  ;;  %v6099_v24 = vor.u32 %v6098_v61, %v6095_v52 }
 0x2c5   : > { %v6090_v23 = vor.u32 %v6089_v46, %v6086_v40 }
 0x2c7   : > { %8038 = vmatpush3.bf16.xpose.msra.mxu0 %v4558_v49  ;;  %v11000_v49 = vrot.slane %v6043_v0, 4  ;;  %v4648_v0 = vrot.slane %v4646_v18, 6 }
 0x2c8   : > { %8039 = vmatprep.subr.bf16.mxu0 %v11434_v62 }
 0x2c9   : > { %8180 = vmatpush3.bf16.xpose.msra.mxu1 %v5958_v41  ;;  %v11009_v41 = vld [vmem:[%s8678_s30 + $0x64] sm:$0xf]  ;;  %v6053_v45 = vsel %vm8706_vm7, %v11000_v49, %v10986_v60  ;;  %v6071_v60 = vor.u32 %v6070_v3, %v6067_v51  ;;  %v4663_v49 = vrot.slane %v10651_v53, 6  ;;  %v4639_v51 = vrot.slane %v4638_v58, 4  ;;  %v7277_v58 = vld [vmem:[%s8678_s30 + $0x5c] sm:$0x7] }
 0x2ca   : > { %8181 = vmatprep.subr.bf16.mxu1 %v11434_v62  ;;  %v6102_v28 = vshrl.u32 %v11009_v41, 16  ;;  %v6105_v11 = vshll.u32 %v11009_v41, 16  ;;  %v4644_v3 = vrot.slane %v11016_v54, 4  ;;  %v4652_v53 = vor.u32 %v4651_v12, %v4648_v0 }
 0x2cb   : > { %v6072_v29 = vrot.slane %v6071_v60, 4  ;;  %v11034_v37 = vor.u32 %v4664_v32, %v4663_v49  ;;  %v6117_v0 = vrot.slane %v6115_v13, 6  ;;  %v4680_v12 = vrot.slane %v4678_v14, 6  ;;  %v7445_v14 = vld [vmem:[%s8678_s30 + $0x74] sm:$0x3] }
 0x2cc   : > { %v6104_v18 = vrot.slane %v6102_v28, 5  ;;  %v6107_v4 = vrot.slane %v6105_v11, 6  ;;  %v4683_v28 = vrot.slane %v4681_v27, 7  ;;  %v4686_v11 = vrot.slane %v10676_v2, 6 }
 0x2cd   : > { %v4687_v60 = vrot.slane %v10674_v59, 7  ;;  %v4643_v46 = vsel %vm10131_vm2, %v4639_v51, %v11016_v54  ;;  %v6081_v49 = vsel %vm8706_vm7, %v6072_v29, %v11024_v26  ;;  %v6091_v2 = vsel %vm8706_vm7, %v6082_v55, %v6090_v23  ;;  %v11055_v59 = vld [vmem:[%s8678_s30 + $0x70] sm:$0xf]  ;;  %v7278_v55 = vld [vmem:[%s8678_s30 + $0x60] sm:$0xc] }
 0x2ce   : > { %v6100_v54 = vrot.slane %v6099_v24, 4  ;;  %v4570_v13 = vsel %vm601_vm1, %v10998_v16, 0  ;;  %v6133_v27 = vshll.u32 %v11055_v59, 16 }
 0x2cf   : > { %8040 = vmatpush3.bf16.xpose.msra.mxu0 %v4561_v10  ;;  %v6063_v10 = vsel %vm8706_vm7, %v6054_v8, %v6062_v42  ;;  %v4672_v42 = vshll.u32 %v7275_v34, 16  ;;  %v6112_v8 = vshrl.u32 %v7442_v20, 16  ;;  %v11038_v34 = vor.u32 %v6107_v4, %v6104_v18 }
 0x2d0   : > { %8041 = vmatprep.subr.bf16.mxu0 %v11434_v62  ;;  %v7458_v40 = vcombine.low %v6053_v45, %v6063_v10  ;;  %v4695_v20 = vshll.u32 %v7277_v58, 16  ;;  %v4667_v45 = vrot.slane %v11034_v37, 4  ;;  %v11059_v52 = vor.u32 %v4687_v60, %v4686_v11  ;;  %v7405_v60 = vld [vmem:[%s11414_s1 + $0x54] sm:$0xf] }
 0x2d1   : > { %8182 = vmatpush3.bf16.xpose.msra.mxu1 %v5961_v9  ;;  %v4660_v9 = vrot.slane %v4658_v43, 7  ;;  %v4671_v43 = vrot.slane %v4669_v1, 6  ;;  %v4674_v44 = vrot.slane %v4672_v42, 7  ;;  %v6110_v1 = vrot.slane %v11038_v34, 4 }
 0x2d2   : > { %8183 = vmatprep.subr.bf16.mxu1 %v11434_v62  ;;  %v4684_v42 = vor.u32 %v4683_v28, %v4680_v12  ;;  %v4697_v18 = vrot.slane %v4695_v20, 7  ;;  %v6288_v51 = vsel %vm601_vm1, %v7458_v40, 0  ;;  %v6109_v16 = vsel %vm8706_vm7, %v6100_v54, %v11038_v34 }
 0x2d3   : > { %v4661_v48 = vor.u32 %v4660_v9, %v4657_v50  ;;  %v7443_v50 = vld [vmem:[%s8678_s30 + $0x6c] sm:$0xe]  ;;  %v4653_v9 = vsel %vm10131_vm2, %v4644_v3, %v4652_v53  ;;  %v4675_v10 = vor.u32 %v4674_v44, %v4671_v43  ;;  %v7446_v44 = vld [vmem:[%s8678_s30 + $0x78] sm:$0xe]  ;;  %v6135_v12 = vrot.slane %v6133_v27, 6 }
 0x2d4   : > { %v6121_v61 = vshrl.u32 %v7443_v50, 16  ;;  %v6124_v4 = vshll.u32 %v7443_v50, 16  ;;  %v7288_v3 = vcombine.low %v4643_v46, %v4653_v9  ;;  %v6143_v34 = vshll.u32 %v7445_v14, 16  ;;  %v7279_v9 = vld [vmem:[%s8678_s30 + $0x68] sm:$0x7] }
 0x2d5   : > { %v4662_v32 = vrot.slane %v4661_v48, 4  ;;  %v4676_v29 = vsel %vm10131_vm2, %v4667_v45, %v4675_v10  ;;  %v4690_v48 = vrot.slane %v11059_v52, 4  ;;  %v4701_v28 = vshrl.u32 %v7278_v55, 16  ;;  %v7245_v27 = vld [vmem:[%s11414_s1 + $0x38] sm:$0xf] }
 0x2d6   : > { %v6123_v43 = vrot.slane %v6121_v61, 5  ;;  %v4704_v11 = vshll.u32 %v7278_v55, 16  ;;  %v4843_v40 = vsel %vm601_vm1, %v7288_v3, 0  ;;  %v6145_v61 = vrot.slane %v6143_v34, 6  ;;  %v7449_v34 = vld [vmem:[%s8678_s30 + $0x84] sm:$0xe] }
 0x2d7   : > { %8042 = vmatpush3.bf16.xpose.msra.mxu0 %v10973_v39  ;;  %v6114_v39 = vrot.slane %v6112_v8, 5  ;;  %v6130_v8 = vshrl.u32 %v11055_v59, 16  ;;  %v4666_v53 = vsel %vm10131_vm2, %v4662_v32, %v11034_v37  ;;  %v4715_v3 = vshrl.u32 %v7279_v9, 16 }
 0x2d8   : > { %8043 = vmatprep.subr.bf16.mxu0 %v11434_v62 }
 0x2d9   : > { %8184 = vmatpush3.bf16.xpose.msra.mxu1 %v10984_v22  ;;  %v4692_v22 = vshrl.u32 %v7277_v58, 16  ;;  %v6118_v63 = vor.u32 %v6117_v0, %v6114_v39  ;;  %v6126_v58 = vrot.slane %v6124_v4, 6  ;;  %v6132_v24 = vrot.slane %v6130_v8, 5  ;;  %v11085_v0 = vld [vmem:[%s8678_s30 + $0x7c] sm:$0xf]  ;;  %v6553_v4 = vld [vmem:[%s11416_s3 + $0x8] sm:$0xff] }
 0x2da   : > { %8185 = vmatprep.subr.bf16.mxu1 %v11434_v62  ;;  %v6140_v39 = vshrl.u32 %v7445_v14, 16  ;;  %v6158_v32 = vshrl.u32 %v11085_v0, 16  ;;  %v4709_v8 = vrot.slane %v10713_v47, 6  ;;  %v4718_v14 = vshll.u32 %v7279_v9, 16  ;;  %6563 = vperm.xlu0 %8400, %v6553_v4   ;;  %v11137_v9 = vld [vmem:[%s8678_s30 + $0x88] sm:$0xf] }
 0x2db   : > { %v4694_v26 = vrot.slane %v4692_v22, 6  ;;  %v6119_v23 = vsel %vm8706_vm7, %v6110_v1, %v6118_v63  ;;  %v7289_v22 = vcombine.low %v4666_v53, %v4676_v29  ;;  %v6127_v10 = vor.u32 %v6126_v58, %v6123_v43  ;;  %v7448_v63 = vld [vmem:[%s8678_s30 + $0x80] sm:$0x3] }
 0x2dc   : > { %v7460_v20 = vcombine.low %v6109_v16, %v6119_v23  ;;  %v11101_v54 = vrot.slane %v6140_v39, 5  ;;  %v6161_v1 = vshll.u32 %v11085_v0, 16  ;;  %v6160_v47 = vrot.slane %v6158_v32, 5  ;;  %v6588_v23 = vld [vmem:[%s305_s13] sm:$0xff]  ;;  %s6607_s13 = sadd.s32 %s8536_s21, %s8322_s9 }
 0x2dd   : > { %v4698_v37 = vor.u32 %v4697_v18, %v4694_v26  ;;  %v4703_v26 = vrot.slane %v4701_v28, 6  ;;  %v4706_v18 = vrot.slane %v4704_v11, 7  ;;  %v6171_v29 = vshll.u32 %v7448_v63, 16  ;;  %s7501_s16 = sshll.u32 %s6607_s13, 7 }
 0x2de   : > { %v6163_v53 = vrot.slane %v6161_v1, 6  ;;  %v6146_v58 = vor.u32 %v6145_v61, %v11101_v54  ;;  %v4717_v28 = vrot.slane %v4715_v3, 6  ;;  %v4720_v11 = vrot.slane %v4718_v14, 7  ;;  %6591 = vperm.xlu0 %8400, %v6588_v23   ;;  %s11356_s21 = scalar_lea.hbm %s11418_s5, %s7501_s16 }
 0x2df   : > { %8044 = vmatpush3.bf16.xpose.msra.mxu0 %v10991_v33  ;;  %v7459_v33 = vcombine.low %v6081_v49, %v6091_v2  ;;  %v6149_v49 = vshrl.u32 %v7446_v44, 16  ;;  %v6152_v2 = vshll.u32 %v7446_v44, 16  ;;  %v4699_v45 = vsel %vm10131_vm2, %v4690_v48, %v4698_v37 }
 0x2e0   : > { %8045 = vmatprep.subr.bf16.mxu0 %v11434_v62  ;;  %v11127_v48 = vsel %vm601_vm1, %v7460_v20, 0  ;;  %v6128_v44 = vrot.slane %v6127_v10, 4  ;;  %v11139_v20 = vor.u32 %v6163_v53, %v6160_v47  ;;  %v4732_v32 = vrot.slane %v10741_v30, 6 }
 0x2e1   : > { %8186 = vmatpush3.bf16.xpose.msra.mxu1 %v10994_v36  ;;  %v4685_v36 = vrot.slane %v4684_v42, 4  ;;  %v11092_v46 = vsel %vm601_vm1, %v7459_v33, 0  ;;  %v7280_v42 = vld [vmem:[%s8678_s30 + $0x6c] sm:$0xc]  ;;  %v6154_v33 = vrot.slane %v6152_v2, 6  ;;  %v6180_v1 = vshll.u32 %v7449_v34, 16 }
 0x2e2   : > { %8191 = vmatprep.subr.bf16.mxu1 %v11434_v62  ;;  %v4724_v16 = vshrl.u32 %v7280_v42, 16  ;;  %v4727_v55 = vshll.u32 %v7280_v42, 16  ;;  %v6186_v42 = vshrl.u32 %v11137_v9, 16 }
 0x2e3   : > { %v4689_v50 = vsel %vm10131_vm2, %v4685_v36, %v11059_v52  ;;  %v11108_v52 = vor.u32 %v6135_v12, %v6132_v24  ;;  %v4846_v36 = vsel %vm601_vm1, %v7289_v22, 0  ;;  %v4707_v24 = vor.u32 %v4706_v18, %v4703_v26  ;;  %v7281_v12 = vld [vmem:[%s8678_s30 + $0x74] sm:$0x7]  ;;  %v7451_v26 = vld [vmem:[%s8678_s30 + $0x8c] sm:$0x3] }
 0x2e4   : > { %v7290_v43 = vcombine.low %v4689_v50, %v4699_v45  ;;  %v6173_v50 = vrot.slane %v6171_v29, 6  ;;  %v4729_v2 = vrot.slane %v4727_v55, 7  ;;  %v4733_v45 = vrot.slane %v10739_v19, 7 }
 0x2e5   : > { %v6138_v37 = vrot.slane %v11108_v52, 4  ;;  %v4738_v10 = vshrl.u32 %v7281_v12, 16  ;;  %v4741_v54 = vshll.u32 %v7281_v12, 16  ;;  %v4708_v61 = vrot.slane %v4707_v24, 4 }
 0x2e6   : > { %v6189_v18 = vshll.u32 %v11137_v9, 16  ;;  %v11159_v14 = vor.u32 %v4733_v45, %v4732_v32  ;;  %v6182_v47 = vrot.slane %v6180_v1, 6  ;;  %v6196_v53 = vshrl.u32 %v7451_v26, 16 }
 0x2e7   : > { %8046 = vmatpush3.bf16.xpose.msra.mxu0 %v4570_v13  ;;  %v4710_v13 = vrot.slane %v10711_v38, 7  ;;  %v6168_v38 = vshrl.u32 %v7448_v63, 16  ;;  %v6177_v63 = vshrl.u32 %v7449_v34, 16  ;;  %v6147_v30 = vsel %vm8706_vm7, %v6138_v37, %v6146_v58 }
 0x2e8   : > { %8188 = vmatmul.mubr.msk.bf16.vlgmr.msra.gmra.mrb[4].mxu1 %vm601_vm1, %v7405_v60  ;;  %8051 = vmatprep.subr.bf16.mxu0 %v11434_v62  ;;  %v6191_v29 = vrot.slane %v6189_v18, 6  ;;  %v4755_v45 = vrot.slane %v10765_v21, 6 }
 0x2e9   : > { %8192 = vmatpush3.bf16.xpose.msra.mxu1 %v6288_v51  ;;  %8207 = vmatprep.mubr.msk.bf16.mxu1 %vm8555_vm0, %v11434_v62  ;;  %v6151_v51 = vrot.slane %v6149_v49, 5  ;;  %v11131_v39 = vor.u32 %v4710_v13, %v4709_v8  ;;  %v6170_v22 = vrot.slane %v6168_v38, 5  ;;  %v4726_v49 = vrot.slane %v4724_v16, 6  ;;  %v7282_v13 = vld [vmem:[%s8678_s30 + $0x78] sm:$0xc] }
 0x2ea   : > { %8193 = vmatprep.subr.bf16.mxu1 %v11434_v62  ;;  %v6166_v8 = vrot.slane %v11139_v20, 4  ;;  %v6188_v38 = vrot.slane %v6186_v42, 5  ;;  %v6199_v16 = vshll.u32 %v7451_v26, 16  ;;  %v4747_v55 = vshrl.u32 %v7282_v13, 16  ;;  %v7454_v26 = vld [vmem:[%s8678_s30 + $0x98] sm:$0x3] }
 0x2eb   : > { %v6155_v60 = vor.u32 %v6154_v33, %v6151_v51  ;;  %v4713_v19 = vrot.slane %v11131_v39, 4  ;;  %v4730_v3 = vor.u32 %v4729_v2, %v4726_v49  ;;  %v4743_v51 = vrot.slane %v4741_v54, 7 }
 0x2ec   : > { %v6179_v33 = vrot.slane %v6177_v63, 5  ;;  %v4750_v23 = vshll.u32 %v7282_v13, 16  ;;  %v4712_v58 = vsel %vm10131_vm2, %v4708_v61, %v11131_v39  ;;  %v11181_v49 = vor.u32 %v6191_v29, %v6188_v38 }
 0x2ed   : > { %v6156_v4 = vrot.slane %v6155_v60, 4  ;;  %v4731_v34 = vrot.slane %v4730_v3, 4  ;;  %v6198_v60 = vrot.slane %v6196_v53, 5  ;;  %v4749_v2 = vrot.slane %v4747_v55, 6 }
 0x2ee   : > { %8048 = vmatmul.mubr.msk.bf16.vlgmr.msra.gmra.mrb[8].mxu0 %vm601_vm1, %v7245_v27  ;;  %v4740_v27 = vrot.slane %v4738_v10, 6  ;;  %v6183_v39 = vor.u32 %v6182_v47, %v6179_v33  ;;  %v4752_v32 = vrot.slane %v4750_v23, 7  ;;  %v6224_v47 = vshrl.u32 %v7454_v26, 16 }
 0x2ef   : > { %8052 = vmatpush3.bf16.xpose.msra.mxu0 %v4843_v40  ;;  %8067 = vmatprep.mubr.msk.bf16.mxu0 %vm8555_vm0, %v11434_v62  ;;  %v6137_v40 = vsel %vm8706_vm7, %v6128_v44, %v11108_v52  ;;  %v6174_v52 = vor.u32 %v6173_v50, %v6170_v22  ;;  %v4849_v44 = vsel %vm601_vm1, %v7290_v43, 0  ;;  %v6165_v12 = vsel %vm8706_vm7, %v6156_v4, %v11139_v20  ;;  %v7452_v22 = vld [vmem:[%s8678_s30 + $0x90] sm:$0xe]  ;;  %v11178_v50 = vld [vmem:[%s8678_s30 + $0x94] sm:$0xf] }
 0x2f0   : > { %8053 = vmatprep.subr.bf16.mxu0 %v11434_v62  ;;  %v7461_v37 = vcombine.low %v6137_v40, %v6147_v30  ;;  %v4736_v43 = vrot.slane %v11159_v14, 4  ;;  %v6201_v20 = vrot.slane %v6199_v16, 6  ;;  %v6205_v63 = vshrl.u32 %v7452_v22, 16 }
 0x2f1   : > { %8194 = vmatpush3.bf16.xpose.msra.mxu1 %v11092_v46  ;;  %v4721_v46 = vor.u32 %v4720_v11, %v4717_v28  ;;  %v7283_v28 = vld [vmem:[%s8678_s30 + $0x80] sm:$0x7]  ;;  %v4744_v11 = vor.u32 %v4743_v51, %v4740_v27  ;;  %v6208_v1 = vshll.u32 %v7452_v22, 16  ;;  %v6214_v42 = vshrl.u32 %v11178_v50, 16  ;;  %v7285_v22 = vld [vmem:[%s8678_s30 + $0x8c] sm:$0x7] }
 0x2f2   : > { %8195 = vmatprep.subr.bf16.mxu1 %v11434_v62  ;;  %v4761_v10 = vshrl.u32 %v7283_v28, 16  ;;  %v4764_v54 = vshll.u32 %v7283_v28, 16  ;;  %v6297_v40 = vsel %vm601_vm1, %v7461_v37, 0  ;;  %v6217_v21 = vshll.u32 %v11178_v50, 16 }
 0x2f3   : > { %v4722_v24 = vsel %vm10131_vm2, %v4713_v19, %v4721_v46  ;;  %v4735_v19 = vsel %vm10131_vm2, %v4731_v34, %v11159_v14  ;;  %v6184_v18 = vrot.slane %v6183_v39, 4  ;;  %v6194_v46 = vrot.slane %v11181_v49, 4 }
 0x2f4   : > { %v7291_v30 = vcombine.low %v4712_v58, %v4722_v24  ;;  %v6202_v4 = vor.u32 %v6201_v20, %v6198_v60  ;;  %v4763_v3 = vrot.slane %v4761_v10, 6  ;;  %v4766_v27 = vrot.slane %v4764_v54, 7 }
 0x2f5   : > { %v6207_v14 = vrot.slane %v6205_v63, 5  ;;  %v6210_v51 = vrot.slane %v6208_v1, 6  ;;  %v6216_v33 = vrot.slane %v6214_v42, 5  ;;  %v6219_v38 = vrot.slane %v6217_v21, 6  ;;  %v7286_v21 = vld [vmem:[%s8678_s30 + $0x90] sm:$0xc] }
 0x2f6   : > { %v6227_v53 = vshll.u32 %v7454_v26, 16  ;;  %v4852_v55 = vsel %vm601_vm1, %v7291_v30, 0  ;;  %v6193_v37 = vsel %vm8706_vm7, %v6184_v18, %v11181_v49  ;;  %v6203_v58 = vsel %vm8706_vm7, %v6194_v46, %v6202_v4 }
 0x2f7   : > { %8054 = vmatpush3.bf16.xpose.msra.mxu0 %v4846_v36  ;;  %v6175_v36 = vsel %vm8706_vm7, %v6166_v8, %v6174_v52  ;;  %v7284_v8 = vld [vmem:[%s8678_s30 + $0x84] sm:$0xc]  ;;  %v4753_v52 = vor.u32 %v4752_v32, %v4749_v2  ;;  %v4767_v34 = vor.u32 %v4766_v27, %v4763_v3  ;;  %v6211_v28 = vor.u32 %v6210_v51, %v6207_v14 }
 0x2f8   : > { %8055 = vmatprep.subr.bf16.mxu0 %v11434_v62  ;;  %v7462_v61 = vcombine.low %v6165_v12, %v6175_v36  ;;  %v4770_v29 = vshrl.u32 %v7284_v8, 16  ;;  %v4773_v16 = vshll.u32 %v7284_v8, 16  ;;  %v7455_v12 = vld [vmem:[%s8678_s30 + $0x9c] sm:$0xe]  ;;  %v6220_v39 = vor.u32 %v6219_v38, %v6216_v33 }
 0x2f9   : > { %8196 = vmatpush3.bf16.xpose.msra.mxu1 %v11127_v48  ;;  %v4756_v48 = vrot.slane %v10763_v25, 7  ;;  %v4745_v25 = vsel %vm10131_vm2, %v4736_v43, %v4744_v11  ;;  %v4754_v24 = vrot.slane %v4753_v52, 4  ;;  %v6226_v43 = vrot.slane %v6224_v47, 5  ;;  %v11210_v11 = vld [vmem:[%s8678_s30 + $0xa0] sm:$0xf] }
 0x2fa   : > { %8197 = vmatprep.subr.bf16.mxu1 %v11434_v62  ;;  %v6300_v23 = vsel %vm601_vm1, %v7462_v61, 0  ;;  %v6229_v60 = vrot.slane %v6227_v53, 6  ;;  %v4772_v20 = vrot.slane %v4770_v29, 6  ;;  %v4775_v2 = vrot.slane %v4773_v16, 7 }
 0x2fb   : > { %v11196_v13 = vor.u32 %v4756_v48, %v4755_v45  ;;  %v4778_v49 = vrot.slane %v10783_v6, 6  ;;  %v4779_v32 = vrot.slane %v10781_v5, 7  ;;  %v6233_v45 = vshrl.u32 %v7455_v12, 16  ;;  %v7457_v5 = vld [vmem:[%s8678_s30 + $0xa4] sm:$0x3] }
 0x2fc   : > { %v6236_v48 = vshll.u32 %v7455_v12, 16  ;;  %v6242_v54 = vshrl.u32 %v11210_v11, 16  ;;  %v7463_v63 = vcombine.low %v6193_v37, %v6203_v58  ;;  %v4784_v6 = vshrl.u32 %v7285_v22, 16 }
 0x2fd   : > { %v4759_v36 = vrot.slane %v11196_v13, 4  ;;  %v4758_v1 = vsel %vm10131_vm2, %v4754_v24, %v11196_v13  ;;  %v4787_v42 = vshll.u32 %v7285_v22, 16  ;;  %v6212_v61 = vrot.slane %v6211_v28, 4 }
 0x2fe   : > { %v6230_v26 = vor.u32 %v6229_v60, %v6226_v43  ;;  %v4780_v18 = vor.u32 %v4779_v32, %v4778_v49  ;;  %v6235_v46 = vrot.slane %v6233_v45, 5  ;;  %v6238_v4 = vrot.slane %v6236_v48, 6 }
 0x2ff   : > { %8056 = vmatpush3.bf16.xpose.msra.mxu0 %v4849_v44  ;;  %v7292_v44 = vcombine.low %v4735_v19, %v4745_v25  ;;  %v4768_v30 = vsel %vm10131_vm2, %v4759_v36, %v4767_v34  ;;  %v6222_v19 = vrot.slane %v6220_v39, 4  ;;  %v4776_v25 = vor.u32 %v4775_v2, %v4772_v20 }
 0x300   : > { %8057 = vmatprep.subr.bf16.mxu0 %v11434_v62  ;;  %v6244_v8 = vrot.slane %v6242_v54, 5  ;;  %v6252_v13 = vshrl.u32 %v7457_v5, 16  ;;  %v6255_v3 = vshll.u32 %v7457_v5, 16  ;;  %v4786_v27 = vrot.slane %v4784_v6, 6  ;;  %v7468_v5 = vld [vmem:[%s8678_s30 + $0x48] sm:$0x8] }
 0x301   : > { %8198 = vmatpush3.bf16.xpose.msra.mxu1 %v6297_v40  ;;  %v4855_v10 = vsel %vm601_vm1, %v7292_v44, 0  ;;  %v6245_v40 = vshll.u32 %v11210_v11, 16  ;;  %v4789_v14 = vrot.slane %v4787_v42, 7  ;;  %v4793_v51 = vshrl.u32 %v7286_v21, 16 }
 0x302   : > { %8199 = vmatprep.subr.bf16.mxu1 %v11434_v62  ;;  %v4796_v33 = vshll.u32 %v7286_v21, 16  ;;  %v6303_v47 = vsel %vm601_vm1, %v7463_v63, 0  ;;  %v7293_v38 = vcombine.low %v4758_v1, %v4768_v30  ;;  %v6221_v53 = vsel %vm8706_vm7, %v6212_v61, %v6220_v39  ;;  %v7469_v30 = vld [vmem:[%s8678_s30 + $0x50] sm:$0x7] }
 0x303   : > { %v6247_v52 = vrot.slane %v6245_v40, 6  ;;  %v6231_v29 = vsel %vm8706_vm7, %v6222_v19, %v6230_v26  ;;  %v4777_v16 = vrot.slane %v4776_v25, 4  ;;  %v6254_v37 = vrot.slane %v6252_v13, 5 }
 0x304   : > { %v6257_v58 = vrot.slane %v6255_v3, 6  ;;  %v4782_v24 = vrot.slane %v4780_v18, 4  ;;  %v4790_v12 = vor.u32 %v4789_v14, %v4786_v27  ;;  %v4795_v36 = vrot.slane %v4793_v51, 6  ;;  %v7470_v14 = vld [vmem:[%s8678_s30 + $0x54] sm:$0x8] }
 0x305   : > { %v6248_v44 = vor.u32 %v6247_v52, %v6244_v8  ;;  %v4798_v34 = vrot.slane %v4796_v33, 7  ;;  %v4801_v28 = vrot.slane %v10808_v31, 6  ;;  %v4802_v43 = vrot.slane %v10806_v57, 7  ;;  %v7471_v51 = vld [vmem:[%s8678_s30 + $0x5c] sm:$0x7] }
 0x306   : > { %v7464_v22 = vcombine.low %v6221_v53, %v6231_v29  ;;  %v6258_v49 = vor.u32 %v6257_v58, %v6254_v37  ;;  %v4858_v32 = vsel %vm601_vm1, %v7293_v38, 0  ;;  %v4781_v45 = vsel %vm10131_vm2, %v4777_v16, %v4780_v18  ;;  %v7473_v37 = vld [vmem:[%s8678_s30 + $0x68] sm:$0x7] }
 0x307   : > { %8058 = vmatpush3.bf16.xpose.msra.mxu0 %v4852_v55  ;;  %v7287_v55 = vld [vmem:[%s8678_s30 + $0x98] sm:$0x7]  ;;  %v6250_v2 = vrot.slane %v6248_v44, 4  ;;  %v4791_v31 = vsel %vm10131_vm2, %v4782_v24, %v4790_v12  ;;  %v4799_v48 = vor.u32 %v4798_v34, %v4795_v36  ;;  %v4803_v57 = vor.u32 %v4802_v43, %v4801_v28  ;;  %v7271_v24 = vld [vmem:[%s11414_s1 + $0x3c] sm:$0xf] }
 0x308   : > { %8059 = vmatprep.subr.bf16.mxu0 %v11434_v62  ;;  %v4807_v39 = vshrl.u32 %v7287_v55, 16  ;;  %v4810_v60 = vshll.u32 %v7287_v55, 16  ;;  %v6306_v40 = vsel %vm601_vm1, %v7464_v22, 0  ;;  %v6396_v6 = vrot.slane %v10951_v56, 7  ;;  %v7475_v22 = vld [vmem:[%s8678_s30 + $0x74] sm:$0x7] }
 0x309   : > { %8200 = vmatpush3.bf16.xpose.msra.mxu1 %v6300_v23  ;;  %v6239_v23 = vor.u32 %v6238_v4, %v6235_v46  ;;  %v6259_v1 = vsel %vm8706_vm7, %v6250_v2, %v6258_v49  ;;  %v7294_v42 = vcombine.low %v4781_v45, %v4791_v31  ;;  %v4800_v61 = vrot.slane %v4799_v48, 4 }
 0x30a   : > { %8201 = vmatprep.subr.bf16.mxu1 %v11434_v62  ;;  %v4812_v54 = vrot.slane %v4810_v60, 7  ;;  %v4805_v19 = vrot.slane %v4803_v57, 4  ;;  %v7484_v25 = vrot.slane %v7468_v5, 11  ;;  %v6398_v18 = vrot.slane %v6396_v6, 4  ;;  %v7474_v60 = vld [vmem:[%s8678_s30 + $0x6c] sm:$0x8] }
 0x30b   : > { %v6240_v20 = vrot.slane %v6239_v23, 4  ;;  %v6399_v35 = vrot.slane %v7469_v30, 7  ;;  %v4861_v46 = vsel %vm601_vm1, %v7294_v42, 0  ;;  %v4804_v56 = vsel %vm10131_vm2, %v4800_v61, %v4803_v57  ;;  %v7476_v57 = vld [vmem:[%s8678_s30 + $0x78] sm:$0x8] }
 0x30c   : > { %v6397_v52 = vsel %vm10269_vm5, %v7484_v25, %v6396_v6  ;;  %v6403_v3 = vrot.slane %v10976_v7, 7  ;;  %v7485_v33 = vrot.slane %v7470_v14, 11  ;;  %v6406_v38 = vrot.slane %v7471_v51, 7  ;;  %v7433_v7 = vld [vmem:[%s11414_s1 + $0x58] sm:$0xf] }
 0x30d   : > { %v6249_v63 = vsel %vm8706_vm7, %v6240_v20, %v6248_v44  ;;  %v6400_v13 = vsel %vm10269_vm5, %v6398_v18, %v6399_v35  ;;  %v6410_v23 = vrot.slane %v11009_v41, 7  ;;  %v7472_v44 = vld [vmem:[%s8678_s30 + $0x60] sm:$0x8]  ;;  %v6413_v41 = vrot.slane %v7473_v37, 7  ;;  %v7478_v30 = vld [vmem:[%s8678_s30 + $0x84] sm:$0x8] }
 0x30e   : > { %v7465_v21 = vcombine.low %v6249_v63, %v6259_v1  ;;  %v7492_v15 = vcombine.low %v6397_v52, %v6400_v13  ;;  %v6404_v16 = vsel %vm10269_vm5, %v7485_v33, %v6403_v3  ;;  %v7486_v12 = vrot.slane %v7472_v44, 11  ;;  %v7479_v61 = vld [vmem:[%s8678_s30 + $0x8c] sm:$0x7]  ;;  %v7483_v33 = vld [vmem:[%s8678_s30 + $0xa4] sm:$0x7] }
 0x30f   : > { %8060 = vmatpush3.bf16.xpose.msra.mxu0 %v4855_v10  ;;  %v4809_v10 = vrot.slane %v4807_v39, 6  ;;  %v6412_v36 = vrot.slane %v6410_v23, 4  ;;  %v6417_v39 = vrot.slane %v11055_v59, 7  ;;  %v7487_v2 = vrot.slane %v7474_v60, 11  ;;  %v7467_v44 = vld [vmem:[%s11414_s1 + $0x5c] sm:$0xf] }
 0x310   : > { %8061 = vmatprep.subr.bf16.mxu0 %v11434_v62  ;;  %v6309_v8 = vsel %vm601_vm1, %v7465_v21, 0  ;;  %v6478_v29 = vsel %vm601_vm1, %v7492_v15, 0  ;;  %v6411_v28 = vsel %vm10269_vm5, %v7486_v12, %v6410_v23  ;;  %v6424_v59 = vrot.slane %v11085_v0, 7 }
 0x311   : > { %8202 = vmatpush3.bf16.xpose.msra.mxu1 %v6303_v47  ;;  %v4813_v26 = vor.u32 %v4812_v54, %v4809_v10  ;;  %v6405_v47 = vrot.slane %v6403_v3, 4  ;;  %v6414_v43 = vsel %vm10269_vm5, %v6412_v36, %v6413_v41  ;;  %v6419_v49 = vrot.slane %v6417_v39, 4  ;;  %v7477_v10 = vld [vmem:[%s8678_s30 + $0x80] sm:$0x7] }
 0x312   : > { %8203 = vmatprep.subr.bf16.mxu1 %v11434_v62  ;;  %v7494_v20 = vcombine.low %v6411_v28, %v6414_v43  ;;  %v6418_v31 = vsel %vm10269_vm5, %v7487_v2, %v6417_v39  ;;  %v6426_v63 = vrot.slane %v6424_v59, 4  ;;  %v6427_v1 = vrot.slane %v7477_v10, 7  ;;  %v11446_v39 = vld [vmem:[#allocation6_spill] sm:$0xff]  ;;  %v11447_v2 = vld [vmem:[#allocation7_spill] sm:$0xff] }
 0x313   : > { %v4814_v4 = vsel %vm10131_vm2, %v4805_v19, %v4813_v26  ;;  %v6407_v55 = vsel %vm10269_vm5, %v6405_v47, %v6406_v38  ;;  %v6431_v0 = vrot.slane %v11137_v9, 7  ;;  %v7489_v26 = vrot.slane %v7478_v30, 11 }
 0x314   : > { %v7295_v27 = vcombine.low %v4804_v56, %v4814_v4  ;;  %v7493_v58 = vcombine.low %v6404_v16, %v6407_v55  ;;  %v6484_v45 = vsel %vm601_vm1, %v7494_v20, 0  ;;  %v6428_v5 = vsel %vm10269_vm5, %v6426_v63, %v6427_v1  ;;  %v7480_v56 = vld [vmem:[%s8678_s30 + $0x90] sm:$0x8]  ;;  %v7481_v4 = vld [vmem:[%s8678_s30 + $0x98] sm:$0x7] }
 0x315   : > { %v6433_v21 = vrot.slane %v6431_v0, 4  ;;  %v6434_v25 = vrot.slane %v7479_v61, 7  ;;  %v6432_v35 = vsel %vm10269_vm5, %v7489_v26, %v6431_v0  ;;  %v6438_v9 = vrot.slane %v11178_v50, 7  ;;  %v7482_v50 = vld [vmem:[%s8678_s30 + $0x9c] sm:$0x8]  ;;  %s8462_s30 = sshll.u32 %s8557_s27, 4  ;;  %s8463_s30 = int_to_ptr.vmem [resolvable:$false] %s8462_s30 }
 0x316   : > { %v4864_v53 = vsel %vm601_vm1, %v7295_v27, 0  ;;  %v6481_v34 = vsel %vm601_vm1, %v7493_v58, 0  ;;  %v7490_v52 = vrot.slane %v7480_v56, 11  ;;  %v6441_v3 = vrot.slane %v7481_v4, 7  ;;  %s8464_s8 = scalar_lea.vmem %s8463_s30, 1280  ;;  %p8465_p2 = scmp.lt.s32.totalorder %s11350_s15, %s8463_s30 }
 0x317   : > { %8062 = vmatpush3.bf16.xpose.msra.mxu0 %v4858_v32  ;;  %v6420_v32 = vrot.slane %v7475_v22, 7  ;;  %v6440_v13 = vrot.slane %v6438_v9, 4  ;;  %v6445_v15 = vrot.slane %v11210_v11, 7  ;;  %v7491_v38 = vrot.slane %v7482_v50, 11  ;;  %p8466_p4 = scmp.lt.s32.totalorder %s8464_s8, %s8458_s26 }
 0x318   : > { %8063 = vmatprep.subr.bf16.mxu0 %v11434_v62  ;;  %v6439_v14 = vsel %vm10269_vm5, %v7490_v52, %v6438_v9 }
 0x319   : > { %8204 = vmatpush3.bf16.xpose.msra.mxu1 %v6306_v40  ;;  %v6421_v48 = vsel %vm10269_vm5, %v6419_v49, %v6420_v32  ;;  %v7488_v40 = vrot.slane %v7476_v57, 11  ;;  %v6442_v51 = vsel %vm10269_vm5, %v6440_v13, %v6441_v3  ;;  %v6446_v16 = vsel %vm10269_vm5, %v7491_v38, %v6445_v15  ;;  %p8467_p5 = por %p8466_p4, %p8465_p2 }
 0x31a   : > { %8205 = vmatprep.subr.bf16.mxu1 %v11434_v62  ;;  %v7495_v54 = vcombine.low %v6418_v31, %v6421_v48  ;;  %v7498_v47 = vcombine.low %v6439_v14, %v6442_v51 }
 0x31b   : > { %v6425_v42 = vsel %vm10269_vm5, %v7488_v40, %v6424_v59  ;;  %p8468_p6 = pnand %p8467_p5, %p8461_p1 }
 0x31c   : > { %v6487_v6 = vsel %vm601_vm1, %v7495_v54, 0  ;;  %v7496_v19 = vcombine.low %v6425_v42, %v6428_v5 }
 0x31e   : > { %v6490_v18 = vsel %vm601_vm1, %v7496_v19, 0 }
 0x31f   : > { %8064 = vmatpush3.bf16.xpose.msra.mxu0 %v4861_v46  ;;  %v6435_v46 = vsel %vm10269_vm5, %v6433_v21, %v6434_v25 }
 0x320   : > { %8065 = vmatprep.subr.bf16.mxu0 %v11434_v62 }
 0x321   : > { %8206 = vmatpush3.bf16.xpose.msra.mxu1 %v6309_v8  ;;  %v7497_v8 = vcombine.low %v6432_v35, %v6435_v46 }
 0x322   : > { %8211 = vmatprep.subr.bf16.mxu1 %v11434_v62 }
 0x323   : > { %v6493_v27 = vsel %vm601_vm1, %v7497_v8, 0 }
 0x327   : > { %8066 = vmatpush3.bf16.xpose.msra.mxu0 %v4864_v53  ;;  %v6447_v53 = vrot.slane %v6445_v15, 4 }
 0x328   : > { %8208 = vmatmul.mubr.msk.bf16.vlgmr.msra.gmra.mrb[4].mxu1 %vm601_vm1, %v7433_v7  ;;  %v6448_v7 = vrot.slane %v7483_v33, 7 }
 0x329   : > { %8212 = vmatpush3.bf16.xpose.msra.mxu1 %v6478_v29  ;;  %8227 = vmatprep.mubr.msk.bf16.mxu1 %vm8555_vm0, %v11434_v62  ;;  %v6496_v29 = vsel %vm601_vm1, %v7498_v47, 0 }
 0x32a   : > { %8213 = vmatprep.subr.bf16.mxu1 %v11434_v62  ;;  %v6449_v55 = vsel %vm10269_vm5, %v6447_v53, %v6448_v7 }
 0x32b   : > { %v7499_v11 = vcombine.low %v6446_v16, %v6449_v55 }
 0x32d   : > { %v6499_v23 = vsel %vm601_vm1, %v7499_v11, 0 }
 0x32e   : > { %8068 = vmatmul.mubr.msk.bf16.vlgmr.msra.gmra.mrb[8].mxu0 %vm601_vm1, %v7271_v24  ;;  %v11445_v24 = vld [vmem:[#allocation9_spill] sm:$0xff] }
 0x331   : > { %8214 = vmatpush3.bf16.xpose.msra.mxu1 %v6481_v34 }
 0x332   : > { %8215 = vmatprep.subr.bf16.mxu1 %v11434_v62 }
 0x339   : > { %8216 = vmatpush3.bf16.xpose.msra.mxu1 %v6484_v45 }
 0x33a   : > { %8217 = vmatprep.subr.bf16.mxu1 %v11434_v62 }
 0x341   : > { %8218 = vmatpush3.bf16.xpose.msra.mxu1 %v6487_v6 }
 0x342   : > { %8219 = vmatprep.subr.bf16.mxu1 %v11434_v62 }
 0x349   : > { %8220 = vmatpush3.bf16.xpose.msra.mxu1 %v6490_v18 }
 0x34a   : > { %8221 = vmatprep.subr.bf16.mxu1 %v11434_v62 }
 0x351   : > { %8222 = vmatpush3.bf16.xpose.msra.mxu1 %v6493_v27 }
 0x352   : > { %8223 = vmatprep.subr.bf16.mxu1 %v11434_v62 }
 0x359   : > { %8224 = vmatpush3.bf16.xpose.msra.mxu1 %v6496_v29  ;;  %v6564_v37 = vpop.permute.xlu0 %6563 }
 0x35a   : > { %8225 = vmatprep.subr.bf16.mxu1 %v11434_v62 }
 0x35d   : > { %v6592_v17 = vpop.permute.xlu0 %6591 }
 0x35e   : > { %6594 = vst [vmem:[%s9853_s14 + $0x20] sm:$0xff] %v6592_v17 }
 0x361   : > { %8226 = vmatpush3.bf16.xpose.msra.mxu1 %v6499_v23 }
 0x368   : > { %8228 = vmatmul.mubr.msk.bf16.vlgmr.msra.gmra.mrb[4].mxu1 %vm601_vm1, %v7467_v44 }
 0x401   : > { %v4900_v58 = vpop.f32.mrb[8].mxu0 }
 0x402   : > { %v4908_v62 = vadd.f32 %v4900_v58, %v11445_v24  ;;  %v8069_v12 = vpop.f32.mrb[9].mxu0 }
 0x403   : > { %v4903_v36 = vpop.f32.mrb[10].mxu0 }
 0x404   : > { %v6577_v41 = vadd.f32 %v6564_v37, %v4908_v62  ;;  %v8070_v34 = vpop.f32.mrb[11].mxu0 }
 0x406   : > { %v6581_v28 = vmax.f32 %v6577_v41, 0.0 }
 0x408   : > { %6585 = vst [vmem:[%s9853_s14 + $0x8] sm:$0xff] %v6581_v28 }
 0x43b   : > { %v6535_v43 = vpop.f32.mrb[4].mxu1 }
 0x43c   : > { %v6543_v60 = vadd.f32 %v11446_v39, %v6535_v43  ;;  %v8229_v22 = vpop.f32.mrb[5].mxu1 }
 0x43d   : > { %v6538_v20 = vpop.f32.mrb[6].mxu1 }
 0x43e   : > { %v6578_v49 = vadd.f32 %v11447_v2, %v6543_v60  ;;  %v8230_v32 = vpop.f32.mrb[7].mxu1 }
 0x440   : > { %v6582_v45 = vmax.f32 %v6578_v49, 0.0 }
 0x442   : > { %6586 = vst [vmem:[%s9853_s14 + $0x10] sm:$0xff] %v6582_v45 }
 0x443   : > { %8471 = shalt.err (!%p8468_p6)
}
 0x444   : > { %s8472_s10 = scalar_lea.hbm %s11356_s21, 640  ;;  %s8476_s13 = scalar_lea.hbm %s11418_s5, 2560 }
 0x445   : > { %p8473_p7 = scmp.ne.s32.totalorder %s11356_s21, %s8472_s10  ;;  %p8477_p11 = scmp.lt.u32.totalorder %s11356_s21, %s11418_s5 }
 0x446   : > { %p8478_p12 = scmp.lt.u32.totalorder %s8476_s13, %s8472_s10  ;;  %p8480_p0 = scmp.lt.u32.totalorder %s8472_s10, %s11356_s21 }
 0x447   : > { %p8474_p9 = pnand %p8473_p7, %p8642_p3 }
 0x448   : > { %p8479_p13 = por %p8478_p12, %p8477_p11 }
 0x449   : > { %p8475_p10 = pneg %p8474_p9 }
 0x44a   : > { %p8481_p1 = por %p8480_p0, %p8479_p13 }
 0x44c   : > { %p8482_p2 = pnand %p8481_p1, %p8475_p10 }
 0x44e   : > { %8485 = shalt.err (!%p8482_p2)
}
 0x44f   : > { %s8558_s22 = smov 128   ;;  %s8559_s26 = smov 256  }
 0x450   : > { %s8560_s27 = smov 8  }
 0x451   : > { %8323 = dma.vmem_to_hbm [thread:$0]  (%p8642_p3), %s11350_s15, 640, %s11356_s21, %s11361_s17, %s8558_s22, %s8559_s26, %s8560_s27  }
 0x452 PF: > { %p8329_p4 = scmp.ge.s32.totalorder %s8552_s25, 2  ;;  %s6625_s30 = sand.u32 1, %s8524_s18  }
 0x453   : > { %s6626_s8 = scalar_lea.sflag [#allocation4], %s6625_s30 }
 0x454   : > { %p8326_p5 = pnand %p8329_p4, %p8651_p8 }
 0x456   : > { %8519 = dma.done.wait (!%p8326_p5), %s6626_s8, 640  }
 0x457   : > { %8521 = vsyncadd (!%p8326_p5), %s6626_s8, 4294966656  ;;  %s18_s25 = sadd.s32 1, %s8552_s25   ;;  %s11448_s18 = smov %s8528_s19 }
 0x458   : > { %p15_p6 = scmp.ge.s32.totalorder %s18_s25, 6   ;;  %s11449_s19 = smov %s8532_s20 }
 0x459   : > { %s11450_s20 = smov %s8660_s11  ;;  %s11451_s21 = smov %s8544_s23 }
 0x45a   : > { %s11452_s22 = smov %s8548_s24  ;;  %s11453_s23 = smov %s11456_s28 }
 0x45b   : > { %s11454_s24 = smov %s11460_s29  ;;  %17 = sbr.rel (!%p15_p6) target bundleno = 5 (0x5), region = 126 }
 0x462   :  { %6631 = vsyncpa [#allocation4], 1 }
 0x463   :  { %6633 = vsyncpa [#allocation4 + $0x1], 1 }

</bundles_post_ra>
